<compile_context>
chip_gen: v6e
topology: v6e:2x2x1
jax: 0.10.0
libtpu: 0.0.40
codegen_flags: <defaults>
</compile_context>

<pallas_src>
import numpy as np
import jax
import jax.numpy as jnp
from jax.experimental import pallas as pl
from jax.experimental.pallas import tpu as pltpu


# ----------------------------------------------------------------------------
# PyTorch-matching bilinear (align_corners=False, no antialias) weight matrix.
# ----------------------------------------------------------------------------
def bilinear_weight_matrix(out_size, in_size):
    w = np.zeros((out_size, in_size), dtype=np.float32)
    if out_size == in_size:
        np.fill_diagonal(w, 1.0)
        return w
    scale = in_size / out_size
    for i in range(out_size):
        src = (i + 0.5) * scale - 0.5
        src = max(src, 0.0)                 # PyTorch clamps negative src to 0
        i0 = min(int(np.floor(src)), in_size - 1)
        i1 = min(i0 + 1, in_size - 1)
        lam = float(src - i0)
        w[i, i0] += 1.0 - lam
        w[i, i1] += lam
    return w


# ----------------------------------------------------------------------------
# Fused kernel: all scales, one launch, target read once.
#   refs = [tgt(B,H,W), pred_0..pred_{S-1}(B,Hs,Ws),
#           whb(B,sum_Hs,H)?, wwb_0..wwb_{R-1}(B,W,Ws)?, out(1,1)]
# ----------------------------------------------------------------------------
def _build_kernel(num_scales, num_resize, coefs, needs_resize, scale_hw, row_offsets):
    def kernel(*refs):
        tgt_ref = refs[0]
        pred_refs = refs[1:1 + num_scales]
        whb_ref = refs[1 + num_scales] if num_resize else None
        ww_refs = refs[2 + num_scales:2 + num_scales + num_resize]
        out_ref = refs[-1]

        t = tgt_ref[...]                         # (B, H, W) native dtype (bf16 ok)

        if num_resize:
            # One fused H-contraction for ALL scales (stacked Wh), f32 accumulation.
            r1_all = jnp.einsum('boh,bhw->bow', whb_ref[...], t,
                                preferred_element_type=jnp.float32,
                                precision=jax.lax.Precision.HIGHEST)   # (B,sum_Hs,W) f32

        total = jnp.zeros((1, 1), jnp.float32)
        r_idx = 0
        for s in range(num_scales):
            p = pred_refs[s][...].astype(jnp.float32)        # f32 epilogue
            if needs_resize[s]:
                hs, _ = scale_hw[s]
                off = row_offsets[r_idx]
                r1 = r1_all[:, off:off + hs, :]              # static slice, (B,Hs,W)
                # Per-scale W-contraction: batch-linear batched matmul (no block-diag).
                r = jnp.einsum('bow,bwp->bop', r1, ww_refs[r_idx][...],
                               preferred_element_type=jnp.float32,
                               precision=jax.lax.Precision.HIGHEST)    # (B,Hs,Ws) f32
                r_idx += 1
            else:
                r = t.astype(jnp.float32)                    # shapes match: no resize
            d = p - r
            # coef = weight_s / (B*Hs*Ws)  -> weighted mean-squared-error contribution.
            total = total + jnp.float32(coefs[s]) * jnp.sum(d * d)

        out_ref[...] = total

    return kernel


def multi_scale_loss(predictions, targets, weights=None):
    """predictions: list of (N,C,Hs,Ws) arrays; targets: (N,C,H,W). Returns scalar."""
    if weights is None:
        weights = [1.0, 0.5, 0.25, 0.125]
    N, C, H, W = targets.shape
    B = N * C
    # Interp matrices follow the activation dtype so bf16 activations keep a pure-bf16
    # MXU feed; keep them f32 if bf16 weight precision ever becomes a concern.
    mat_dtype = targets.dtype

    tgt3 = targets.reshape(B, H, W)              # natural layout, no transposes

    preds3, coefs, needs_resize, scale_hw = [], [], [], []
    wh_blocks, wwT_list = [], []
    for i, pred in enumerate(predictions):
        wgt = weights[i] if i < len(weights) else weights[-1]
        _, _, Hs, Ws = pred.shape
        preds3.append(pred.reshape(B, Hs, Ws))
        coefs.append(float(wgt) / float(B * Hs * Ws))        # F.mse_loss 'mean' + weight
        scale_hw.append((Hs, Ws))
        resize = (Hs != H) or (Ws != W)
        needs_resize.append(resize)
        if resize:
            wh_blocks.append(bilinear_weight_matrix(Hs, H))          # (Hs, H)
            wwT_list.append(bilinear_weight_matrix(Ws, W).T)         # (W, Ws)

    num_scales = len(predictions)
    num_resize = len(wh_blocks)

    operands = [tgt3] + preds3
    row_offsets = []
    if num_resize:
        off = 0
        for blk in wh_blocks:
            row_offsets.append(off)
            off += blk.shape[0]
        wh_stacked = np.concatenate(wh_blocks, axis=0)               # (sum_Hs, H)
        # Batch-LINEAR broadcast of the tiny interp matrices: O(B*Hs*H) bytes, not O(B^2).
        operands.append(jnp.broadcast_to(
            jnp.asarray(wh_stacked, dtype=mat_dtype)[None], (B,) + wh_stacked.shape))
        for wwT in wwT_list:
            operands.append(jnp.broadcast_to(
                jnp.asarray(wwT, dtype=mat_dtype)[None], (B,) + wwT.shape))

    kernel = _build_kernel(num_scales, num_resize, coefs, needs_resize,
                           scale_hw, row_offsets)

    # No grid: one invocation, every operand resident in VMEM exactly once (no
    # double-buffering, unlike a trivial 1-step grid).
    # TODO(synk): for real image sizes, tile H over a grid (>=512-row tiles, multiple
    # of 8 sublanes) for DMA/compute overlap, set vmem_limit_bytes for v7x's 64 MiB
    # budget, and split B over a leading 'parallel' axis to use the second TensorCore.
    out = pl.pallas_call(
        kernel,
        out_shape=jax.ShapeDtypeStruct((1, 1), jnp.float32),
        in_specs=[pl.BlockSpec(memory_space=pltpu.MemorySpace.VMEM) for _ in operands],
        out_specs=pl.BlockSpec(memory_space=pltpu.MemorySpace.VMEM),
    )(*operands)
    return out[0, 0]


# ----------------------------------------------------------------------------
# Pure-numpy (float64) reference with the same interpolation matrices.
# ----------------------------------------------------------------------------
def _reference_loss(predictions, targets, weights):
    N, C, H, W = targets.shape
    tgt = np.asarray(targets, dtype=np.float64).reshape(N * C, H, W)
    total = 0.0
    for i, pred in enumerate(predictions):
        wgt = weights[i] if i < len(weights) else weights[-1]
        _, _, Hs, Ws = pred.shape
        p = np.asarray(pred, dtype=np.float64).reshape(N * C, Hs, Ws)
        if (Hs, Ws) != (H, W):
            wh = bilinear_weight_matrix(Hs, H).astype(np.float64)
            ww = bilinear_weight_matrix(Ws, W).astype(np.float64)
            tr = np.einsum('oh,bhw,pw->bop', wh, tgt, ww)
        else:
            tr = tgt
        total += wgt * np.mean((p - tr) ** 2)
    return total


if __name__ == "__main__":
    key = jax.random.PRNGKey(0)
    N, C, H, W = 2, 4, 16, 16
    scales = [16, 8, 4, 2]          # deep-supervision heads at 4 resolutions
    weights = [1.0, 0.5, 0.25, 0.125]

    k_t, *k_p = jax.random.split(key, 1 + len(scales))
    targets = jax.random.uniform(k_t, (N, C, H, W), dtype=jnp.float32)
    predictions = [
        jax.random.normal(k, (N, C, s, s), dtype=jnp.float32)
        for k, s in zip(k_p, scales)
    ]

    loss = jax.block_until_ready(multi_scale_loss(predictions, targets, weights))

    ref = _reference_loss(predictions, targets, weights)
    np.testing.assert_allclose(np.asarray(loss), ref, rtol=5e-4, atol=1e-5)

    print("KERNEL_OK")
</pallas_src>

<mosaic_0001>
module attributes {stable_mosaic.version = 11 : i64} {
  func.func @kernel(%arg0: memref<8x16x16xf32, #tpu.memory_space<vmem>>, %arg1: memref<8x16x16xf32, #tpu.memory_space<vmem>>, %arg2: memref<8x8x8xf32, #tpu.memory_space<vmem>>, %arg3: memref<8x4x4xf32, #tpu.memory_space<vmem>>, %arg4: memref<8x2x2xf32, #tpu.memory_space<vmem>>, %arg5: memref<8x14x16xf32, #tpu.memory_space<vmem>>, %arg6: memref<8x16x8xf32, #tpu.memory_space<vmem>>, %arg7: memref<8x16x4xf32, #tpu.memory_space<vmem>>, %arg8: memref<8x16x2xf32, #tpu.memory_space<vmem>>, %arg9: memref<1x1xf32, #tpu.memory_space<vmem>>) attributes {dimension_semantics = [], scalar_prefetch = 0 : i64, scratch_operands = 0 : i64, tpu.core_type = #tpu.core_type<tc>} {
    %c0 = arith.constant 0 : index
    %c0_0 = arith.constant 0 : index
    %c0_1 = arith.constant 0 : index
    %0 = vector.load %arg0[%c0, %c0_0, %c0_1] : memref<8x16x16xf32, #tpu.memory_space<vmem>>, vector<8x16x16xf32>
    %c0_2 = arith.constant 0 : index
    %c0_3 = arith.constant 0 : index
    %c0_4 = arith.constant 0 : index
    %1 = vector.load %arg5[%c0_2, %c0_3, %c0_4] : memref<8x14x16xf32, #tpu.memory_space<vmem>>, vector<8x14x16xf32>
    "tpu.trace_start"() <{level = 10 : i32, message = "boh,bhw->bow"}> : () -> ()
    %cst = arith.constant dense<0.000000e+00> : vector<8x14x16xf32>
    %2 = tpu.matmul %1, %0, %cst {dimension_numbers = #tpu.dot_dimension_numbers<[2], [1], [1], [2], [0, 0, 0, 1, 1, 2], [0], [0]>, precision = #tpu.contract_precision<fp32>} : vector<8x14x16xf32>, vector<8x16x16xf32>, vector<8x14x16xf32> -> vector<8x14x16xf32>
    %cst_5 = arith.constant 0.000000e+00 : f32
    "tpu.trace_stop"() : () -> ()
    %3 = vector.broadcast %cst_5 : f32 to vector<1x1xf32>
    %c0_6 = arith.constant 0 : index
    %c0_7 = arith.constant 0 : index
    %c0_8 = arith.constant 0 : index
    %4 = vector.load %arg1[%c0_6, %c0_7, %c0_8] : memref<8x16x16xf32, #tpu.memory_space<vmem>>, vector<8x16x16xf32>
    %5 = arith.subf %4, %0 : vector<8x16x16xf32>
    %6 = arith.mulf %5, %5 : vector<8x16x16xf32>
    %7 = vector.shape_cast %6 : vector<8x16x16xf32> to vector<1x8x16x16xf32>
    %cst_9 = arith.constant dense<0.000000e+00> : vector<1xf32>
    %8 = vector.multi_reduction <add>, %7, %cst_9 [1, 2, 3] : vector<1x8x16x16xf32> to vector<1xf32>
    %9 = vector.shape_cast %8 : vector<1xf32> to vector<1x1x1x1xf32>
    %10 = vector.extract %9[0, 0, 0, 0] : f32 from vector<1x1x1x1xf32>
    %cst_10 = arith.constant 4.8828125E-4 : f32
    %11 = arith.mulf %cst_10, %10 : f32
    %12 = vector.broadcast %11 : f32 to vector<1x1xf32>
    %13 = arith.addf %3, %12 : vector<1x1xf32>
    %c0_11 = arith.constant 0 : index
    %c0_12 = arith.constant 0 : index
    %c0_13 = arith.constant 0 : index
    %14 = vector.load %arg2[%c0_11, %c0_12, %c0_13] : memref<8x8x8xf32, #tpu.memory_space<vmem>>, vector<8x8x8xf32>
    %15 = vector.extract_strided_slice %2 {offsets = [0, 0, 0], sizes = [8, 8, 16], strides = [1, 1, 1]} : vector<8x14x16xf32> to vector<8x8x16xf32>
    %c0_14 = arith.constant 0 : index
    %c0_15 = arith.constant 0 : index
    %c0_16 = arith.constant 0 : index
    %16 = vector.load %arg6[%c0_14, %c0_15, %c0_16] : memref<8x16x8xf32, #tpu.memory_space<vmem>>, vector<8x16x8xf32>
    "tpu.trace_start"() <{level = 10 : i32, message = "bow,bwp->bop"}> : () -> ()
    %cst_17 = arith.constant dense<0.000000e+00> : vector<8x8x8xf32>
    %17 = tpu.matmul %15, %16, %cst_17 {dimension_numbers = #tpu.dot_dimension_numbers<[2], [1], [1], [2], [0, 0, 0, 1, 1, 2], [0], [0]>, precision = #tpu.contract_precision<fp32>} : vector<8x8x16xf32>, vector<8x16x8xf32>, vector<8x8x8xf32> -> vector<8x8x8xf32>
    "tpu.trace_stop"() : () -> ()
    %18 = arith.subf %14, %17 : vector<8x8x8xf32>
    %19 = arith.mulf %18, %18 : vector<8x8x8xf32>
    %20 = vector.shape_cast %19 : vector<8x8x8xf32> to vector<1x8x8x8xf32>
    %cst_18 = arith.constant dense<0.000000e+00> : vector<1xf32>
    %21 = vector.multi_reduction <add>, %20, %cst_18 [1, 2, 3] : vector<1x8x8x8xf32> to vector<1xf32>
    %22 = vector.shape_cast %21 : vector<1xf32> to vector<1x1x1x1xf32>
    %23 = vector.extract %22[0, 0, 0, 0] : f32 from vector<1x1x1x1xf32>
    %cst_19 = arith.constant 9.765625E-4 : f32
    %24 = arith.mulf %cst_19, %23 : f32
    %25 = vector.broadcast %24 : f32 to vector<1x1xf32>
    %26 = arith.addf %13, %25 : vector<1x1xf32>
    %c0_20 = arith.constant 0 : index
    %c0_21 = arith.constant 0 : index
    %c0_22 = arith.constant 0 : index
    %27 = vector.load %arg3[%c0_20, %c0_21, %c0_22] : memref<8x4x4xf32, #tpu.memory_space<vmem>>, vector<8x4x4xf32>
    %28 = vector.extract_strided_slice %2 {offsets = [0, 8, 0], sizes = [8, 4, 16], strides = [1, 1, 1]} : vector<8x14x16xf32> to vector<8x4x16xf32>
    %c0_23 = arith.constant 0 : index
    %c0_24 = arith.constant 0 : index
    %c0_25 = arith.constant 0 : index
    %29 = vector.load %arg7[%c0_23, %c0_24, %c0_25] : memref<8x16x4xf32, #tpu.memory_space<vmem>>, vector<8x16x4xf32>
    "tpu.trace_start"() <{level = 10 : i32, message = "bow,bwp->bop"}> : () -> ()
    %cst_26 = arith.constant dense<0.000000e+00> : vector<8x4x4xf32>
    %30 = tpu.matmul %28, %29, %cst_26 {dimension_numbers = #tpu.dot_dimension_numbers<[2], [1], [1], [2], [0, 0, 0, 1, 1, 2], [0], [0]>, precision = #tpu.contract_precision<fp32>} : vector<8x4x16xf32>, vector<8x16x4xf32>, vector<8x4x4xf32> -> vector<8x4x4xf32>
    "tpu.trace_stop"() : () -> ()
    %31 = arith.subf %27, %30 : vector<8x4x4xf32>
    %32 = arith.mulf %31, %31 : vector<8x4x4xf32>
    %33 = vector.shape_cast %32 : vector<8x4x4xf32> to vector<1x8x4x4xf32>
    %cst_27 = arith.constant dense<0.000000e+00> : vector<1xf32>
    %34 = vector.multi_reduction <add>, %33, %cst_27 [1, 2, 3] : vector<1x8x4x4xf32> to vector<1xf32>
    %35 = vector.shape_cast %34 : vector<1xf32> to vector<1x1x1x1xf32>
    %36 = vector.extract %35[0, 0, 0, 0] : f32 from vector<1x1x1x1xf32>
    %cst_28 = arith.constant 0.001953125 : f32
    %37 = arith.mulf %cst_28, %36 : f32
    %38 = vector.broadcast %37 : f32 to vector<1x1xf32>
    %39 = arith.addf %26, %38 : vector<1x1xf32>
    %c0_29 = arith.constant 0 : index
    %c0_30 = arith.constant 0 : index
    %c0_31 = arith.constant 0 : index
    %40 = vector.load %arg4[%c0_29, %c0_30, %c0_31] : memref<8x2x2xf32, #tpu.memory_space<vmem>>, vector<8x2x2xf32>
    %41 = vector.extract_strided_slice %2 {offsets = [0, 12, 0], sizes = [8, 2, 16], strides = [1, 1, 1]} : vector<8x14x16xf32> to vector<8x2x16xf32>
    %c0_32 = arith.constant 0 : index
    %c0_33 = arith.constant 0 : index
    %c0_34 = arith.constant 0 : index
    %42 = vector.load %arg8[%c0_32, %c0_33, %c0_34] : memref<8x16x2xf32, #tpu.memory_space<vmem>>, vector<8x16x2xf32>
    "tpu.trace_start"() <{level = 10 : i32, message = "bow,bwp->bop"}> : () -> ()
    %cst_35 = arith.constant dense<0.000000e+00> : vector<8x2x2xf32>
    %43 = tpu.matmul %41, %42, %cst_35 {dimension_numbers = #tpu.dot_dimension_numbers<[2], [1], [1], [2], [0, 0, 0, 1, 1, 2], [0], [0]>, precision = #tpu.contract_precision<fp32>} : vector<8x2x16xf32>, vector<8x16x2xf32>, vector<8x2x2xf32> -> vector<8x2x2xf32>
    "tpu.trace_stop"() : () -> ()
    %44 = arith.subf %40, %43 : vector<8x2x2xf32>
    %45 = arith.mulf %44, %44 : vector<8x2x2xf32>
    %46 = vector.shape_cast %45 : vector<8x2x2xf32> to vector<1x8x2x2xf32>
    %cst_36 = arith.constant dense<0.000000e+00> : vector<1xf32>
    %47 = vector.multi_reduction <add>, %46, %cst_36 [1, 2, 3] : vector<1x8x2x2xf32> to vector<1xf32>
    %48 = vector.shape_cast %47 : vector<1xf32> to vector<1x1x1x1xf32>
    %49 = vector.extract %48[0, 0, 0, 0] : f32 from vector<1x1x1x1xf32>
    %cst_37 = arith.constant 3.906250e-03 : f32
    %50 = arith.mulf %cst_37, %49 : f32
    %51 = vector.broadcast %50 : f32 to vector<1x1xf32>
    %52 = arith.addf %39, %51 : vector<1x1xf32>
    %c0_38 = arith.constant 0 : index
    %c0_39 = arith.constant 0 : index
    %53 = vector.load %arg9[%c0_38, %c0_39] : memref<1x1xf32, #tpu.memory_space<vmem>>, vector<1x1xf32>
    tpu.vector_store %arg9[%c0_38, %c0_39], %52 {strides = array<i32>} : memref<1x1xf32, #tpu.memory_space<vmem>>, vector<1x1xf32>,
    return
  }
}

</mosaic_0001>

<bundles_post_ra>
// kernel: tpu_custom_call.1
= control target key start
LH: loop header
LB: loop body
LE: loop exit
PB: predicated region body
PF: predicated region fallthrough
CT: control target
= control target key end

     0   :  { %vm65_vm0 = vcmask 130048   ;;  %s20228_s0 = inlined_call_operand.vmem [shape: f32[8,16,16], index: 0, kind: input, shape index: {}]   ;;  %s20229_s1 = inlined_call_operand.vmem [shape: f32[8,16,16], index: 1, kind: input, shape index: {}]   ;;  %s20230_s2 = inlined_call_operand.vmem [shape: f32[8,8,8], index: 2, kind: input, shape index: {}]   ;;  %s20231_s3 = inlined_call_operand.vmem [shape: f32[8,4,4], index: 3, kind: input, shape index: {}]   ;;  %s20232_s4 = inlined_call_operand.vmem [shape: f32[8,2,2], index: 4, kind: input, shape index: {}]   ;;  %s20233_s5 = inlined_call_operand.vmem [shape: f32[8,14,16], index: 5, kind: input, shape index: {}]   ;;  %s20234_s6 = inlined_call_operand.vmem [shape: f32[8,16,8], index: 6, kind: input, shape index: {}]   ;;  %s20235_s7 = inlined_call_operand.vmem [shape: f32[8,16,4], index: 7, kind: input, shape index: {}]   ;;  %s20236_s8 = inlined_call_operand.vmem [shape: f32[8,16,2], index: 8, kind: input, shape index: {}]   ;;  %s20237_s9 = inlined_call_operand.hbm [shape: f32[1,1], index: 9, kind: output, shape index: {}]  }
   0x1   :  { %v34_v0 = vld [vmem:[%s20228_s0 + $0x8] sm:$0xff]  ;;  %v33_v1 = vld [vmem:[%s20228_s0] sm:$0xff]  ;;  %v51_v11 = vld [vmem:[%s20233_s5 + $0x10] sm:$0xff] }
   0x2   :  { %v17605_v2 = vand.u32 4294901760, %v34_v0  ;;  %v17607_v3 = vand.u32 4294901760, %v33_v1  ;;  %v49_v4 = vld [vmem:[%s20233_s5] sm:$0xff]  ;;  %v50_v5 = vld [vmem:[%s20233_s5 + $0x8] sm:$0x3f]  ;;  %v36_v17 = vld [vmem:[%s20228_s0 + $0x18] sm:$0xff] }
   0x3   :  { %v67_v6 = vsel %vm65_vm0, %v49_v4, 0  ;;  %v70_v7 = vsel %vm65_vm0, %v50_v5, 0  ;;  %v52_v13 = vld [vmem:[%s20233_s5 + $0x18] sm:$0x3f]  ;;  %v575_v19 = vsel %vm65_vm0, %v51_v11, 0  ;;  %v17641_v25 = vand.u32 4294901760, %v36_v17 }
   0x4   :  { %16153 = vmatprep.subr.mxu0 %v17605_v2  ;;  %v189_v8 = vsub.f32 %v34_v0, %v17605_v2  ;;  %v17619_v9 = vand.u32 4294901760, %v67_v6  ;;  %v17621_v10 = vand.u32 4294901760, %v70_v7  ;;  %v196_v12 = vsub.f32 %v33_v1, %v17607_v3  ;;  %v35_v26 = vld [vmem:[%s20228_s0 + $0x10] sm:$0xff] }
   0x5   :  { %16154 = vmatpush3.msra.mxu0 %v17605_v2  ;;  %v578_v23 = vsel %vm65_vm0, %v52_v13, 0  ;;  %v17646_v30 = vand.u32 4294901760, %v575_v19  ;;  %v17650_v35 = vand.u32 4294901760, %v35_v26  ;;  %v17653_v36 = vsub.f32 %v36_v17, %v17641_v25 }
   0x6   :  { %16155 = vmatprep.subr.mxu0 %v17607_v3  ;;  %v190_v14 = vand.u32 4294901760, %v189_v8  ;;  %v140_v15 = vsub.f32 %v67_v6, %v17619_v9  ;;  %v150_v16 = vsub.f32 %v70_v7, %v17621_v10  ;;  %16164 = vmatprep.mubr.f32.mxu1 %v17619_v9  ;;  %v197_v18 = vand.u32 4294901760, %v196_v12 }
   0x7   :  { %16156 = vmatpush3.msra.mxu0 %v17607_v3  ;;  %v17648_v32 = vand.u32 4294901760, %v578_v23  ;;  %v17656_v37 = vsub.f32 %v575_v19, %v17646_v30 }
   0x8   :  { %v191_v20 = vsub.f32 %v189_v8, %v190_v14  ;;  %v141_v21 = vand.u32 4294901760, %v140_v15  ;;  %v151_v22 = vand.u32 4294901760, %v150_v16  ;;  %16167 = vmatprep.subr.mxu0 %v189_v8  ;;  %v198_v24 = vsub.f32 %v196_v12, %v197_v18 }
   0xa   :  { %v192_v27 = vand.u32 4294901760, %v191_v20  ;;  %v142_v28 = vsub.f32 %v140_v15, %v141_v21  ;;  %v152_v29 = vsub.f32 %v150_v16, %v151_v22  ;;  %v199_v31 = vand.u32 4294901760, %v198_v24 }
   0xc   :  { %16160 = vmatprep.subr.mxu1 %v192_v27  ;;  %v143_v33 = vand.u32 4294901760, %v142_v28  ;;  %v153_v34 = vand.u32 4294901760, %v152_v29 }
   0xd   :  { %16161 = vmatpush3.msra.mxu1 %v192_v27 }
   0xe   :  { %16157 = vmatprep.mubr.f32.mxu0 %v143_v33  ;;  %16162 = vmatprep.subr.mxu1 %v199_v31 }
   0xf   :  { %14 = vsyncpa [#allocation3], 0  ;;  %16158 = vmatmul.mubr.f32.vlgmr.msra.gmra.mxu0 %v153_v34  ;;  %16163 = vmatpush3.msra.mxu1 %v199_v31  ;;  %v17659_v38 = vsub.f32 %v578_v23, %v17648_v32  ;;  %v17663_v39 = vsub.f32 %v35_v26, %v17650_v35  ;;  %v17667_v40 = vand.u32 4294901760, %v17653_v36  ;;  %v649_v41 = vand.u32 4294901760, %v17656_v37  ;;  %v53_v46 = vld [vmem:[%s20233_s5 + $0x20] sm:$0xff]  ;;  %v38_v50 = vld [vmem:[%s20228_s0 + $0x28] sm:$0xff] }
  0x10   :  { %16168 = vmatpush3.msra.mxu0 %v189_v8  ;;  %16165 = vmatmul.mubr.f32.vlgmr.msra.gmra.mxu1 %v17621_v10  ;;  %v54_v48 = vld [vmem:[%s20233_s5 + $0x28] sm:$0x3f]  ;;  %v1083_v52 = vsel %vm65_vm0, %v53_v46, 0  ;;  %v17706_v56 = vand.u32 4294901760, %v38_v50  ;;  %v37_v57 = vld [vmem:[%s20228_s0 + $0x20] sm:$0xff]  ;;  %v55_v8 = vld [vmem:[%s20233_s5 + $0x30] sm:$0xff] }
  0x11   :  { %16169 = vmatprep.subr.mxu0 %v196_v12  ;;  %16174 = vmatprep.subr.mxu1 %v17605_v2  ;;  %v659_v42 = vand.u32 4294901760, %v17659_v38  ;;  %v17674_v43 = vand.u32 4294901760, %v17663_v39  ;;  %v699_v44 = vsub.f32 %v17653_v36, %v17667_v40  ;;  %v650_v45 = vsub.f32 %v17656_v37, %v649_v41  ;;  %v39_v19 = vld [vmem:[%s20228_s0 + $0x30] sm:$0xff]  ;;  %v57_v34 = vld [vmem:[%s20233_s5 + $0x40] sm:$0xff] }
  0x12   :  { %16170 = vmatpush3.msra.mxu0 %v196_v12  ;;  %16171 = vmatprep.mubr.f32.mxu0 %v140_v15  ;;  %v1086_v54 = vsel %vm65_vm0, %v54_v48, 0  ;;  %v17713_v59 = vand.u32 4294901760, %v1083_v52  ;;  %v17719_v61 = vand.u32 4294901760, %v37_v57  ;;  %v17722_v62 = vsub.f32 %v38_v50, %v17706_v56  ;;  %v40_v12 = vld [vmem:[%s20228_s0 + $0x38] sm:$0xff] }
  0x13   :  { %16175 = vmatpush3.msra.mxu1 %v17605_v2  ;;  %16172 = vmatmul.mubr.f32.vlgmr.msra.gmra.mxu0 %v150_v16  ;;  %v660_v47 = vsub.f32 %v17659_v38, %v659_v42  ;;  %v706_v49 = vsub.f32 %v17663_v39, %v17674_v43  ;;  %v700_v51 = vand.u32 4294901760, %v699_v44  ;;  %v651_v53 = vand.u32 4294901760, %v650_v45  ;;  %v41_v45 = vld [vmem:[%s20228_s0 + $0x40] sm:$0xff] }
  0x14   :  { %16176 = vmatprep.subr.mxu1 %v17607_v3  ;;  %16181 = vmatprep.subr.mxu0 %v190_v14  ;;  %v17716_v60 = vand.u32 4294901760, %v1086_v54  ;;  %v17726_v63 = vsub.f32 %v1083_v52, %v17713_v59  ;;  %v17735_v1 = vsub.f32 %v37_v57, %v17719_v61  ;;  %v17803_v23 = vand.u32 4294901760, %v39_v19 }
  0x15   :  { %16177 = vmatpush3.msra.mxu1 %v17607_v3  ;;  %16178 = vmatprep.mubr.f32.mxu1 %v141_v21  ;;  %v661_v55 = vand.u32 4294901760, %v660_v47  ;;  %v707_v58 = vand.u32 4294901760, %v706_v49  ;;  %v17887_v49 = vand.u32 4294901760, %v41_v45  ;;  %vm17547_vm1 = vmmov 0  }
  0x16   :  { %16182 = vmatpush3.msra.mxu0 %v190_v14  ;;  %16179 = vmatmul.mubr.f32.vlgmr.msra.gmra.mxu1 %v151_v22  ;;  %v17730_v0 = vsub.f32 %v1086_v54, %v17716_v60  ;;  %v17751_v5 = vand.u32 4294901760, %v17735_v1  ;;  %v1591_v14 = vsel %vm65_vm0, %v55_v8, 0  ;;  %v17819_v27 = vsub.f32 %v39_v19, %v17803_v23 }
  0x17   :  { %16183 = vmatprep.subr.mxu0 %v197_v18  ;;  %16188 = vmatprep.subr.mxu1 %v17605_v2  ;;  %v17797_v21 = vand.u32 4294901760, %v1591_v14  ;;  %vm7957_vm2 = vcmask 64512   ;;  %vm11721_vm3 = vcmask 27648   ;;  %vm15485_vm4 = vcmask 9216  }
  0x18   :  { %16184 = vmatpush3.msra.mxu0 %v197_v18  ;;  %16185 = vmatprep.mubr.f32.mxu0 %v17619_v9  ;;  %v1167_v4 = vand.u32 4294901760, %v17730_v0  ;;  %v1214_v11 = vsub.f32 %v17735_v1, %v17751_v5  ;;  %v17790_v18 = vand.u32 4294901760, %v40_v12  ;;  %v17835_v31 = vand.u32 4294901760, %v17819_v27 }
  0x19   :  { %16189 = vmatpush3.msra.mxu1 %v17605_v2  ;;  %16186 = vmatmul.mubr.f32.vlgmr.msra.gmra.mxu0 %v17621_v10  ;;  %v17740_v2 = vand.u32 4294901760, %v17722_v62  ;;  %vm15513_vm5 = vcmask 0  }
  0x1a   :  { %16190 = vmatprep.subr.mxu1 %v17607_v3  ;;  %16195 = vmatprep.subr.mxu0 %v17641_v25  ;;  %v1215_v20 = vand.u32 4294901760, %v1214_v11  ;;  %v17806_v24 = vsub.f32 %v40_v12, %v17790_v18 }
  0x1b   :  { %16191 = vmatpush3.msra.mxu1 %v17607_v3  ;;  %16192 = vmatprep.mubr.f32.mxu1 %v17619_v9  ;;  %v1157_v3 = vand.u32 4294901760, %v17726_v63  ;;  %v1207_v6 = vsub.f32 %v17722_v62, %v17740_v2  ;;  %v1168_v9 = vsub.f32 %v17730_v0, %v1167_v4 }
  0x1c   :  { %16196 = vmatpush3.msra.mxu0 %v17641_v25  ;;  %16193 = vmatmul.mubr.f32.vlgmr.msra.gmra.mxu1 %v17621_v10  ;;  %v56_v10 = vld [vmem:[%s20233_s5 + $0x38] sm:$0x3f]  ;;  %v17824_v28 = vand.u32 4294901760, %v17806_v24 }
  0x1d   :  { %16197 = vmatprep.subr.mxu0 %v17650_v35  ;;  %16202 = vmatprep.subr.mxu1 %v700_v51  ;;  %v1158_v7 = vsub.f32 %v17726_v63, %v1157_v3  ;;  %v1208_v13 = vand.u32 4294901760, %v1207_v6  ;;  %v1594_v16 = vsel %vm65_vm0, %v56_v10, 0  ;;  %v1169_v17 = vand.u32 4294901760, %v1168_v9 }
  0x1e   :  { %16198 = vmatpush3.msra.mxu0 %v17650_v35  ;;  %16199 = vmatprep.mubr.f32.mxu0 %v651_v53  ;;  %v17800_v22 = vand.u32 4294901760, %v1594_v16  ;;  %v17903_v53 = vsub.f32 %v41_v45, %v17887_v49 }
  0x1f   :  { %16203 = vmatpush3.msra.mxu1 %v700_v51  ;;  %16200 = vmatmul.mubr.f32.vlgmr.msra.gmra.mxu0 %v661_v55  ;;  %v1159_v15 = vand.u32 4294901760, %v1158_v7  ;;  %v43_v7 = vld [vmem:[%s20228_s0 + $0x50] sm:$0xff] }
  0x20   :  { %16204 = vmatprep.subr.mxu1 %v707_v58  ;;  %16209 = vmatprep.subr.mxu0 %v17653_v36  ;;  %v17814_v26 = vsub.f32 %v1594_v16, %v17800_v22  ;;  %v17919_v57 = vand.u32 4294901760, %v17903_v53  ;;  %v17971_v11 = vand.u32 4294901760, %v43_v7 }
  0x21   :  { %16205 = vmatpush3.msra.mxu1 %v707_v58  ;;  %16206 = vmatprep.mubr.f32.mxu1 %v17646_v30 }
  0x22   :  { %16210 = vmatpush3.msra.mxu0 %v17653_v36  ;;  %16207 = vmatmul.mubr.f32.vlgmr.msra.gmra.mxu1 %v17648_v32  ;;  %v58_v36 = vld [vmem:[%s20233_s5 + $0x48] sm:$0x3f] }
  0x23   :  { %16211 = vmatprep.subr.mxu0 %v17663_v39  ;;  %16216 = vmatprep.subr.mxu1 %v17641_v25 }
  0x24   :  { %16212 = vmatpush3.msra.mxu0 %v17663_v39  ;;  %16213 = vmatprep.mubr.f32.mxu0 %v17656_v37  ;;  %v1722_v37 = vsub.f32 %v17819_v27, %v17835_v31 }
  0x25   :  { %16217 = vmatpush3.msra.mxu1 %v17641_v25  ;;  %16214 = vmatmul.mubr.f32.vlgmr.msra.gmra.mxu0 %v17659_v38  ;;  %v42_v38 = vld [vmem:[%s20228_s0 + $0x48] sm:$0xff] }
  0x26   :  { %16218 = vmatprep.subr.mxu1 %v17650_v35  ;;  %16223 = vmatprep.subr.mxu0 %v17667_v40  ;;  %v17874_v44 = vand.u32 4294901760, %v42_v38  ;;  %v1723_v46 = vand.u32 4294901760, %v1722_v37 }
  0x27   :  { %16219 = vmatpush3.msra.mxu1 %v17650_v35  ;;  %16220 = vmatprep.mubr.f32.mxu1 %v649_v41 }
  0x28   :  { %16224 = vmatpush3.msra.mxu0 %v17667_v40  ;;  %16221 = vmatmul.mubr.f32.vlgmr.msra.gmra.mxu1 %v659_v42  ;;  %v2099_v40 = vsel %vm65_vm0, %v57_v34, 0  ;;  %v2102_v42 = vsel %vm65_vm0, %v58_v36, 0  ;;  %v17890_v50 = vsub.f32 %v42_v38, %v17874_v44 }
  0x29   :  { %16225 = vmatprep.subr.mxu0 %v17674_v43  ;;  %16230 = vmatprep.subr.mxu1 %v17641_v25  ;;  %v17881_v47 = vand.u32 4294901760, %v2099_v40  ;;  %v17884_v48 = vand.u32 4294901760, %v2102_v42 }
  0x2a   :  { %16226 = vmatpush3.msra.mxu0 %v17674_v43  ;;  %16227 = vmatprep.mubr.f32.mxu0 %v17646_v30  ;;  %v17908_v54 = vand.u32 4294901760, %v17890_v50 }
  0x2b   :  { %16231 = vmatpush3.msra.mxu1 %v17641_v25  ;;  %16228 = vmatmul.mubr.f32.vlgmr.msra.gmra.mxu0 %v17648_v32  ;;  %v17810_v25 = vsub.f32 %v1591_v14, %v17797_v21  ;;  %v17894_v51 = vsub.f32 %v2099_v40, %v17881_v47  ;;  %v17898_v52 = vsub.f32 %v2102_v42, %v17884_v48 }
  0x2c   :  { %16232 = vmatprep.subr.mxu1 %v17650_v35  ;;  %16237 = vmatprep.subr.mxu0 %v17706_v56  ;;  %v2223_v58 = vsub.f32 %v17890_v50, %v17908_v54 }
  0x2d   :  { %16233 = vmatpush3.msra.mxu1 %v17650_v35  ;;  %16234 = vmatprep.mubr.f32.mxu1 %v17646_v30  ;;  %v1665_v29 = vand.u32 4294901760, %v17810_v25  ;;  %v1675_v30 = vand.u32 4294901760, %v17814_v26  ;;  %v2173_v55 = vand.u32 4294901760, %v17894_v51 }
  0x2e   :  { %16238 = vmatpush3.msra.mxu0 %v17706_v56  ;;  %16235 = vmatmul.mubr.f32.vlgmr.msra.gmra.mxu1 %v17648_v32  ;;  %v1715_v32 = vsub.f32 %v17806_v24, %v17824_v28 }
  0x2f   :  { %16239 = vmatprep.subr.mxu0 %v17719_v61  ;;  %16244 = vmatprep.subr.mxu1 %v1208_v13  ;;  %v1666_v33 = vsub.f32 %v17810_v25, %v1665_v29  ;;  %v1676_v35 = vsub.f32 %v17814_v26, %v1675_v30 }
  0x30   :  { %16240 = vmatpush3.msra.mxu0 %v17719_v61  ;;  %16241 = vmatprep.mubr.f32.mxu0 %v1159_v15  ;;  %v1716_v39 = vand.u32 4294901760, %v1715_v32  ;;  %v17987_v15 = vsub.f32 %v43_v7, %v17971_v11 }
  0x31   :  { %16245 = vmatpush3.msra.mxu1 %v1208_v13  ;;  %16242 = vmatmul.mubr.f32.vlgmr.msra.gmra.mxu0 %v1169_v17  ;;  %v1667_v41 = vand.u32 4294901760, %v1666_v33  ;;  %v1677_v43 = vand.u32 4294901760, %v1676_v35  ;;  %v45_v33 = vld [vmem:[%s20228_s0 + $0x60] sm:$0xff] }
  0x32   :  { %16246 = vmatprep.subr.mxu1 %v1215_v20  ;;  %16251 = vmatprep.subr.mxu0 %v17722_v62  ;;  %v18003_v19 = vand.u32 4294901760, %v17987_v15  ;;  %v18055_v37 = vand.u32 4294901760, %v45_v33 }
  0x33   :  { %16247 = vmatpush3.msra.mxu1 %v1215_v20  ;;  %16248 = vmatprep.mubr.f32.mxu1 %v17713_v59 }
  0x34   :  { %16252 = vmatpush3.msra.mxu0 %v17722_v62  ;;  %16249 = vmatmul.mubr.f32.vlgmr.msra.gmra.mxu1 %v17716_v60  ;;  %v60_v62 = vld [vmem:[%s20233_s5 + $0x58] sm:$0x3f] }
  0x35   :  { %16253 = vmatprep.subr.mxu0 %v17735_v1  ;;  %16258 = vmatprep.subr.mxu1 %v17706_v56 }
  0x36   :  { %16254 = vmatpush3.msra.mxu0 %v17735_v1  ;;  %16255 = vmatprep.mubr.f32.mxu0 %v17726_v63  ;;  %v2230_v63 = vsub.f32 %v17903_v53, %v17919_v57  ;;  %v2224_v1 = vand.u32 4294901760, %v2223_v58 }
  0x37   :  { %16259 = vmatpush3.msra.mxu1 %v17706_v56  ;;  %16256 = vmatmul.mubr.f32.vlgmr.msra.gmra.mxu0 %v17730_v0  ;;  %v44_v0 = vld [vmem:[%s20228_s0 + $0x58] sm:$0xff] }
  0x38   :  { %16260 = vmatprep.subr.mxu1 %v17719_v61  ;;  %16265 = vmatprep.subr.mxu0 %v17740_v2  ;;  %v17958_v6 = vand.u32 4294901760, %v44_v0  ;;  %v2231_v8 = vand.u32 4294901760, %v2230_v63 }
  0x39   :  { %16261 = vmatpush3.msra.mxu1 %v17719_v61  ;;  %16262 = vmatprep.mubr.f32.mxu1 %v1157_v3 }
  0x3a   :  { %16266 = vmatpush3.msra.mxu0 %v17740_v2  ;;  %16263 = vmatmul.mubr.f32.vlgmr.msra.gmra.mxu1 %v1167_v4  ;;  %v2610_v4 = vsel %vm65_vm0, %v60_v62, 0  ;;  %v17974_v12 = vsub.f32 %v44_v0, %v17958_v6 }
  0x3b   :  { %16267 = vmatprep.subr.mxu0 %v17751_v5  ;;  %16272 = vmatprep.subr.mxu1 %v17706_v56  ;;  %v17968_v10 = vand.u32 4294901760, %v2610_v4 }
  0x3c   :  { %16268 = vmatpush3.msra.mxu0 %v17751_v5  ;;  %16269 = vmatprep.mubr.f32.mxu0 %v17713_v59  ;;  %v17992_v16 = vand.u32 4294901760, %v17974_v12 }
  0x3d   :  { %16273 = vmatpush3.msra.mxu1 %v17706_v56  ;;  %16270 = vmatmul.mubr.f32.vlgmr.msra.gmra.mxu0 %v17716_v60  ;;  %v2183_v56 = vand.u32 4294901760, %v17898_v52  ;;  %v17982_v14 = vsub.f32 %v2610_v4, %v17968_v10 }
  0x3e   :  { %16274 = vmatprep.subr.mxu1 %v17719_v61  ;;  %16279 = vmatprep.subr.mxu0 %v17790_v18  ;;  %v2731_v20 = vsub.f32 %v17974_v12, %v17992_v16 }
  0x3f   :  { %16275 = vmatpush3.msra.mxu1 %v17719_v61  ;;  %16276 = vmatprep.mubr.f32.mxu1 %v17713_v59  ;;  %v2174_v59 = vsub.f32 %v17894_v51, %v2173_v55  ;;  %v2184_v61 = vsub.f32 %v17898_v52, %v2183_v56 }
  0x40   :  { %16280 = vmatpush3.msra.mxu0 %v17790_v18  ;;  %16277 = vmatmul.mubr.f32.vlgmr.msra.gmra.mxu1 %v17716_v60  ;;  %v59_v60 = vld [vmem:[%s20233_s5 + $0x50] sm:$0xff] }
  0x41   :  { %16281 = vmatprep.subr.mxu0 %v17803_v23  ;;  %16286 = vmatprep.subr.mxu1 %v1716_v39  ;;  %v2607_v2 = vsel %vm65_vm0, %v59_v60, 0  ;;  %v2175_v3 = vand.u32 4294901760, %v2174_v59  ;;  %v2185_v5 = vand.u32 4294901760, %v2184_v61  ;;  %v47_v59 = vld [vmem:[%s20228_s0 + $0x70] sm:$0xff] }
  0x42   :  { %16282 = vmatpush3.msra.mxu0 %v17803_v23  ;;  %16283 = vmatprep.mubr.f32.mxu0 %v1667_v41  ;;  %v17965_v9 = vand.u32 4294901760, %v2607_v2  ;;  %v18071_v41 = vsub.f32 %v45_v33, %v18055_v37  ;;  %v18139_v63 = vand.u32 4294901760, %v47_v59 }
  0x43   :  { %16287 = vmatpush3.msra.mxu1 %v1716_v39  ;;  %16284 = vmatmul.mubr.f32.vlgmr.msra.gmra.mxu0 %v1677_v43 }
  0x44   :  { %16288 = vmatprep.subr.mxu1 %v1723_v46  ;;  %16293 = vmatprep.subr.mxu0 %v17806_v24  ;;  %v17978_v13 = vsub.f32 %v2607_v2, %v17965_v9  ;;  %v18087_v45 = vand.u32 4294901760, %v18071_v41 }
  0x45   :  { %16289 = vmatpush3.msra.mxu1 %v1723_v46  ;;  %16290 = vmatprep.mubr.f32.mxu1 %v17797_v21 }
  0x46   :  { %16294 = vmatpush3.msra.mxu0 %v17806_v24  ;;  %16291 = vmatmul.mubr.f32.vlgmr.msra.gmra.mxu1 %v17800_v22  ;;  %v2681_v17 = vand.u32 4294901760, %v17978_v13  ;;  %v62_v24 = vld [vmem:[%s20233_s5 + $0x68] sm:$0x3f] }
  0x47   :  { %16295 = vmatprep.subr.mxu0 %v17819_v27  ;;  %16300 = vmatprep.subr.mxu1 %v17790_v18 }
  0x48   :  { %16296 = vmatpush3.msra.mxu0 %v17819_v27  ;;  %16297 = vmatprep.mubr.f32.mxu0 %v17810_v25  ;;  %v2738_v25 = vsub.f32 %v17987_v15, %v18003_v19  ;;  %v2732_v27 = vand.u32 4294901760, %v2731_v20 }
  0x49   :  { %16301 = vmatpush3.msra.mxu1 %v17790_v18  ;;  %16298 = vmatmul.mubr.f32.vlgmr.msra.gmra.mxu0 %v17814_v26  ;;  %v46_v26 = vld [vmem:[%s20228_s0 + $0x68] sm:$0xff] }
  0x4a   :  { %16302 = vmatprep.subr.mxu1 %v17803_v23  ;;  %16307 = vmatprep.subr.mxu0 %v17824_v28  ;;  %v18042_v32 = vand.u32 4294901760, %v46_v26  ;;  %v2739_v34 = vand.u32 4294901760, %v2738_v25 }
  0x4b   :  { %16303 = vmatpush3.msra.mxu1 %v17803_v23  ;;  %16304 = vmatprep.mubr.f32.mxu1 %v1665_v29 }
  0x4c   :  { %16308 = vmatpush3.msra.mxu0 %v17824_v28  ;;  %16305 = vmatmul.mubr.f32.vlgmr.msra.gmra.mxu1 %v1675_v30  ;;  %v3118_v30 = vsel %vm65_vm0, %v62_v24, 0  ;;  %v18058_v38 = vsub.f32 %v46_v26, %v18042_v32 }
  0x4d   :  { %16309 = vmatprep.subr.mxu0 %v17835_v31  ;;  %16314 = vmatprep.subr.mxu1 %v17790_v18  ;;  %v18052_v36 = vand.u32 4294901760, %v3118_v30 }
  0x4e   :  { %16310 = vmatpush3.msra.mxu0 %v17835_v31  ;;  %16311 = vmatprep.mubr.f32.mxu0 %v17797_v21  ;;  %v18076_v42 = vand.u32 4294901760, %v18058_v38 }
  0x4f   :  { %16315 = vmatpush3.msra.mxu1 %v17790_v18  ;;  %16312 = vmatmul.mubr.f32.vlgmr.msra.gmra.mxu0 %v17800_v22  ;;  %v2691_v18 = vand.u32 4294901760, %v17982_v14  ;;  %v18066_v40 = vsub.f32 %v3118_v30, %v18052_v36 }
  0x50   :  { %16316 = vmatprep.subr.mxu1 %v17803_v23  ;;  %16321 = vmatprep.subr.mxu0 %v17874_v44  ;;  %v3239_v46 = vsub.f32 %v18058_v38, %v18076_v42 }
  0x51   :  { %16317 = vmatpush3.msra.mxu1 %v17803_v23  ;;  %16318 = vmatprep.mubr.f32.mxu1 %v17797_v21  ;;  %v2682_v21 = vsub.f32 %v17978_v13, %v2681_v17  ;;  %v2692_v23 = vsub.f32 %v17982_v14, %v2691_v18 }
  0x52   :  { %16322 = vmatpush3.msra.mxu0 %v17874_v44  ;;  %16319 = vmatmul.mubr.f32.vlgmr.msra.gmra.mxu1 %v17800_v22  ;;  %v61_v22 = vld [vmem:[%s20233_s5 + $0x60] sm:$0xff] }
  0x53   :  { %16323 = vmatprep.subr.mxu0 %v17887_v49  ;;  %16328 = vmatprep.subr.mxu1 %v2224_v1  ;;  %v3115_v28 = vsel %vm65_vm0, %v61_v22, 0  ;;  %v2683_v29 = vand.u32 4294901760, %v2682_v21  ;;  %v2693_v31 = vand.u32 4294901760, %v2692_v23 }
  0x54   :  { %16324 = vmatpush3.msra.mxu0 %v17887_v49  ;;  %16325 = vmatprep.mubr.f32.mxu0 %v2175_v3  ;;  %v18049_v35 = vand.u32 4294901760, %v3115_v28  ;;  %v3752_v3 = vsub.f32 %v47_v59, %v18139_v63 }
  0x55   :  { %16329 = vmatpush3.msra.mxu1 %v2224_v1  ;;  %16326 = vmatmul.mubr.f32.vlgmr.msra.gmra.mxu0 %v2185_v5 }
  0x56   :  { %16330 = vmatprep.subr.mxu1 %v2231_v8  ;;  %16335 = vmatprep.subr.mxu0 %v17890_v50  ;;  %v18062_v39 = vsub.f32 %v3115_v28, %v18049_v35  ;;  %v3753_v7 = vand.u32 4294901760, %v3752_v3  ;;  %v17546_v28 = vmov 0.0  }
  0x57   :  { %16331 = vmatpush3.msra.mxu1 %v2231_v8  ;;  %16332 = vmatprep.mubr.f32.mxu1 %v17881_v47 }
  0x58   :  { %16336 = vmatpush3.msra.mxu0 %v17890_v50  ;;  %16333 = vmatmul.mubr.f32.vlgmr.msra.gmra.mxu1 %v17884_v48  ;;  %v3189_v43 = vand.u32 4294901760, %v18062_v39  ;;  %v64_v50 = vld [vmem:[%s20233_s5 + $0x78] sm:$0x3f] }
  0x59   :  { %16337 = vmatprep.subr.mxu0 %v17903_v53  ;;  %16342 = vmatprep.subr.mxu1 %v17874_v44 }
  0x5a   :  { %16338 = vmatpush3.msra.mxu0 %v17903_v53  ;;  %16339 = vmatprep.mubr.f32.mxu0 %v17894_v51  ;;  %v3246_v51 = vsub.f32 %v18071_v41, %v18087_v45  ;;  %v3240_v53 = vand.u32 4294901760, %v3239_v46 }
  0x5b   :  { %16343 = vmatpush3.msra.mxu1 %v17874_v44  ;;  %16340 = vmatmul.mubr.f32.vlgmr.msra.gmra.mxu0 %v17898_v52  ;;  %v48_v52 = vld [vmem:[%s20228_s0 + $0x78] sm:$0xff] }
  0x5c   :  { %16344 = vmatprep.subr.mxu1 %v17887_v49  ;;  %16349 = vmatprep.subr.mxu0 %v17908_v54  ;;  %v18126_v58 = vand.u32 4294901760, %v48_v52  ;;  %v3247_v60 = vand.u32 4294901760, %v3246_v51 }
  0x5d   :  { %16345 = vmatpush3.msra.mxu1 %v17887_v49  ;;  %16346 = vmatprep.mubr.f32.mxu1 %v2173_v55 }
  0x5e   :  { %16350 = vmatpush3.msra.mxu0 %v17908_v54  ;;  %16347 = vmatmul.mubr.f32.vlgmr.msra.gmra.mxu1 %v2183_v56  ;;  %v3626_v56 = vsel %vm65_vm0, %v64_v50, 0  ;;  %v3745_v0 = vsub.f32 %v48_v52, %v18126_v58 }
  0x5f   :  { %16351 = vmatprep.subr.mxu0 %v17919_v57  ;;  %16356 = vmatprep.subr.mxu1 %v17874_v44  ;;  %v18136_v62 = vand.u32 4294901760, %v3626_v56 }
  0x60   :  { %16352 = vmatpush3.msra.mxu0 %v17919_v57  ;;  %16353 = vmatprep.mubr.f32.mxu0 %v17881_v47  ;;  %v18155_v4 = vand.u32 4294901760, %v3745_v0 }
  0x61   :  { %16357 = vmatpush3.msra.mxu1 %v17874_v44  ;;  %16354 = vmatmul.mubr.f32.vlgmr.msra.gmra.mxu0 %v17884_v48  ;;  %v3199_v44 = vand.u32 4294901760, %v18066_v40  ;;  %v18148_v2 = vsub.f32 %v3626_v56, %v18136_v62 }
  0x62   :  { %16358 = vmatprep.subr.mxu1 %v17887_v49  ;;  %16363 = vmatprep.subr.mxu0 %v17958_v6  ;;  %v3747_v8 = vsub.f32 %v3745_v0, %v18155_v4 }
  0x63   :  { %16359 = vmatpush3.msra.mxu1 %v17887_v49  ;;  %16360 = vmatprep.mubr.f32.mxu1 %v17881_v47  ;;  %v3190_v47 = vsub.f32 %v18062_v39, %v3189_v43  ;;  %v3200_v49 = vsub.f32 %v18066_v40, %v3199_v44 }
  0x64   :  { %16364 = vmatpush3.msra.mxu0 %v17958_v6  ;;  %16361 = vmatmul.mubr.f32.vlgmr.msra.gmra.mxu1 %v17884_v48  ;;  %v63_v48 = vld [vmem:[%s20233_s5 + $0x70] sm:$0xff] }
  0x65   :  { %16365 = vmatprep.subr.mxu0 %v17971_v11  ;;  %16370 = vmatprep.subr.mxu1 %v2732_v27  ;;  %v3623_v54 = vsel %vm65_vm0, %v63_v48, 0  ;;  %v3191_v55 = vand.u32 4294901760, %v3190_v47  ;;  %v3201_v57 = vand.u32 4294901760, %v3200_v49 }
  0x66   :  { %16366 = vmatpush3.msra.mxu0 %v17971_v11  ;;  %16367 = vmatprep.mubr.f32.mxu0 %v2683_v29  ;;  %v18133_v61 = vand.u32 4294901760, %v3623_v54 }
  0x67   :  { %16371 = vmatpush3.msra.mxu1 %v2732_v27  ;;  %16368 = vmatmul.mubr.f32.vlgmr.msra.gmra.mxu0 %v2693_v31 }
  0x68   :  { %16372 = vmatprep.subr.mxu1 %v2739_v34  ;;  %16377 = vmatprep.subr.mxu0 %v17974_v12  ;;  %v18144_v1 = vsub.f32 %v3623_v54, %v18133_v61 }
  0x69   :  { %16373 = vmatpush3.msra.mxu1 %v2739_v34  ;;  %16374 = vmatprep.mubr.f32.mxu1 %v17965_v9 }
  0x6a   :  { %16378 = vmatpush3.msra.mxu0 %v17974_v12  ;;  %16375 = vmatmul.mubr.f32.vlgmr.msra.gmra.mxu1 %v17968_v10  ;;  %v3697_v5 = vand.u32 4294901760, %v18144_v1  ;;  %v4230_v12 = vld [vmem:[%s20234_s6 + $0x8] sm:$0xff] }
  0x6b   :  { %16379 = vmatprep.subr.mxu0 %v17987_v15  ;;  %16384 = vmatprep.subr.mxu1 %v17958_v6 }
  0x6c   :  { %16380 = vmatpush3.msra.mxu0 %v17987_v15  ;;  %16381 = vmatprep.mubr.f32.mxu0 %v17978_v13  ;;  %v3748_v13 = vand.u32 4294901760, %v3747_v8  ;;  %v4229_v15 = vld [vmem:[%s20234_s6] sm:$0xff] }
  0x6d   :  { %16385 = vmatpush3.msra.mxu1 %v17958_v6  ;;  %16382 = vmatmul.mubr.f32.vlgmr.msra.gmra.mxu0 %v17982_v14 }
  0x6e   :  { %16386 = vmatprep.subr.mxu1 %v17971_v11  ;;  %16391 = vmatprep.subr.mxu0 %v17992_v16 }
  0x6f   :  { %16387 = vmatpush3.msra.mxu1 %v17971_v11  ;;  %16388 = vmatprep.mubr.f32.mxu1 %v2681_v17  ;;  %v18190_v17 = vand.u32 4294901760, %v4230_v12 }
  0x70   :  { %16392 = vmatpush3.msra.mxu0 %v17992_v16  ;;  %16389 = vmatmul.mubr.f32.vlgmr.msra.gmra.mxu1 %v2691_v18 }
  0x71   :  { %16393 = vmatprep.subr.mxu0 %v18003_v19  ;;  %16398 = vmatprep.subr.mxu1 %v17958_v6  ;;  %v18199_v20 = vsub.f32 %v4230_v12, %v18190_v17 }
  0x72   :  { %16394 = vmatpush3.msra.mxu0 %v18003_v19  ;;  %16395 = vmatprep.mubr.f32.mxu0 %v17965_v9  ;;  %v18195_v19 = vand.u32 4294901760, %v4229_v15 }
  0x73   :  { %16399 = vmatpush3.msra.mxu1 %v17958_v6  ;;  %16396 = vmatmul.mubr.f32.vlgmr.msra.gmra.mxu0 %v17968_v10  ;;  %v3707_v6 = vand.u32 4294901760, %v18148_v2  ;;  %v4356_v22 = vand.u32 4294901760, %v18199_v20 }
  0x74   :  { %16400 = vmatprep.subr.mxu1 %v17971_v11  ;;  %16405 = vmatprep.subr.mxu0 %v18042_v32  ;;  %v18203_v21 = vsub.f32 %v4229_v15, %v18195_v19 }
  0x75   :  { %16401 = vmatpush3.msra.mxu1 %v17971_v11  ;;  %16402 = vmatprep.mubr.f32.mxu1 %v17965_v9  ;;  %v3698_v9 = vsub.f32 %v18144_v1, %v3697_v5  ;;  %v3754_v11 = vsub.f32 %v3752_v3, %v3753_v7  ;;  %v4357_v24 = vsub.f32 %v18199_v20, %v4356_v22 }
  0x76   :  { %16406 = vmatpush3.msra.mxu0 %v18042_v32  ;;  %16403 = vmatmul.mubr.f32.vlgmr.msra.gmra.mxu1 %v17968_v10  ;;  %v3708_v10 = vsub.f32 %v18148_v2, %v3707_v6  ;;  %v4363_v23 = vand.u32 4294901760, %v18203_v21 }
  0x77   :  { %16407 = vmatprep.subr.mxu0 %v18055_v37  ;;  %16412 = vmatprep.subr.mxu1 %v3240_v53  ;;  %v3699_v14 = vand.u32 4294901760, %v3698_v9  ;;  %v3755_v18 = vand.u32 4294901760, %v3754_v11  ;;  %v4358_v26 = vand.u32 4294901760, %v4357_v24 }
  0x78   :  { %16408 = vmatpush3.msra.mxu0 %v18055_v37  ;;  %16409 = vmatprep.mubr.f32.mxu0 %v3191_v55  ;;  %v3709_v16 = vand.u32 4294901760, %v3708_v10  ;;  %v4364_v25 = vsub.f32 %v18203_v21, %v4363_v23 }
  0x79   :  { %16413 = vmatpush3.msra.mxu1 %v3240_v53  ;;  %16410 = vmatmul.mubr.f32.vlgmr.msra.gmra.mxu0 %v3201_v57 }
  0x7a   :  { %16414 = vmatprep.subr.mxu1 %v3247_v60  ;;  %16419 = vmatprep.subr.mxu0 %v18058_v38  ;;  %v4365_v27 = vand.u32 4294901760, %v4364_v25 }
  0x7b   :  { %16415 = vmatpush3.msra.mxu1 %v3247_v60  ;;  %16416 = vmatprep.mubr.f32.mxu1 %v18049_v35 }
  0x7c   :  { %16420 = vmatpush3.msra.mxu0 %v18058_v38  ;;  %16417 = vmatmul.mubr.f32.vlgmr.msra.gmra.mxu1 %v18052_v36 }
  0x7d   :  { %16421 = vmatprep.subr.mxu0 %v18071_v41  ;;  %16426 = vmatprep.subr.mxu1 %v18042_v32 }
  0x7e   :  { %16422 = vmatpush3.msra.mxu0 %v18071_v41  ;;  %16423 = vmatprep.mubr.f32.mxu0 %v18062_v39  ;;  %v4232_v41 = vld [vmem:[%s20234_s6 + $0x18] sm:$0xff] }
  0x7f   :  { %16427 = vmatpush3.msra.mxu1 %v18042_v32  ;;  %16424 = vmatmul.mubr.f32.vlgmr.msra.gmra.mxu0 %v18066_v40  ;;  %v18248_v47 = vand.u32 4294901760, %v4232_v41 }
  0x80   :  { %16428 = vmatprep.subr.mxu1 %v18055_v37  ;;  %16433 = vmatprep.subr.mxu0 %v18076_v42 }
  0x81   :  { %16429 = vmatpush3.msra.mxu1 %v18055_v37  ;;  %16430 = vmatprep.mubr.f32.mxu1 %v3189_v43  ;;  %v18255_v54 = vsub.f32 %v4232_v41, %v18248_v47 }
  0x82   :  { %16434 = vmatpush3.msra.mxu0 %v18076_v42  ;;  %16431 = vmatmul.mubr.f32.vlgmr.msra.gmra.mxu1 %v3199_v44 }
  0x83   :  { %16435 = vmatprep.subr.mxu0 %v18087_v45  ;;  %16440 = vmatprep.subr.mxu1 %v18042_v32 }
  0x84   :  { %16436 = vmatpush3.msra.mxu0 %v18087_v45  ;;  %16437 = vmatprep.mubr.f32.mxu0 %v18049_v35  ;;  %v4231_v45 = vld [vmem:[%s20234_s6 + $0x10] sm:$0xff] }
  0x85   :  { %16441 = vmatpush3.msra.mxu1 %v18042_v32  ;;  %16438 = vmatmul.mubr.f32.vlgmr.msra.gmra.mxu0 %v18052_v36  ;;  %v18250_v51 = vand.u32 4294901760, %v4231_v45 }
  0x86   :  { %16442 = vmatprep.subr.mxu1 %v18055_v37  ;;  %16447 = vmatprep.subr.mxu0 %v18126_v58 }
  0x87   :  { %16443 = vmatpush3.msra.mxu1 %v18055_v37  ;;  %16444 = vmatprep.mubr.f32.mxu1 %v18049_v35  ;;  %v18258_v57 = vsub.f32 %v4231_v45, %v18250_v51 }
  0x88   :  { %16448 = vmatpush3.msra.mxu0 %v18126_v58  ;;  %16445 = vmatmul.mubr.f32.vlgmr.msra.gmra.mxu1 %v18052_v36 }
  0x89   :  { %16449 = vmatprep.subr.mxu0 %v18139_v63  ;;  %16454 = vmatprep.subr.mxu1 %v3748_v13 }
  0x8a   :  { %16450 = vmatpush3.msra.mxu0 %v18139_v63  ;;  %16451 = vmatprep.mubr.f32.mxu0 %v3699_v14 }
  0x8b   :  { %16455 = vmatpush3.msra.mxu1 %v3748_v13  ;;  %16452 = vmatmul.mubr.f32.vlgmr.msra.gmra.mxu0 %v3709_v16 }
  0x8c   :  { %16456 = vmatprep.subr.mxu1 %v3755_v18  ;;  %16461 = vmatprep.subr.mxu0 %v3745_v0 }
  0x8d   :  { %16457 = vmatpush3.msra.mxu1 %v3755_v18  ;;  %16458 = vmatprep.mubr.f32.mxu1 %v18133_v61  ;;  %v4234_v18 = vld [vmem:[%s20234_s6 + $0x28] sm:$0xff] }
  0x8e   :  { %16462 = vmatpush3.msra.mxu0 %v3745_v0  ;;  %16459 = vmatmul.mubr.f32.vlgmr.msra.gmra.mxu1 %v18136_v62 }
  0x8f   :  { %16463 = vmatprep.subr.mxu0 %v3752_v3  ;;  %16468 = vmatprep.subr.mxu1 %v18126_v58 }
  0x90   :  { %16464 = vmatpush3.msra.mxu0 %v3752_v3  ;;  %16465 = vmatprep.mubr.f32.mxu0 %v18144_v1 }
  0x91   :  { %16469 = vmatpush3.msra.mxu1 %v18126_v58  ;;  %16466 = vmatmul.mubr.f32.vlgmr.msra.gmra.mxu0 %v18148_v2  ;;  %v4825_v2 = vand.u32 4294901760, %v18258_v57 }
  0x92   :  { %16470 = vmatprep.subr.mxu1 %v18139_v63  ;;  %16475 = vmatprep.subr.mxu0 %v18155_v4 }
  0x93   :  { %16471 = vmatpush3.msra.mxu1 %v18139_v63  ;;  %16472 = vmatprep.mubr.f32.mxu1 %v3697_v5  ;;  %v4826_v12 = vsub.f32 %v18258_v57, %v4825_v2 }
  0x94   :  { %16476 = vmatpush3.msra.mxu0 %v18155_v4  ;;  %16473 = vmatmul.mubr.f32.vlgmr.msra.gmra.mxu1 %v3707_v6 }
  0x95   :  { %16477 = vmatprep.subr.mxu0 %v3753_v7  ;;  %16482 = vmatprep.subr.mxu1 %v18126_v58 }
  0x96   :  { %16478 = vmatpush3.msra.mxu0 %v3753_v7  ;;  %16479 = vmatprep.mubr.f32.mxu0 %v18133_v61 }
  0x97   :  { %16483 = vmatpush3.msra.mxu1 %v18126_v58  ;;  %16480 = vmatmul.mubr.f32.vlgmr.msra.gmra.mxu0 %v18136_v62 }
  0x98   :  { %16484 = vmatprep.subr.mxu1 %v18139_v63  ;;  %16486 = vmatprep.mubr.f32.mxu1 %v18133_v61 }
  0x99   :  { %16485 = vmatpush3.msra.mxu1 %v18139_v63  ;;  %16489 = vmatprep.subr.mxu0 %v17546_v28 }
  0x9a   :  { %16487 = vmatmul.mubr.f32.vlgmr.msra.gmra.mxu1 %v18136_v62  ;;  %16496 = vmatprep.subr.mxu1 %v17546_v28  ;;  %v4818_v62 = vand.u32 4294901760, %v18255_v54 }
  0x9b   :  { %16497 = vmatpush3.msra.mxu1 %v4358_v26  ;;  %16500 = vmatprep.mubr.msk.f32.mxu1 %vm17547_vm1, %v17546_v28 }
  0x9c   :  { %16498 = vmatprep.subr.mxu1 %v17546_v28  ;;  %16490 = vmatpush3.msra.mxu0 %v18190_v17  ;;  %v4819_v7 = vsub.f32 %v18255_v54, %v4818_v62 }
  0x9d   :  { %16499 = vmatpush3.msra.mxu1 %v4365_v27  ;;  %16491 = vmatprep.subr.mxu0 %v17546_v28  ;;  %v4233_v27 = vld [vmem:[%s20234_s6 + $0x20] sm:$0xff] }
  0x9e   :  { %16510 = vmatprep.subr.mxu1 %v17546_v28  ;;  %16492 = vmatpush3.msra.mxu0 %v18195_v19  ;;  %v4820_v16 = vand.u32 4294901760, %v4819_v7  ;;  %v4235_v7 = vld [vmem:[%s20234_s6 + $0x30] sm:$0xff] }
  0x9f   :  { %16493 = vmatprep.mubr.msk.f32.mxu0 %vm17547_vm1, %v17546_v28  ;;  %16503 = vmatprep.subr.mxu0 %v17546_v28 }
  0xcf   :  { %v16159_v29 = vpop.f32.mrf.mxu0 }
  0xd0   :  { %v16166_v30 = vpop.f32.mrf.mxu1 }
  0xd1   :  { %v145_v31 = vpop.f32.mrf.mxu0  ;;  %v243_v32 = vadd.f32 %v16166_v30, %v16159_v29  ;;  %v18293_v30 = vand.u32 4294901760, %v4234_v18 }
  0xd2   :  { %v236_v33 = vpop.f32.mrf.mxu1 }
  0xd3   :  { %v237_v34 = vadd.f32 %v236_v33, %v145_v31  ;;  %v16173_v35 = vpop.f32.mrf.mxu0  ;;  %v18300_v33 = vand.u32 4294901760, %v4233_v27 }
  0xd4   :  { %v326_v36 = vadd.f32 %v16173_v35, %v243_v32 }
  0xd5   :  { %v318_v37 = vpop.f32.mrf.mxu0 }
  0xd6   :  { %v319_v38 = vadd.f32 %v318_v37, %v237_v34  ;;  %v16180_v39 = vpop.f32.mrf.mxu1  ;;  %v18307_v37 = vsub.f32 %v4234_v18, %v18293_v30 }
  0xd7   :  { %v409_v40 = vadd.f32 %v16180_v39, %v326_v36 }
  0xd8   :  { %v400_v42 = vpop.f32.mrf.mxu1 }
  0xd9   :  { %v401_v43 = vadd.f32 %v400_v42, %v319_v38  ;;  %v16187_v44 = vpop.f32.mrf.mxu0 }
  0xda   :  { %v492_v46 = vadd.f32 %v16187_v44, %v409_v40  ;;  %v18317_v40 = vsub.f32 %v4233_v27, %v18300_v33  ;;  %v5280_v44 = vand.u32 4294901760, %v18307_v37 }
  0xdb   :  { %v485_v48 = vpop.f32.mrf.mxu0 }
  0xdc   :  { %v486_v49 = vadd.f32 %v485_v48, %v401_v43  ;;  %v16194_v50 = vpop.f32.mrf.mxu1  ;;  %v5287_v48 = vand.u32 4294901760, %v18317_v40 }
  0xdd   :  { %v18252_v52 = vadd.f32 %v16194_v50, %v492_v46  ;;  %v5281_v50 = vsub.f32 %v18307_v37, %v5280_v44 }
  0xde   :  { %v564_v53 = vpop.f32.mrf.mxu1 }
  0xdf   :  { %v565_v55 = vadd.f32 %v564_v53, %v486_v49  ;;  %v16201_v56 = vpop.f32.mrf.mxu0 }
  0xe1   :  { %v4246_v58 = vsel %vm65_vm0, %v565_v55, 0  ;;  %v653_v59 = vpop.f32.mrf.mxu0 }
  0xe2   :  { %v18261_v60 = vand.u32 4294901760, %v4246_v58  ;;  %v16208_v61 = vpop.f32.mrf.mxu1 }
  0xe3   :  { %v751_v63 = vadd.f32 %v16208_v61, %v16201_v56 }
  0xe4   :  { %v4316_v0 = vsub.f32 %v4246_v58, %v18261_v60  ;;  %v744_v1 = vpop.f32.mrf.mxu1  ;;  %16501 = vmatmul.mubr.f32.vlgmr.msra.gmra.mxu1 %v18261_v60 }
  0xe5   :  { %v745_v3 = vadd.f32 %v744_v1, %v653_v59  ;;  %v16215_v4 = vpop.f32.mrf.mxu0  ;;  %16511 = vmatpush3.msra.mxu1 %v18190_v17  ;;  %16514 = vmatprep.mubr.msk.f32.mxu1 %vm17547_vm1, %v17546_v28  ;;  %v5288_v59 = vsub.f32 %v18317_v40, %v5287_v48 }
  0xe6   :  { %v834_v5 = vadd.f32 %v16215_v4, %v751_v63  ;;  %16512 = vmatprep.subr.mxu1 %v17546_v28  ;;  %v4317_v6 = vand.u32 4294901760, %v4316_v0  ;;  %v4236_v63 = vld [vmem:[%s20234_s6 + $0x38] sm:$0xff] }
  0xe7   :  { %v826_v8 = vpop.f32.mrf.mxu0  ;;  %16513 = vmatpush3.msra.mxu1 %v18195_v19 }
  0xe8   :  { %v827_v9 = vadd.f32 %v826_v8, %v745_v3  ;;  %v16222_v10 = vpop.f32.mrf.mxu1  ;;  %16515 = vmatmul.mubr.f32.vlgmr.msra.gmra.mxu1 %v4317_v6  ;;  %16524 = vmatprep.subr.mxu1 %v17546_v28  ;;  %v4318_v11 = vsub.f32 %v4316_v0, %v4317_v6  ;;  %v18357_v6 = vand.u32 4294901760, %v4236_v63 }
  0xe9   :  { %v917_v13 = vadd.f32 %v16222_v10, %v834_v5  ;;  %16525 = vmatpush3.msra.mxu1 %v18190_v17  ;;  %16528 = vmatprep.mubr.msk.f32.mxu1 %vm17547_vm1, %v17546_v28  ;;  %v4827_v17 = vand.u32 4294901760, %v4826_v12  ;;  %v5289_v5 = vand.u32 4294901760, %v5288_v59 }
  0xea   :  { %v908_v14 = vpop.f32.mrf.mxu1  ;;  %16526 = vmatprep.subr.mxu1 %v17546_v28  ;;  %v4319_v15 = vand.u32 4294901760, %v4318_v11  ;;  %v18369_v11 = vand.u32 4294901760, %v4235_v7 }
  0xeb   :  { %v909_v24 = vadd.f32 %v908_v14, %v827_v9  ;;  %v16229_v25 = vpop.f32.mrf.mxu0  ;;  %16527 = vmatpush3.msra.mxu1 %v18195_v19  ;;  %v18374_v14 = vsub.f32 %v4236_v63, %v18357_v6 }
  0xec   :  { %v1000_v26 = vadd.f32 %v16229_v25, %v917_v13  ;;  %16494 = vmatmul.mubr.f32.vlgmr.msra.gmra.mxu0 %v4319_v15  ;;  %16529 = vmatmul.mubr.f32.vlgmr.msra.gmra.mxu1 %v18261_v60  ;;  %v18388_v25 = vsub.f32 %v4235_v7, %v18369_v11 }
  0xed   :  { %v993_v29 = vpop.f32.mrf.mxu0  ;;  %16538 = vmatprep.subr.mxu1 %v17546_v28  ;;  %16504 = vmatpush3.msra.mxu0 %v18199_v20 }
  0xee   :  { %v994_v31 = vadd.f32 %v993_v29, %v909_v24  ;;  %v16236_v32 = vpop.f32.mrf.mxu1  ;;  %16539 = vmatpush3.msra.mxu1 %v4820_v16  ;;  %16505 = vmatprep.subr.mxu0 %v17546_v28 }
  0xef   :  { %v18296_v19 = vadd.f32 %v16236_v32, %v1000_v26  ;;  %16540 = vmatprep.subr.mxu1 %v17546_v28  ;;  %16506 = vmatpush3.msra.mxu0 %v18203_v21 }
  0xf0   :  { %v1072_v34 = vpop.f32.mrf.mxu1  ;;  %16507 = vmatprep.mubr.msk.f32.mxu0 %vm17547_vm1, %v17546_v28  ;;  %16541 = vmatpush3.msra.mxu1 %v4827_v17  ;;  %v5742_v17 = vand.u32 4294901760, %v18374_v14 }
  0xf1   :  { %v1073_v35 = vadd.f32 %v1072_v34, %v994_v31  ;;  %v16243_v36 = vpop.f32.mrf.mxu0  ;;  %16542 = vmatprep.mubr.msk.f32.mxu1 %vm17547_vm1, %v17546_v28  ;;  %16508 = vmatmul.mubr.f32.vlgmr.msra.gmra.mxu0 %v4316_v0  ;;  %v5749_v34 = vand.u32 4294901760, %v18388_v25 }
  0xf2   :  { %16517 = vmatprep.subr.mxu0 %v17546_v28  ;;  %16552 = vmatprep.subr.mxu1 %v17546_v28 }
  0xf3   :  { %v4708_v38 = vsel %vm65_vm0, %v1073_v35, 0  ;;  %v1161_v39 = vpop.f32.mrf.mxu0  ;;  %16518 = vmatpush3.msra.mxu0 %v4356_v22  ;;  %16521 = vmatprep.mubr.msk.f32.mxu0 %vm17547_vm1, %v17546_v28 }
  0xf4   :  { %v18319_v41 = vand.u32 4294901760, %v4708_v38  ;;  %v16250_v42 = vpop.f32.mrf.mxu1  ;;  %16519 = vmatprep.subr.mxu0 %v17546_v28 }
  0xf5   :  { %v1259_v43 = vadd.f32 %v16250_v42, %v16243_v36  ;;  %16520 = vmatpush3.msra.mxu0 %v4363_v23 }
  0xf6   :  { %v4778_v20 = vsub.f32 %v4708_v38, %v18319_v41  ;;  %v1252_v22 = vpop.f32.mrf.mxu1  ;;  %16543 = vmatmul.mubr.f32.vlgmr.msra.gmra.mxu1 %v18319_v41  ;;  %16522 = vmatmul.mubr.f32.vlgmr.msra.gmra.mxu0 %v18261_v60 }
  0xf7   :  { %v1253_v45 = vadd.f32 %v1252_v22, %v1161_v39  ;;  %v16257_v46 = vpop.f32.mrf.mxu0  ;;  %16553 = vmatpush3.msra.mxu1 %v18248_v47  ;;  %16556 = vmatprep.mubr.msk.f32.mxu1 %vm17547_vm1, %v17546_v28 }
  0xf8   :  { %v1342_v21 = vadd.f32 %v16257_v46, %v1259_v43  ;;  %16554 = vmatprep.subr.mxu1 %v17546_v28  ;;  %16531 = vmatprep.subr.mxu0 %v17546_v28  ;;  %v4779_v23 = vand.u32 4294901760, %v4778_v20  ;;  %v5750_v43 = vsub.f32 %v18388_v25, %v5749_v34 }
  0xf9   :  { %v1334_v49 = vpop.f32.mrf.mxu0  ;;  %16555 = vmatpush3.msra.mxu1 %v18250_v51  ;;  %16532 = vmatpush3.msra.mxu0 %v18248_v47 }
  0xfa   :  { %v1335_v53 = vadd.f32 %v1334_v49, %v1253_v45  ;;  %v16264_v55 = vpop.f32.mrf.mxu1  ;;  %16557 = vmatmul.mubr.f32.vlgmr.msra.gmra.mxu1 %v4779_v23  ;;  %16566 = vmatprep.subr.mxu1 %v17546_v28  ;;  %v4780_v56 = vsub.f32 %v4778_v20, %v4779_v23  ;;  %v4237_v49 = vld [vmem:[%s20234_s6 + $0x40] sm:$0xff] }
  0xfb   :  { %v1425_v58 = vadd.f32 %v16264_v55, %v1342_v21  ;;  %16567 = vmatpush3.msra.mxu1 %v18248_v47  ;;  %16533 = vmatprep.subr.mxu0 %v17546_v28  ;;  %v5282_v47 = vand.u32 4294901760, %v5281_v50 }
  0xfc   :  { %v1416_v60 = vpop.f32.mrf.mxu1  ;;  %16568 = vmatprep.subr.mxu1 %v17546_v28  ;;  %16534 = vmatpush3.msra.mxu0 %v18250_v51  ;;  %v4781_v61 = vand.u32 4294901760, %v4780_v56 }
  0xfd   :  { %v1417_v0 = vadd.f32 %v1416_v60, %v1335_v53  ;;  %v16271_v1 = vpop.f32.mrf.mxu0  ;;  %16535 = vmatprep.mubr.msk.f32.mxu0 %vm17547_vm1, %v17546_v28  ;;  %16569 = vmatpush3.msra.mxu1 %v18250_v51 }
  0xfe   :  { %v1508_v3 = vadd.f32 %v16271_v1, %v1425_v58  ;;  %16570 = vmatprep.mubr.msk.f32.mxu1 %vm17547_vm1, %v17546_v28  ;;  %16536 = vmatmul.mubr.f32.vlgmr.msra.gmra.mxu0 %v4781_v61  ;;  %v18441_v58 = vand.u32 4294901760, %v4237_v49 }
  0xff   :  { %v1501_v4 = vpop.f32.mrf.mxu0  ;;  %16545 = vmatprep.subr.mxu0 %v17546_v28  ;;  %16571 = vmatmul.mubr.f32.vlgmr.msra.gmra.mxu1 %v18319_v41 }
 0x100   :  { %v1502_v8 = vadd.f32 %v1501_v4, %v1417_v0  ;;  %v16278_v51 = vpop.f32.mrf.mxu1  ;;  %16580 = vmatprep.subr.mxu1 %v17546_v28  ;;  %16546 = vmatpush3.msra.mxu0 %v18255_v54 }
 0x101   :  { %v18364_v9 = vadd.f32 %v16278_v51, %v1508_v3  ;;  %16581 = vmatpush3.msra.mxu1 %v5282_v47  ;;  %16547 = vmatprep.subr.mxu0 %v17546_v28  ;;  %v18460_v3 = vsub.f32 %v4237_v49, %v18441_v58 }
 0x102   :  { %v1580_v10 = vpop.f32.mrf.mxu1  ;;  %16582 = vmatprep.subr.mxu1 %v17546_v28  ;;  %16548 = vmatpush3.msra.mxu0 %v18258_v57  ;;  %v5743_v57 = vsub.f32 %v18374_v14, %v5742_v17 }
 0x103   :  { %v1581_v12 = vadd.f32 %v1580_v10, %v1502_v8  ;;  %v16285_v13 = vpop.f32.mrf.mxu0  ;;  %16549 = vmatprep.mubr.msk.f32.mxu0 %vm17547_vm1, %v17546_v28  ;;  %16583 = vmatpush3.msra.mxu1 %v5289_v5 }
 0x104   :  { %16584 = vmatprep.mubr.msk.f32.mxu1 %vm17547_vm1, %v17546_v28  ;;  %16550 = vmatmul.mubr.f32.vlgmr.msra.gmra.mxu0 %v4778_v20  ;;  %v4238_v20 = vld [vmem:[%s20234_s6 + $0x48] sm:$0xff] }
 0x105   :  { %v5170_v15 = vsel %vm65_vm0, %v1581_v12, 0  ;;  %v1669_v16 = vpop.f32.mrf.mxu0  ;;  %16559 = vmatprep.subr.mxu0 %v17546_v28  ;;  %16594 = vmatprep.subr.mxu1 %v17546_v28  ;;  %v18429_v23 = vand.u32 4294901760, %v4238_v20  ;;  %v6211_v12 = vand.u32 4294901760, %v18460_v3 }
 0x106   :  { %v18381_v18 = vand.u32 4294901760, %v5170_v15  ;;  %v16292_v24 = vpop.f32.mrf.mxu1  ;;  %16560 = vmatpush3.msra.mxu0 %v4818_v62  ;;  %16563 = vmatprep.mubr.msk.f32.mxu0 %vm17547_vm1, %v17546_v28 }
 0x107   :  { %v1767_v26 = vadd.f32 %v16292_v24, %v16285_v13  ;;  %16561 = vmatprep.subr.mxu0 %v17546_v28  ;;  %v18447_v61 = vsub.f32 %v4238_v20, %v18429_v23 }
 0x108   :  { %v18393_v27 = vsub.f32 %v5170_v15, %v18381_v18  ;;  %v1760_v29 = vpop.f32.mrf.mxu1  ;;  %16585 = vmatmul.mubr.f32.vlgmr.msra.gmra.mxu1 %v18381_v18  ;;  %16562 = vmatpush3.msra.mxu0 %v4825_v2 }
 0x109   :  { %v1761_v54 = vadd.f32 %v1760_v29, %v1669_v16  ;;  %v16299_v62 = vpop.f32.mrf.mxu0  ;;  %16595 = vmatpush3.msra.mxu1 %v18293_v30  ;;  %16598 = vmatprep.mubr.msk.f32.mxu1 %vm17547_vm1, %v17546_v28  ;;  %v6204_v5 = vand.u32 4294901760, %v18447_v61  ;;  %v4240_v29 = vld [vmem:[%s20234_s6 + $0x58] sm:$0xff] }
 0x10a   :  { %v1850_v31 = vadd.f32 %v16299_v62, %v1767_v26  ;;  %16596 = vmatprep.subr.mxu1 %v17546_v28  ;;  %16564 = vmatmul.mubr.f32.vlgmr.msra.gmra.mxu0 %v18319_v41  ;;  %v5241_v32 = vand.u32 4294901760, %v18393_v27 }
 0x10b   :  { %v1842_v35 = vpop.f32.mrf.mxu0  ;;  %16597 = vmatpush3.msra.mxu1 %v18300_v33  ;;  %16573 = vmatprep.subr.mxu0 %v17546_v28 }
 0x10c   :  { %v1843_v2 = vadd.f32 %v1842_v35, %v1761_v54  ;;  %v16306_v36 = vpop.f32.mrf.mxu1  ;;  %16599 = vmatmul.mubr.f32.vlgmr.msra.gmra.mxu1 %v5241_v32  ;;  %16608 = vmatprep.subr.mxu1 %v17546_v28  ;;  %v5242_v38 = vsub.f32 %v18393_v27, %v5241_v32  ;;  %v18503_v35 = vand.u32 4294901760, %v4240_v29 }
 0x10d   :  { %v1933_v39 = vadd.f32 %v16306_v36, %v1850_v31  ;;  %16574 = vmatpush3.msra.mxu0 %v18293_v30  ;;  %16609 = vmatpush3.msra.mxu1 %v18293_v30  ;;  %v5744_v30 = vand.u32 4294901760, %v5743_v57  ;;  %v4239_v57 = vld [vmem:[%s20234_s6 + $0x50] sm:$0xff] }
 0x10e   :  { %v1924_v41 = vpop.f32.mrf.mxu1  ;;  %16575 = vmatprep.subr.mxu0 %v17546_v28  ;;  %16610 = vmatprep.subr.mxu1 %v17546_v28  ;;  %v5243_v42 = vand.u32 4294901760, %v5242_v38  ;;  %v18521_v20 = vsub.f32 %v4240_v29, %v18503_v35 }
 0x10f   :  { %v1925_v22 = vadd.f32 %v1924_v41, %v1843_v2  ;;  %v16313_v45 = vpop.f32.mrf.mxu0  ;;  %16576 = vmatpush3.msra.mxu0 %v18300_v33  ;;  %16577 = vmatprep.mubr.msk.f32.mxu0 %vm17547_vm1, %v17546_v28  ;;  %v18515_v41 = vand.u32 4294901760, %v4239_v57 }
 0x110   :  { %v2016_v46 = vadd.f32 %v16313_v45, %v1933_v39  ;;  %16611 = vmatpush3.msra.mxu1 %v18300_v33  ;;  %16612 = vmatprep.mubr.msk.f32.mxu1 %vm17547_vm1, %v17546_v28  ;;  %v5751_v33 = vand.u32 4294901760, %v5750_v43 }
 0x111   :  { %v2009_v21 = vpop.f32.mrf.mxu0  ;;  %16578 = vmatmul.mubr.f32.vlgmr.msra.gmra.mxu0 %v5243_v42  ;;  %16587 = vmatprep.subr.mxu0 %v17546_v28 }
 0x112   :  { %v2010_v50 = vadd.f32 %v2009_v21, %v1925_v22  ;;  %v16320_v53 = vpop.f32.mrf.mxu1  ;;  %16613 = vmatmul.mubr.f32.vlgmr.msra.gmra.mxu1 %v18381_v18  ;;  %16622 = vmatprep.subr.mxu1 %v17546_v28  ;;  %v18534_v21 = vsub.f32 %v4239_v57, %v18515_v41 }
 0x113   :  { %v18436_v55 = vadd.f32 %v16320_v53, %v2016_v46  ;;  %16588 = vmatpush3.msra.mxu0 %v18307_v37  ;;  %16623 = vmatpush3.msra.mxu1 %v5744_v30 }
 0x114   :  { %v2088_v56 = vpop.f32.mrf.mxu1  ;;  %16589 = vmatprep.subr.mxu0 %v17546_v28  ;;  %16624 = vmatprep.subr.mxu1 %v17546_v28 }
 0x115   :  { %v2089_v59 = vadd.f32 %v2088_v56, %v2010_v50  ;;  %v16327_v60 = vpop.f32.mrf.mxu0  ;;  %16590 = vmatpush3.msra.mxu0 %v18317_v40  ;;  %16591 = vmatprep.mubr.msk.f32.mxu0 %vm17547_vm1, %v17546_v28  ;;  %v6205_v40 = vsub.f32 %v18447_v61, %v6204_v5  ;;  %v6666_v50 = vand.u32 4294901760, %v18521_v20 }
 0x116   :  { %16625 = vmatpush3.msra.mxu1 %v5751_v33  ;;  %16626 = vmatprep.mubr.msk.f32.mxu1 %vm17547_vm1, %v17546_v28 }
 0x117   :  { %v5632_v63 = vsel %vm65_vm0, %v2089_v59, 0  ;;  %v2177_v0 = vpop.f32.mrf.mxu0  ;;  %16592 = vmatmul.mubr.f32.vlgmr.msra.gmra.mxu0 %v18393_v27  ;;  %16601 = vmatprep.subr.mxu0 %v17546_v28  ;;  %v6212_v27 = vsub.f32 %v18460_v3, %v6211_v12 }
 0x118   :  { %v18454_v1 = vand.u32 4294901760, %v5632_v63  ;;  %v16334_v47 = vpop.f32.mrf.mxu1  ;;  %16636 = vmatprep.subr.mxu1 %v17546_v28  ;;  %16602 = vmatpush3.msra.mxu0 %v5280_v44 }
 0x119   :  { %v2275_v4 = vadd.f32 %v16334_v47, %v16327_v60  ;;  %16603 = vmatprep.subr.mxu0 %v17546_v28  ;;  %16605 = vmatprep.mubr.msk.f32.mxu0 %vm17547_vm1, %v17546_v28  ;;  %v6673_v60 = vand.u32 4294901760, %v18534_v21 }
 0x11a   :  { %v18467_v7 = vsub.f32 %v5632_v63, %v18454_v1  ;;  %v2268_v8 = vpop.f32.mrf.mxu1  ;;  %16627 = vmatmul.mubr.f32.vlgmr.msra.gmra.mxu1 %v18454_v1  ;;  %16604 = vmatpush3.msra.mxu0 %v5287_v48 }
 0x11b   :  { %v2269_v37 = vadd.f32 %v2268_v8, %v2177_v0  ;;  %v16341_v44 = vpop.f32.mrf.mxu0  ;;  %16637 = vmatpush3.msra.mxu1 %v18357_v6  ;;  %16640 = vmatprep.mubr.msk.f32.mxu1 %vm17547_vm1, %v17546_v28  ;;  %v6674_v8 = vsub.f32 %v18534_v21, %v6673_v60 }
 0x11c   :  { %v2358_v51 = vadd.f32 %v16341_v44, %v2275_v4  ;;  %16638 = vmatprep.subr.mxu1 %v17546_v28  ;;  %16606 = vmatmul.mubr.f32.vlgmr.msra.gmra.mxu0 %v18381_v18  ;;  %v5703_v10 = vand.u32 4294901760, %v18467_v7 }
 0x11d   :  { %v2350_v13 = vpop.f32.mrf.mxu0  ;;  %16639 = vmatpush3.msra.mxu1 %v18369_v11  ;;  %16615 = vmatprep.subr.mxu0 %v17546_v28 }
 0x11e   :  { %v2351_v48 = vadd.f32 %v2350_v13, %v2269_v37  ;;  %v16348_v15 = vpop.f32.mrf.mxu1  ;;  %16641 = vmatmul.mubr.f32.vlgmr.msra.gmra.mxu1 %v5703_v10  ;;  %16650 = vmatprep.subr.mxu1 %v17546_v28  ;;  %v5704_v16 = vsub.f32 %v18467_v7, %v5703_v10  ;;  %v4242_v37 = vld [vmem:[%s20234_s6 + $0x68] sm:$0xff] }
 0x11f   :  { %v2441_v18 = vadd.f32 %v16348_v15, %v2358_v51  ;;  %16616 = vmatpush3.msra.mxu0 %v18357_v6  ;;  %16651 = vmatpush3.msra.mxu1 %v18357_v6  ;;  %v6206_v6 = vand.u32 4294901760, %v6205_v40  ;;  %v18577_v40 = vand.u32 4294901760, %v4242_v37 }
 0x120   :  { %v2432_v24 = vpop.f32.mrf.mxu1  ;;  %16617 = vmatprep.subr.mxu0 %v17546_v28  ;;  %16652 = vmatprep.subr.mxu1 %v17546_v28  ;;  %v5705_v26 = vand.u32 4294901760, %v5704_v16 }
 0x121   :  { %v2433_v54 = vadd.f32 %v2432_v24, %v2351_v48  ;;  %v16355_v62 = vpop.f32.mrf.mxu0  ;;  %16618 = vmatpush3.msra.mxu0 %v18369_v11  ;;  %16619 = vmatprep.mubr.msk.f32.mxu0 %vm17547_vm1, %v17546_v28  ;;  %v4241_v48 = vld [vmem:[%s20234_s6 + $0x60] sm:$0xff] }
 0x122   :  { %v2524_v31 = vadd.f32 %v16355_v62, %v2441_v18  ;;  %16653 = vmatpush3.msra.mxu1 %v18369_v11  ;;  %16654 = vmatprep.mubr.msk.f32.mxu1 %vm17547_vm1, %v17546_v28  ;;  %v6213_v11 = vand.u32 4294901760, %v6212_v27 }
 0x123   :  { %v2517_v32 = vpop.f32.mrf.mxu0  ;;  %16620 = vmatmul.mubr.f32.vlgmr.msra.gmra.mxu0 %v5705_v26  ;;  %16629 = vmatprep.subr.mxu0 %v17546_v28  ;;  %v18589_v26 = vand.u32 4294901760, %v4241_v48 }
 0x124   :  { %v2518_v2 = vadd.f32 %v2517_v32, %v2433_v54  ;;  %v16362_v36 = vpop.f32.mrf.mxu1  ;;  %16655 = vmatmul.mubr.f32.vlgmr.msra.gmra.mxu1 %v18454_v1  ;;  %16664 = vmatprep.subr.mxu1 %v17546_v28  ;;  %v18595_v54 = vsub.f32 %v4242_v37, %v18577_v40 }
 0x125   :  { %v18510_v38 = vadd.f32 %v16362_v36, %v2524_v31  ;;  %16630 = vmatpush3.msra.mxu0 %v18374_v14  ;;  %16665 = vmatpush3.msra.mxu1 %v6206_v6  ;;  %v18608_v57 = vsub.f32 %v4241_v48, %v18589_v26 }
 0x126   :  { %v2596_v39 = vpop.f32.mrf.mxu1  ;;  %16631 = vmatprep.subr.mxu0 %v17546_v28  ;;  %16666 = vmatprep.subr.mxu1 %v17546_v28  ;;  %v7128_v36 = vand.u32 4294901760, %v18595_v54 }
 0x127   :  { %v2597_v42 = vadd.f32 %v2596_v39, %v2518_v2  ;;  %v16369_v43 = vpop.f32.mrf.mxu0  ;;  %16632 = vmatpush3.msra.mxu0 %v18388_v25  ;;  %16633 = vmatprep.mubr.msk.f32.mxu0 %vm17547_vm1, %v17546_v28  ;;  %v6667_v25 = vsub.f32 %v18521_v20, %v6666_v50 }
 0x128   :  { %16667 = vmatpush3.msra.mxu1 %v6213_v11  ;;  %16668 = vmatprep.mubr.msk.f32.mxu1 %vm17547_vm1, %v17546_v28 }
 0x129   :  { %v6094_v22 = vsel %vm65_vm0, %v2597_v42, 0  ;;  %v2685_v45 = vpop.f32.mrf.mxu0  ;;  %16634 = vmatmul.mubr.f32.vlgmr.msra.gmra.mxu0 %v18467_v7  ;;  %16643 = vmatprep.subr.mxu0 %v17546_v28 }
 0x12a   :  { %v18528_v30 = vand.u32 4294901760, %v6094_v22  ;;  %v16376_v46 = vpop.f32.mrf.mxu1  ;;  %16678 = vmatprep.subr.mxu1 %v17546_v28  ;;  %16644 = vmatpush3.msra.mxu0 %v5742_v17 }
 0x12b   :  { %v2783_v49 = vadd.f32 %v16376_v46, %v16369_v43  ;;  %16645 = vmatprep.subr.mxu0 %v17546_v28  ;;  %16647 = vmatprep.mubr.msk.f32.mxu0 %vm17547_vm1, %v17546_v28 }
 0x12c   :  { %v18541_v53 = vsub.f32 %v6094_v22, %v18528_v30  ;;  %v2776_v33 = vpop.f32.mrf.mxu1  ;;  %16669 = vmatmul.mubr.f32.vlgmr.msra.gmra.mxu1 %v18528_v30  ;;  %16646 = vmatpush3.msra.mxu0 %v5749_v34  ;;  %v7135_v22 = vand.u32 4294901760, %v18608_v57 }
 0x12d   :  { %v2777_v14 = vadd.f32 %v2776_v33, %v2685_v45  ;;  %v16383_v17 = vpop.f32.mrf.mxu0  ;;  %16679 = vmatpush3.msra.mxu1 %v18429_v23  ;;  %16682 = vmatprep.mubr.msk.f32.mxu1 %vm17547_vm1, %v17546_v28 }
 0x12e   :  { %v2866_v56 = vadd.f32 %v16383_v17, %v2783_v49  ;;  %16680 = vmatprep.subr.mxu1 %v17546_v28  ;;  %16648 = vmatmul.mubr.f32.vlgmr.msra.gmra.mxu0 %v18454_v1  ;;  %v6165_v59 = vand.u32 4294901760, %v18541_v53  ;;  %v4244_v17 = vld [vmem:[%s20234_s6 + $0x78] sm:$0xff] }
 0x12f   :  { %v2858_v63 = vpop.f32.mrf.mxu0  ;;  %16681 = vmatpush3.msra.mxu1 %v18441_v58  ;;  %16657 = vmatprep.subr.mxu0 %v17546_v28 }
 0x130   :  { %v2859_v34 = vadd.f32 %v2858_v63, %v2777_v14  ;;  %v16390_v0 = vpop.f32.mrf.mxu1  ;;  %16683 = vmatmul.mubr.f32.vlgmr.msra.gmra.mxu1 %v6165_v59  ;;  %16692 = vmatprep.subr.mxu1 %v17546_v28  ;;  %v6166_v1 = vsub.f32 %v18541_v53, %v6165_v59  ;;  %v7136_v14 = vsub.f32 %v18608_v57, %v7135_v22 }
 0x131   :  { %v2949_v47 = vadd.f32 %v16390_v0, %v2866_v56  ;;  %16658 = vmatpush3.msra.mxu0 %v18429_v23  ;;  %16693 = vmatpush3.msra.mxu1 %v18429_v23  ;;  %v6668_v23 = vand.u32 4294901760, %v6667_v25  ;;  %v4243_v0 = vld [vmem:[%s20234_s6 + $0x70] sm:$0xff] }
 0x132   :  { %v2940_v4 = vpop.f32.mrf.mxu1  ;;  %16659 = vmatprep.subr.mxu0 %v17546_v28  ;;  %16694 = vmatprep.subr.mxu1 %v17546_v28  ;;  %v6167_v7 = vand.u32 4294901760, %v6166_v1 }
 0x133   :  { %v2941_v44 = vadd.f32 %v2940_v4, %v2859_v34  ;;  %v16397_v51 = vpop.f32.mrf.mxu0  ;;  %16660 = vmatpush3.msra.mxu0 %v18441_v58  ;;  %16661 = vmatprep.mubr.msk.f32.mxu0 %vm17547_vm1, %v17546_v28  ;;  %v18651_v34 = vand.u32 4294901760, %v4244_v17 }
 0x134   :  { %v3032_v10 = vadd.f32 %v16397_v51, %v2949_v47  ;;  %16695 = vmatpush3.msra.mxu1 %v18441_v58  ;;  %16696 = vmatprep.mubr.msk.f32.mxu1 %vm17547_vm1, %v17546_v28  ;;  %v6675_v58 = vand.u32 4294901760, %v6674_v8  ;;  %v18663_v8 = vand.u32 4294901760, %v4243_v0 }
 0x135   :  { %v3025_v13 = vpop.f32.mrf.mxu0  ;;  %16662 = vmatmul.mubr.f32.vlgmr.msra.gmra.mxu0 %v6167_v7  ;;  %16671 = vmatprep.subr.mxu0 %v17546_v28  ;;  %v18669_v51 = vsub.f32 %v4244_v17, %v18651_v34 }
 0x136   :  { %v3026_v15 = vadd.f32 %v3025_v13, %v2941_v44  ;;  %v16404_v16 = vpop.f32.mrf.mxu1  ;;  %16697 = vmatmul.mubr.f32.vlgmr.msra.gmra.mxu1 %v18528_v30  ;;  %16706 = vmatprep.subr.mxu1 %v17546_v28 }
 0x137   :  { %v18584_v18 = vadd.f32 %v16404_v16, %v3032_v10  ;;  %16672 = vmatpush3.msra.mxu0 %v18447_v61  ;;  %16707 = vmatpush3.msra.mxu1 %v6668_v23 }
 0x138   :  { %v3104_v24 = vpop.f32.mrf.mxu1  ;;  %16673 = vmatprep.subr.mxu0 %v17546_v28  ;;  %16708 = vmatprep.subr.mxu1 %v17546_v28 }
 0x139   :  { %v3105_v27 = vadd.f32 %v3104_v24, %v3026_v15  ;;  %v16411_v29 = vpop.f32.mrf.mxu0  ;;  %16674 = vmatpush3.msra.mxu0 %v18460_v3  ;;  %16675 = vmatprep.mubr.msk.f32.mxu0 %vm17547_vm1, %v17546_v28  ;;  %v7129_v3 = vsub.f32 %v18595_v54, %v7128_v36  ;;  %v18682_v15 = vsub.f32 %v4243_v0, %v18663_v8 }
 0x13a   :  { %16709 = vmatpush3.msra.mxu1 %v6675_v58  ;;  %16710 = vmatprep.mubr.msk.f32.mxu1 %vm17547_vm1, %v17546_v28  ;;  %v7590_v58 = vand.u32 4294901760, %v18669_v51 }
 0x13b   :  { %v6556_v62 = vsel %vm65_vm0, %v3105_v27, 0  ;;  %v3193_v6 = vpop.f32.mrf.mxu0  ;;  %16676 = vmatmul.mubr.f32.vlgmr.msra.gmra.mxu0 %v18541_v53  ;;  %16685 = vmatprep.subr.mxu0 %v17546_v28 }
 0x13c   :  { %v18602_v31 = vand.u32 4294901760, %v6556_v62  ;;  %v16418_v32 = vpop.f32.mrf.mxu1  ;;  %16720 = vmatprep.subr.mxu1 %v17546_v28  ;;  %16686 = vmatpush3.msra.mxu0 %v6204_v5 }
 0x13d   :  { %v3291_v2 = vadd.f32 %v16418_v32, %v16411_v29  ;;  %16687 = vmatprep.subr.mxu0 %v17546_v28  ;;  %16689 = vmatprep.mubr.msk.f32.mxu0 %vm17547_vm1, %v17546_v28 }
 0x13e   :  { %v18615_v11 = vsub.f32 %v6556_v62, %v18602_v31  ;;  %v3284_v39 = vpop.f32.mrf.mxu1  ;;  %16711 = vmatmul.mubr.f32.vlgmr.msra.gmra.mxu1 %v18602_v31  ;;  %16688 = vmatpush3.msra.mxu0 %v6211_v12 }
 0x13f   :  { %v3285_v61 = vadd.f32 %v3284_v39, %v3193_v6  ;;  %v16425_v5 = vpop.f32.mrf.mxu0  ;;  %16721 = vmatpush3.msra.mxu1 %v18503_v35  ;;  %16724 = vmatprep.mubr.msk.f32.mxu1 %vm17547_vm1, %v17546_v28  ;;  %v7597_v6 = vand.u32 4294901760, %v18682_v15 }
 0x140   :  { %v3374_v42 = vadd.f32 %v16425_v5, %v3291_v2  ;;  %16722 = vmatprep.subr.mxu1 %v17546_v28  ;;  %16690 = vmatmul.mubr.f32.vlgmr.msra.gmra.mxu0 %v18528_v30  ;;  %v6627_v43 = vand.u32 4294901760, %v18615_v11 }
 0x141   :  { %v3366_v45 = vpop.f32.mrf.mxu0  ;;  %16723 = vmatpush3.msra.mxu1 %v18515_v41  ;;  %16699 = vmatprep.subr.mxu0 %v17546_v28  ;;  %v7598_v5 = vsub.f32 %v18682_v15, %v7597_v6 }
 0x142   :  { %v3367_v12 = vadd.f32 %v3366_v45, %v3285_v61  ;;  %v16432_v46 = vpop.f32.mrf.mxu1  ;;  %16725 = vmatmul.mubr.f32.vlgmr.msra.gmra.mxu1 %v6627_v43  ;;  %16734 = vmatprep.subr.mxu1 %v17546_v28  ;;  %v6628_v30 = vsub.f32 %v18615_v11, %v6627_v43 }
 0x143   :  { %v3457_v49 = vadd.f32 %v16432_v46, %v3374_v42  ;;  %16700 = vmatpush3.msra.mxu0 %v18503_v35  ;;  %16735 = vmatpush3.msra.mxu1 %v18503_v35  ;;  %v7130_v35 = vand.u32 4294901760, %v7129_v3  ;;  %v7994_v42 = vld [vmem:[%s20235_s7 + $0x8] sm:$0xff] }
 0x144   :  { %v3448_v53 = vpop.f32.mrf.mxu1  ;;  %16701 = vmatprep.subr.mxu0 %v17546_v28  ;;  %16736 = vmatprep.subr.mxu1 %v17546_v28  ;;  %v6629_v33 = vand.u32 4294901760, %v6628_v30  ;;  %v18725_v46 = vand.u32 4294901760, %v7994_v42  ;;  %v7993_v30 = vld [vmem:[%s20235_s7] sm:$0xff] }
 0x145   :  { %v3449_v56 = vadd.f32 %v3448_v53, %v3367_v12  ;;  %v16439_v59 = vpop.f32.mrf.mxu0  ;;  %16702 = vmatpush3.msra.mxu0 %v18515_v41  ;;  %16703 = vmatprep.mubr.msk.f32.mxu0 %vm17547_vm1, %v17546_v28  ;;  %v18737_v17 = vand.u32 4294901760, %v7993_v30 }
 0x146   :  { %v3540_v63 = vadd.f32 %v16439_v59, %v3457_v49  ;;  %16737 = vmatpush3.msra.mxu1 %v18515_v41  ;;  %16738 = vmatprep.mubr.msk.f32.mxu1 %vm17547_vm1, %v17546_v28  ;;  %v7137_v41 = vand.u32 4294901760, %v7136_v14  ;;  %v18743_v59 = vsub.f32 %v7994_v42, %v18725_v46 }
 0x147   :  { %v3533_v25 = vpop.f32.mrf.mxu0  ;;  %16704 = vmatmul.mubr.f32.vlgmr.msra.gmra.mxu0 %v6629_v33  ;;  %16713 = vmatprep.subr.mxu0 %v17546_v28 }
 0x148   :  { %v3534_v1 = vadd.f32 %v3533_v25, %v3449_v56  ;;  %v16446_v47 = vpop.f32.mrf.mxu1  ;;  %16739 = vmatmul.mubr.f32.vlgmr.msra.gmra.mxu1 %v18602_v31  ;;  %16748 = vmatprep.subr.mxu1 %v17546_v28  ;;  %v18756_v25 = vsub.f32 %v7993_v30, %v18737_v17  ;;  %v8120_v0 = vand.u32 4294901760, %v18743_v59  ;;  %v8000_v30 = vld [vmem:[%s20235_s7 + $0x38] sm:$0xff] }
 0x149   :  { %v18658_v4 = vadd.f32 %v16446_v47, %v3540_v63  ;;  %16714 = vmatpush3.msra.mxu0 %v18521_v20  ;;  %16749 = vmatpush3.msra.mxu1 %v7130_v35  ;;  %v8010_v47 = vsel %vm65_vm0, %v18252_v52, 0 }
 0x14a   :  { %v3612_v7 = vpop.f32.mrf.mxu1  ;;  %16715 = vmatprep.subr.mxu0 %v17546_v28  ;;  %16750 = vmatprep.subr.mxu1 %v17546_v28 }
 0x14b   :  { %v3613_v37 = vadd.f32 %v3612_v7, %v3534_v1  ;;  %v16453_v44 = vpop.f32.mrf.mxu0  ;;  %16716 = vmatpush3.msra.mxu0 %v18534_v21  ;;  %16717 = vmatprep.mubr.msk.f32.mxu0 %vm17547_vm1, %v17546_v28  ;;  %v7591_v21 = vsub.f32 %v18669_v51, %v7590_v58 }
 0x14c   :  { %16751 = vmatpush3.msra.mxu1 %v7137_v41  ;;  %16752 = vmatprep.mubr.msk.f32.mxu1 %vm17547_vm1, %v17546_v28 }
 0x14d   :  { %v7018_v23 = vsel %vm65_vm0, %v3613_v37, 0  ;;  %v3701_v10 = vpop.f32.mrf.mxu0  ;;  %16718 = vmatmul.mubr.f32.vlgmr.msra.gmra.mxu0 %v18615_v11  ;;  %16727 = vmatprep.subr.mxu0 %v17546_v28  ;;  %v7996_v37 = vld [vmem:[%s20235_s7 + $0x18] sm:$0xff] }
 0x14e   :  { %v18676_v13 = vand.u32 4294901760, %v7018_v23  ;;  %v16460_v48 = vpop.f32.mrf.mxu1  ;;  %16762 = vmatprep.subr.mxu1 %v17546_v28  ;;  %16728 = vmatpush3.msra.mxu0 %v6666_v50 }
 0x14f   :  { %v3799_v16 = vadd.f32 %v16460_v48, %v16453_v44  ;;  %16729 = vmatprep.subr.mxu0 %v17546_v28  ;;  %16731 = vmatprep.mubr.msk.f32.mxu0 %vm17547_vm1, %v17546_v28  ;;  %v18796_v44 = vand.u32 4294901760, %v8010_v47 }
 0x150   :  { %v18689_v24 = vsub.f32 %v7018_v23, %v18676_v13  ;;  %v3792_v27 = vpop.f32.mrf.mxu1  ;;  %16753 = vmatmul.mubr.f32.vlgmr.msra.gmra.mxu1 %v18676_v13  ;;  %16730 = vmatpush3.msra.mxu0 %v6673_v60  ;;  %v18799_v23 = vand.u32 4294901760, %v7996_v37 }
 0x151   :  { %v3793_v20 = vadd.f32 %v3792_v27, %v3701_v10  ;;  %v16467_v50 = vpop.f32.mrf.mxu0  ;;  %16763 = vmatpush3.msra.mxu1 %v18577_v40  ;;  %16766 = vmatprep.mubr.msk.f32.mxu1 %vm17547_vm1, %v17546_v28  ;;  %v7995_v10 = vld [vmem:[%s20235_s7 + $0x10] sm:$0xff]  ;;  %v8080_v48 = vsub.f32 %v8010_v47, %v18796_v44 }
 0x152   :  { %v3882_v29 = vadd.f32 %v16467_v50, %v3799_v16  ;;  %16764 = vmatprep.subr.mxu1 %v17546_v28  ;;  %16732 = vmatmul.mubr.f32.vlgmr.msra.gmra.mxu0 %v18602_v31  ;;  %v7089_v62 = vand.u32 4294901760, %v18689_v24  ;;  %v18816_v16 = vsub.f32 %v7996_v37, %v18799_v23  ;;  %v8472_v50 = vsel %vm65_vm0, %v18296_v19, 0 }
 0x153   :  { %v3874_v32 = vpop.f32.mrf.mxu0  ;;  %16765 = vmatpush3.msra.mxu1 %v18589_v26  ;;  %16741 = vmatprep.subr.mxu0 %v17546_v28  ;;  %v8081_v27 = vand.u32 4294901760, %v8080_v48 }
 0x154   :  { %v3875_v60 = vadd.f32 %v3874_v32, %v3793_v20  ;;  %v16474_v2 = vpop.f32.mrf.mxu1  ;;  %16767 = vmatmul.mubr.f32.vlgmr.msra.gmra.mxu1 %v7089_v62  ;;  %16776 = vmatprep.subr.mxu1 %v17546_v28  ;;  %v7090_v31 = vsub.f32 %v18689_v24, %v7089_v62  ;;  %v8582_v20 = vand.u32 4294901760, %v18816_v16  ;;  %v7998_v62 = vld [vmem:[%s20235_s7 + $0x28] sm:$0xff] }
 0x155   :  { %v3965_v11 = vadd.f32 %v16474_v2, %v3882_v29  ;;  %16742 = vmatpush3.msra.mxu0 %v18577_v40  ;;  %16777 = vmatpush3.msra.mxu1 %v18577_v40  ;;  %v7592_v40 = vand.u32 4294901760, %v7591_v21  ;;  %v18864_v21 = vand.u32 4294901760, %v8472_v50  ;;  %v7997_v2 = vld [vmem:[%s20235_s7 + $0x20] sm:$0xff] }
 0x156   :  { %v3956_v39 = vpop.f32.mrf.mxu1  ;;  %16743 = vmatprep.subr.mxu0 %v17546_v28  ;;  %16778 = vmatprep.subr.mxu1 %v17546_v28  ;;  %v7091_v61 = vand.u32 4294901760, %v7090_v31 }
 0x157   :  { %v3957_v43 = vadd.f32 %v3956_v39, %v3875_v60  ;;  %v16481_v45 = vpop.f32.mrf.mxu0  ;;  %16744 = vmatpush3.msra.mxu0 %v18589_v26  ;;  %16745 = vmatprep.mubr.msk.f32.mxu0 %vm17547_vm1, %v17546_v28  ;;  %v18867_v60 = vand.u32 4294901760, %v7998_v62  ;;  %v8542_v39 = vsub.f32 %v8472_v50, %v18864_v21 }
 0x158   :  { %v4048_v3 = vadd.f32 %v16481_v45, %v3965_v11  ;;  %16779 = vmatpush3.msra.mxu1 %v18589_v26  ;;  %16780 = vmatprep.mubr.msk.f32.mxu1 %vm17547_vm1, %v17546_v28  ;;  %v7599_v26 = vand.u32 4294901760, %v7598_v5  ;;  %v18877_v11 = vand.u32 4294901760, %v7997_v2 }
 0x159   :  { %v4041_v12 = vpop.f32.mrf.mxu0  ;;  %16746 = vmatmul.mubr.f32.vlgmr.msra.gmra.mxu0 %v7091_v61  ;;  %16755 = vmatprep.subr.mxu0 %v17546_v28  ;;  %v18884_v61 = vsub.f32 %v7998_v62, %v18867_v60  ;;  %v8543_v42 = vand.u32 4294901760, %v8542_v39 }
 0x15a   :  { %v4042_v49 = vadd.f32 %v4041_v12, %v3957_v43  ;;  %v16488_v53 = vpop.f32.mrf.mxu1  ;;  %16781 = vmatmul.mubr.f32.vlgmr.msra.gmra.mxu1 %v18676_v13  ;;  %16790 = vmatprep.subr.mxu1 %v17546_v28  ;;  %v18892_v5 = vsub.f32 %v7997_v2, %v18877_v11  ;;  %v8934_v12 = vsel %vm65_vm0, %v18364_v9, 0 }
 0x15b   :  { %v18732_v33 = vadd.f32 %v16488_v53, %v4048_v3  ;;  %16756 = vmatpush3.msra.mxu0 %v18595_v54  ;;  %16791 = vmatpush3.msra.mxu1 %v7592_v40  ;;  %v9044_v43 = vand.u32 4294901760, %v18884_v61  ;;  %v8544_v40 = vsub.f32 %v8542_v39, %v8543_v42 }
 0x15c   :  { %v4120_v14 = vpop.f32.mrf.mxu1  ;;  %16757 = vmatprep.subr.mxu0 %v17546_v28  ;;  %16792 = vmatprep.subr.mxu1 %v17546_v28  ;;  %v9051_v45 = vand.u32 4294901760, %v18892_v5 }
 0x15d   :  { %v4121_v56 = vadd.f32 %v4120_v14, %v4042_v49  ;;  %16758 = vmatpush3.msra.mxu0 %v18608_v57  ;;  %16759 = vmatprep.mubr.msk.f32.mxu0 %vm17547_vm1, %v17546_v28  ;;  %v8121_v57 = vsub.f32 %v18743_v59, %v8120_v0  ;;  %v9045_v3 = vsub.f32 %v18884_v61, %v9044_v43  ;;  %v8545_v49 = vand.u32 4294901760, %v8544_v40 }
 0x15e   :  { %16793 = vmatpush3.msra.mxu1 %v7599_v26  ;;  %16794 = vmatprep.mubr.msk.f32.mxu1 %vm17547_vm1, %v17546_v28  ;;  %v18932_v26 = vand.u32 4294901760, %v8934_v12  ;;  %v18935_v14 = vand.u32 4294901760, %v8000_v30 }
 0x15f   :  { %v7480_v35 = vsel %vm65_vm0, %v4121_v56, 0  ;;  %16760 = vmatmul.mubr.f32.vlgmr.msra.gmra.mxu0 %v18689_v24  ;;  %16769 = vmatprep.subr.mxu0 %v17546_v28  ;;  %v9046_v53 = vand.u32 4294901760, %v9045_v3  ;;  %v8003_v3 = vld [vmem:[%s20235_s7 + $0x50] sm:$0xff] }
 0x160   :  { %v18750_v63 = vand.u32 4294901760, %v7480_v35  ;;  %16804 = vmatprep.subr.mxu1 %v17546_v28  ;;  %16770 = vmatpush3.msra.mxu0 %v7128_v36  ;;  %v8127_v36 = vand.u32 4294901760, %v18756_v25 }
 0x161   :  { %16771 = vmatprep.subr.mxu0 %v17546_v28  ;;  %16773 = vmatprep.mubr.msk.f32.mxu0 %vm17547_vm1, %v17546_v28 }
 0x162   :  { %v7550_v1 = vsub.f32 %v7480_v35, %v18750_v63  ;;  %16795 = vmatmul.mubr.f32.vlgmr.msra.gmra.mxu1 %v18750_v63  ;;  %16772 = vmatpush3.msra.mxu0 %v7135_v22  ;;  %v8128_v7 = vsub.f32 %v18756_v25, %v8127_v36  ;;  %v9004_v35 = vsub.f32 %v8934_v12, %v18932_v26 }
 0x163   :  { %16805 = vmatpush3.msra.mxu1 %v18651_v34  ;;  %16808 = vmatprep.mubr.msk.f32.mxu1 %vm17547_vm1, %v17546_v28 }
 0x164   :  { %16806 = vmatprep.subr.mxu1 %v17546_v28  ;;  %16774 = vmatmul.mubr.f32.vlgmr.msra.gmra.mxu0 %v18676_v13  ;;  %v7551_v54 = vand.u32 4294901760, %v7550_v1  ;;  %v8129_v13 = vand.u32 4294901760, %v8128_v7 }
 0x165   :  { %16807 = vmatpush3.msra.mxu1 %v18663_v8  ;;  %16783 = vmatprep.subr.mxu0 %v17546_v28 }
 0x166   :  { %16809 = vmatmul.mubr.f32.vlgmr.msra.gmra.mxu1 %v7551_v54  ;;  %16818 = vmatprep.subr.mxu1 %v17546_v28  ;;  %v7552_v22 = vsub.f32 %v7550_v1, %v7551_v54 }
 0x167   :  { %16784 = vmatpush3.msra.mxu0 %v18651_v34  ;;  %16819 = vmatpush3.msra.mxu1 %v18651_v34  ;;  %v8122_v34 = vand.u32 4294901760, %v8121_v57 }
 0x168   :  { %16785 = vmatprep.subr.mxu0 %v17546_v28  ;;  %16820 = vmatprep.subr.mxu1 %v17546_v28  ;;  %v7553_v41 = vand.u32 4294901760, %v7552_v22  ;;  %v9396_v22 = vsel %vm65_vm0, %v18436_v55, 0 }
 0x169   :  { %16786 = vmatpush3.msra.mxu0 %v18663_v8  ;;  %16787 = vmatprep.mubr.msk.f32.mxu0 %vm17547_vm1, %v17546_v28 }
 0x16a   :  { %16821 = vmatpush3.msra.mxu1 %v18663_v8  ;;  %16822 = vmatprep.mubr.msk.f32.mxu1 %vm17547_vm1, %v17546_v28  ;;  %v18809_v8 = vand.u32 4294901760, %v7995_v10 }
 0x16b   :  { %16788 = vmatmul.mubr.f32.vlgmr.msra.gmra.mxu0 %v7553_v41  ;;  %16797 = vmatprep.subr.mxu0 %v17546_v28  ;;  %v8002_v41 = vld [vmem:[%s20235_s7 + $0x48] sm:$0xff] }
 0x16c   :  { %16823 = vmatmul.mubr.f32.vlgmr.msra.gmra.mxu1 %v18750_v63  ;;  %16832 = vmatprep.subr.mxu1 %v17546_v28  ;;  %v18824_v24 = vsub.f32 %v7995_v10, %v18809_v8 }
 0x16d   :  { %16798 = vmatpush3.msra.mxu0 %v18669_v51  ;;  %16833 = vmatpush3.msra.mxu1 %v8122_v34  ;;  %v19000_v34 = vand.u32 4294901760, %v9396_v22 }
 0x16e   :  { %16799 = vmatprep.subr.mxu0 %v17546_v28  ;;  %16834 = vmatprep.subr.mxu1 %v17546_v28  ;;  %v8589_v51 = vand.u32 4294901760, %v18824_v24 }
 0x16f   :  { %16800 = vmatpush3.msra.mxu0 %v18682_v15  ;;  %16801 = vmatprep.mubr.msk.f32.mxu0 %vm17547_vm1, %v17546_v28  ;;  %v8583_v15 = vsub.f32 %v18816_v16, %v8582_v20 }
 0x170   :  { %16835 = vmatpush3.msra.mxu1 %v8129_v13  ;;  %16836 = vmatprep.mubr.msk.f32.mxu1 %vm17547_vm1, %v17546_v28  ;;  %v8590_v29 = vsub.f32 %v18824_v24, %v8589_v51 }
 0x171   :  { %16802 = vmatmul.mubr.f32.vlgmr.msra.gmra.mxu0 %v7550_v1  ;;  %16811 = vmatprep.subr.mxu0 %v17546_v28  ;;  %v8584_v32 = vand.u32 4294901760, %v8583_v15 }
 0x172   :  { %16837 = vmatmul.mubr.f32.vlgmr.msra.gmra.mxu1 %v18796_v44  ;;  %16846 = vmatprep.subr.mxu1 %v17546_v28  ;;  %v8591_v31 = vand.u32 4294901760, %v8590_v29 }
 0x173   :  { %16812 = vmatpush3.msra.mxu0 %v7590_v58  ;;  %16847 = vmatpush3.msra.mxu1 %v18725_v46  ;;  %v8082_v58 = vsub.f32 %v8080_v48, %v8081_v27 }
 0x174   :  { %16813 = vmatprep.subr.mxu0 %v17546_v28  ;;  %16848 = vmatprep.subr.mxu1 %v17546_v28 }
 0x175   :  { %16814 = vmatpush3.msra.mxu0 %v7597_v6  ;;  %16815 = vmatprep.mubr.msk.f32.mxu0 %vm17547_vm1, %v17546_v28  ;;  %v8083_v6 = vand.u32 4294901760, %v8082_v58 }
 0x176   :  { %16849 = vmatpush3.msra.mxu1 %v18737_v17  ;;  %16850 = vmatprep.mubr.msk.f32.mxu1 %vm17547_vm1, %v17546_v28 }
 0x177   :  { %16816 = vmatmul.mubr.f32.vlgmr.msra.gmra.mxu0 %v18750_v63  ;;  %16825 = vmatprep.subr.mxu0 %v17546_v28  ;;  %v18952_v63 = vsub.f32 %v8000_v30, %v18935_v14 }
 0x178   :  { %16851 = vmatmul.mubr.f32.vlgmr.msra.gmra.mxu1 %v8081_v27  ;;  %16860 = vmatprep.subr.mxu1 %v17546_v28 }
 0x179   :  { %16826 = vmatpush3.msra.mxu0 %v18725_v46  ;;  %16861 = vmatpush3.msra.mxu1 %v18725_v46  ;;  %v9052_v46 = vsub.f32 %v18892_v5, %v9051_v45  ;;  %v9506_v1 = vand.u32 4294901760, %v18952_v63 }
 0x17a   :  { %16827 = vmatprep.subr.mxu0 %v17546_v28  ;;  %16862 = vmatprep.subr.mxu1 %v17546_v28 }
 0x17b   :  { %16828 = vmatpush3.msra.mxu0 %v18737_v17  ;;  %16829 = vmatprep.mubr.msk.f32.mxu0 %vm17547_vm1, %v17546_v28  ;;  %v9053_v56 = vand.u32 4294901760, %v9052_v46  ;;  %v9507_v57 = vsub.f32 %v18952_v63, %v9506_v1 }
 0x17c   :  { %16863 = vmatpush3.msra.mxu1 %v18737_v17  ;;  %16864 = vmatprep.mubr.msk.f32.mxu1 %vm17547_vm1, %v17546_v28  ;;  %v7999_v17 = vld [vmem:[%s20235_s7 + $0x30] sm:$0xff] }
 0x17d   :  { %16830 = vmatmul.mubr.f32.vlgmr.msra.gmra.mxu0 %v8083_v6  ;;  %16839 = vmatprep.subr.mxu0 %v17546_v28  ;;  %v9508_v37 = vand.u32 4294901760, %v9507_v57 }
 0x17e   :  { %16865 = vmatmul.mubr.f32.vlgmr.msra.gmra.mxu1 %v18796_v44  ;;  %16874 = vmatprep.subr.mxu1 %v17546_v28 }
 0x17f   :  { %16840 = vmatpush3.msra.mxu0 %v18743_v59  ;;  %16875 = vmatpush3.msra.mxu1 %v8584_v32  ;;  %v18945_v59 = vand.u32 4294901760, %v7999_v17 }
 0x180   :  { %16841 = vmatprep.subr.mxu0 %v17546_v28  ;;  %16876 = vmatprep.subr.mxu1 %v17546_v28 }
 0x181   :  { %16842 = vmatpush3.msra.mxu0 %v18756_v25  ;;  %16843 = vmatprep.mubr.msk.f32.mxu0 %vm17547_vm1, %v17546_v28  ;;  %v18960_v25 = vsub.f32 %v7999_v17, %v18945_v59 }
 0x182   :  { %16877 = vmatpush3.msra.mxu1 %v8591_v31  ;;  %16878 = vmatprep.mubr.msk.f32.mxu1 %vm17547_vm1, %v17546_v28  ;;  %v9858_v31 = vsel %vm65_vm0, %v18510_v38, 0 }
 0x183   :  { %16844 = vmatmul.mubr.f32.vlgmr.msra.gmra.mxu0 %v8080_v48  ;;  %16853 = vmatprep.subr.mxu0 %v17546_v28  ;;  %v9513_v54 = vand.u32 4294901760, %v18960_v25  ;;  %v19016_v48 = vsub.f32 %v9396_v22, %v19000_v34 }
 0x184   :  { %16879 = vmatmul.mubr.f32.vlgmr.msra.gmra.mxu1 %v18864_v21  ;;  %16888 = vmatprep.subr.mxu1 %v17546_v28 }
 0x185   :  { %16854 = vmatpush3.msra.mxu0 %v8120_v0  ;;  %16889 = vmatpush3.msra.mxu1 %v18799_v23  ;;  %v9005_v0 = vand.u32 4294901760, %v9004_v35  ;;  %v9514_v47 = vsub.f32 %v18960_v25, %v9513_v54 }
 0x186   :  { %16855 = vmatprep.subr.mxu0 %v17546_v28  ;;  %16890 = vmatprep.subr.mxu1 %v17546_v28 }
 0x187   :  { %16856 = vmatpush3.msra.mxu0 %v8127_v36  ;;  %16857 = vmatprep.mubr.msk.f32.mxu0 %vm17547_vm1, %v17546_v28  ;;  %v9006_v36 = vsub.f32 %v9004_v35, %v9005_v0  ;;  %v9515_v10 = vand.u32 4294901760, %v9514_v47 }
 0x188   :  { %16891 = vmatpush3.msra.mxu1 %v18809_v8  ;;  %16892 = vmatprep.mubr.msk.f32.mxu1 %vm17547_vm1, %v17546_v28 }
 0x189   :  { %16858 = vmatmul.mubr.f32.vlgmr.msra.gmra.mxu0 %v18796_v44  ;;  %16867 = vmatprep.subr.mxu0 %v17546_v28  ;;  %v9007_v7 = vand.u32 4294901760, %v9006_v36  ;;  %v19003_v44 = vand.u32 4294901760, %v8002_v41 }
 0x18a   :  { %16893 = vmatmul.mubr.f32.vlgmr.msra.gmra.mxu1 %v8543_v42  ;;  %16902 = vmatprep.subr.mxu1 %v17546_v28 }
 0x18b   :  { %16868 = vmatpush3.msra.mxu0 %v18799_v23  ;;  %16903 = vmatpush3.msra.mxu1 %v18799_v23  ;;  %v8001_v23 = vld [vmem:[%s20235_s7 + $0x40] sm:$0xff] }
 0x18c   :  { %16869 = vmatprep.subr.mxu0 %v17546_v28  ;;  %16904 = vmatprep.subr.mxu1 %v17546_v28  ;;  %v19013_v13 = vand.u32 4294901760, %v8001_v23 }
 0x18d   :  { %16870 = vmatpush3.msra.mxu0 %v18809_v8  ;;  %16871 = vmatprep.mubr.msk.f32.mxu0 %vm17547_vm1, %v17546_v28 }
 0x18e   :  { %16905 = vmatpush3.msra.mxu1 %v18809_v8  ;;  %16906 = vmatprep.mubr.msk.f32.mxu1 %vm17547_vm1, %v17546_v28  ;;  %v19030_v27 = vsub.f32 %v8001_v23, %v19013_v13 }
 0x18f   :  { %16872 = vmatmul.mubr.f32.vlgmr.msra.gmra.mxu0 %v8545_v49  ;;  %16881 = vmatprep.subr.mxu0 %v17546_v28  ;;  %v19085_v49 = vand.u32 4294901760, %v8003_v3 }
 0x190   :  { %16907 = vmatmul.mubr.f32.vlgmr.msra.gmra.mxu1 %v18864_v21  ;;  %16916 = vmatprep.subr.mxu1 %v17546_v28  ;;  %v9975_v50 = vand.u32 4294901760, %v19030_v27 }
 0x191   :  { %16882 = vmatpush3.msra.mxu0 %v18816_v16  ;;  %16917 = vmatpush3.msra.mxu1 %v9046_v53  ;;  %v19022_v16 = vsub.f32 %v8002_v41, %v19003_v44  ;;  %v19105_v36 = vsub.f32 %v8003_v3, %v19085_v49  ;;  %v4222_v3 = vld [vmem:[%s20230_s2 + $0x8] sm:$0xff] }
 0x192   :  { %16883 = vmatprep.subr.mxu0 %v17546_v28  ;;  %16918 = vmatprep.subr.mxu1 %v17546_v28 }
 0x193   :  { %16884 = vmatpush3.msra.mxu0 %v18824_v24  ;;  %16885 = vmatprep.mubr.msk.f32.mxu0 %vm17547_vm1, %v17546_v28  ;;  %v9968_v58 = vand.u32 4294901760, %v19022_v16 }
 0x194   :  { %16919 = vmatpush3.msra.mxu1 %v9053_v56  ;;  %16920 = vmatprep.mubr.msk.f32.mxu1 %vm17547_vm1, %v17546_v28 }
 0x195   :  { %16886 = vmatmul.mubr.f32.vlgmr.msra.gmra.mxu0 %v8542_v39  ;;  %16895 = vmatprep.subr.mxu0 %v17546_v28  ;;  %v9969_v32 = vsub.f32 %v19022_v16, %v9968_v58  ;;  %v8004_v39 = vld [vmem:[%s20235_s7 + $0x58] sm:$0xff] }
 0x196   :  { %16921 = vmatmul.mubr.f32.vlgmr.msra.gmra.mxu1 %v18932_v26  ;;  %16930 = vmatprep.subr.mxu1 %v17546_v28  ;;  %v19075_v40 = vand.u32 4294901760, %v8004_v39 }
 0x197   :  { %16896 = vmatpush3.msra.mxu0 %v8582_v20  ;;  %16931 = vmatpush3.msra.mxu1 %v18867_v60 }
 0x198   :  { %16897 = vmatprep.subr.mxu0 %v17546_v28  ;;  %16932 = vmatprep.subr.mxu1 %v17546_v28  ;;  %v19094_v17 = vsub.f32 %v8004_v39, %v19075_v40 }
 0x199   :  { %16898 = vmatpush3.msra.mxu0 %v8589_v51  ;;  %16899 = vmatprep.mubr.msk.f32.mxu0 %vm17547_vm1, %v17546_v28  ;;  %v9467_v51 = vand.u32 4294901760, %v19016_v48 }
 0x19a   :  { %16933 = vmatpush3.msra.mxu1 %v18877_v11  ;;  %16934 = vmatprep.mubr.msk.f32.mxu1 %vm17547_vm1, %v17546_v28  ;;  %v10430_v47 = vand.u32 4294901760, %v19094_v17 }
 0x19b   :  { %16900 = vmatmul.mubr.f32.vlgmr.msra.gmra.mxu0 %v18864_v21  ;;  %16909 = vmatprep.subr.mxu0 %v17546_v28  ;;  %v9468_v6 = vsub.f32 %v19016_v48, %v9467_v51 }
 0x19c   :  { %16935 = vmatmul.mubr.f32.vlgmr.msra.gmra.mxu1 %v9005_v0  ;;  %16944 = vmatprep.subr.mxu1 %v17546_v28 }
 0x19d   :  { %16910 = vmatpush3.msra.mxu0 %v18867_v60  ;;  %16945 = vmatpush3.msra.mxu1 %v18867_v60 }
 0x19e   :  { %16911 = vmatprep.subr.mxu0 %v17546_v28  ;;  %16946 = vmatprep.subr.mxu1 %v17546_v28 }
 0x19f   :  { %16912 = vmatpush3.msra.mxu0 %v18877_v11  ;;  %16913 = vmatprep.mubr.msk.f32.mxu0 %vm17547_vm1, %v17546_v28 }
 0x1a0   :  { %16947 = vmatpush3.msra.mxu1 %v18877_v11  ;;  %16948 = vmatprep.mubr.msk.f32.mxu1 %vm17547_vm1, %v17546_v28  ;;  %v9976_v11 = vsub.f32 %v19030_v27, %v9975_v50 }
 0x1a1   :  { %16914 = vmatmul.mubr.f32.vlgmr.msra.gmra.mxu0 %v9007_v7  ;;  %16923 = vmatprep.subr.mxu0 %v17546_v28 }
 0x1a2   :  { %16949 = vmatmul.mubr.f32.vlgmr.msra.gmra.mxu1 %v18932_v26  ;;  %16958 = vmatprep.subr.mxu1 %v17546_v28  ;;  %v9977_v46 = vand.u32 4294901760, %v9976_v11 }
 0x1a3   :  { %16924 = vmatpush3.msra.mxu0 %v18884_v61  ;;  %16959 = vmatpush3.msra.mxu1 %v9508_v37  ;;  %v9469_v61 = vand.u32 4294901760, %v9468_v6 }
 0x1a4   :  { %16925 = vmatprep.subr.mxu0 %v17546_v28  ;;  %16960 = vmatprep.subr.mxu1 %v17546_v28  ;;  %v4402_v8 = vpop.f32.mrf.mxu1 }
 0x1a5   :  { %16926 = vmatpush3.msra.mxu0 %v18892_v5  ;;  %16927 = vmatprep.mubr.msk.f32.mxu0 %vm17547_vm1, %v17546_v28  ;;  %v9970_v5 = vand.u32 4294901760, %v9969_v32 }
 0x1a6   :  { %16961 = vmatpush3.msra.mxu1 %v9515_v10  ;;  %16962 = vmatprep.mubr.msk.f32.mxu1 %vm17547_vm1, %v17546_v28  ;;  %v16502_v24 = vpop.f32.mrf.mxu1 }
 0x1a7   :  { %16928 = vmatmul.mubr.f32.vlgmr.msra.gmra.mxu0 %v9004_v35  ;;  %16937 = vmatprep.subr.mxu0 %v17546_v28 }
 0x1a8   :  { %16963 = vmatmul.mubr.f32.vlgmr.msra.gmra.mxu1 %v19000_v34  ;;  %16972 = vmatprep.subr.mxu1 %v17546_v28  ;;  %v4553_v20 = vpop.f32.mrf.mxu1 }
 0x1a9   :  { %16938 = vmatpush3.msra.mxu0 %v9044_v43  ;;  %16973 = vmatpush3.msra.mxu1 %v18935_v14 }
 0x1aa   :  { %16939 = vmatprep.subr.mxu0 %v17546_v28  ;;  %16974 = vmatprep.subr.mxu1 %v17546_v28  ;;  %v16516_v15 = vpop.f32.mrf.mxu1 }
 0x1ab   :  { %16940 = vmatpush3.msra.mxu0 %v9051_v45  ;;  %16941 = vmatprep.mubr.msk.f32.mxu0 %vm17547_vm1, %v17546_v28  ;;  %v19072_v45 = vand.u32 4294901760, %v9858_v31 }
 0x1ac   :  { %16975 = vmatpush3.msra.mxu1 %v18945_v59  ;;  %16976 = vmatprep.mubr.msk.f32.mxu1 %vm17547_vm1, %v17546_v28  ;;  %v4321_v29 = vpop.f32.mrf.mxu0  ;;  %v4703_v62 = vpop.f32.mrf.mxu1 }
 0x1ad   :  { %16942 = vmatmul.mubr.f32.vlgmr.msra.gmra.mxu0 %v18932_v26  ;;  %16951 = vmatprep.subr.mxu0 %v17546_v28  ;;  %v4403_v21 = vadd.f32 %v4402_v8, %v4321_v29  ;;  %v8005_v29 = vld [vmem:[%s20235_s7 + $0x60] sm:$0xff] }
 0x1ae   :  { %16977 = vmatmul.mubr.f32.vlgmr.msra.gmra.mxu1 %v9467_v51  ;;  %16986 = vmatprep.subr.mxu1 %v17546_v28  ;;  %v16495_v60 = vpop.f32.mrf.mxu0  ;;  %v16530_v2 = vpop.f32.mrf.mxu1 }
 0x1af   :  { %16952 = vmatpush3.msra.mxu0 %v18935_v14  ;;  %16987 = vmatpush3.msra.mxu1 %v18935_v14  ;;  %v19088_v14 = vsub.f32 %v9858_v31, %v19072_v45  ;;  %v4221_v60 = vld [vmem:[%s20230_s2] sm:$0xff] }
 0x1b0   :  { %16953 = vmatprep.subr.mxu0 %v17546_v28  ;;  %16988 = vmatprep.subr.mxu1 %v17546_v28 }
 0x1b1   :  { %16954 = vmatpush3.msra.mxu0 %v18945_v59  ;;  %16955 = vmatprep.mubr.msk.f32.mxu0 %vm17547_vm1, %v17546_v28  ;;  %v4478_v42 = vpop.f32.mrf.mxu0  ;;  %v9929_v22 = vand.u32 4294901760, %v19088_v14 }
 0x1b2   :  { %16989 = vmatpush3.msra.mxu1 %v18945_v59  ;;  %16990 = vmatprep.mubr.msk.f32.mxu1 %vm17547_vm1, %v17546_v28  ;;  %v4479_v43 = vadd.f32 %v4478_v42, %v4403_v21  ;;  %v19160_v21 = vand.u32 4294901760, %v8005_v29 }
 0x1b3   :  { %16956 = vmatmul.mubr.f32.vlgmr.msra.gmra.mxu0 %v9469_v61  ;;  %16965 = vmatprep.subr.mxu0 %v17546_v28  ;;  %v16509_v12 = vpop.f32.mrf.mxu0  ;;  %v9930_v7 = vsub.f32 %v19088_v14, %v9929_v22 }
 0x1b4   :  { %16991 = vmatmul.mubr.f32.vlgmr.msra.gmra.mxu1 %v19000_v34  ;;  %17000 = vmatprep.subr.mxu1 %v17546_v28  ;;  %v4554_v30 = vadd.f32 %v4553_v20, %v4479_v43  ;;  %v19182_v43 = vsub.f32 %v8005_v29, %v19160_v21 }
 0x1b5   :  { %16966 = vmatpush3.msra.mxu0 %v18952_v63  ;;  %17001 = vmatpush3.msra.mxu1 %v9970_v5  ;;  %v10437_v63 = vand.u32 4294901760, %v19105_v36  ;;  %v9931_v24 = vand.u32 4294901760, %v9930_v7 }
 0x1b6   :  { %16967 = vmatprep.subr.mxu0 %v17546_v28  ;;  %17002 = vmatprep.subr.mxu1 %v17546_v28  ;;  %v4864_v53 = vpop.f32.mrf.mxu1  ;;  %v4630_v26 = vpop.f32.mrf.mxu0 }
 0x1b7   :  { %16968 = vmatpush3.msra.mxu0 %v18960_v25  ;;  %16969 = vmatprep.mubr.msk.f32.mxu0 %vm17547_vm1, %v17546_v28  ;;  %v4631_v56 = vadd.f32 %v4630_v26, %v4554_v30  ;;  %v10431_v25 = vsub.f32 %v19094_v17, %v10430_v47  ;;  %v10438_v8 = vsub.f32 %v19105_v36, %v10437_v63 }
 0x1b8   :  { %17003 = vmatpush3.msra.mxu1 %v9977_v46  ;;  %17004 = vmatprep.mubr.msk.f32.mxu1 %vm17547_vm1, %v17546_v28  ;;  %v16544_v59 = vpop.f32.mrf.mxu1  ;;  %v16523_v35 = vpop.f32.mrf.mxu0 }
 0x1b9   :  { %16970 = vmatmul.mubr.f32.vlgmr.msra.gmra.mxu0 %v19016_v48  ;;  %16979 = vmatprep.subr.mxu0 %v17546_v28  ;;  %v19100_v0 = vadd.f32 %v4703_v62, %v4631_v56  ;;  %v8006_v48 = vld [vmem:[%s20235_s7 + $0x68] sm:$0xff] }
 0x1ba   :  { %17005 = vmatmul.mubr.f32.vlgmr.msra.gmra.mxu1 %v19072_v45  ;;  %17014 = vmatprep.subr.mxu1 %v17546_v28  ;;  %v5015_v57 = vpop.f32.mrf.mxu1  ;;  %v19150_v15 = vand.u32 4294901760, %v8006_v48 }
 0x1bb   :  { %16980 = vmatpush3.msra.mxu0 %v9506_v1  ;;  %17015 = vmatpush3.msra.mxu1 %v19003_v44  ;;  %v7941_v5 = vsub.f32 %v4221_v60, %v19100_v0 }
 0x1bc   :  { %16981 = vmatprep.subr.mxu0 %v17546_v28  ;;  %17016 = vmatprep.subr.mxu1 %v17546_v28  ;;  %v16558_v41 = vpop.f32.mrf.mxu1  ;;  %v19172_v11 = vsub.f32 %v8006_v48, %v19150_v15 }
 0x1bd   :  { %16982 = vmatpush3.msra.mxu0 %v9513_v54  ;;  %16983 = vmatprep.mubr.msk.f32.mxu0 %vm17547_vm1, %v17546_v28  ;;  %v7949_v56 = vmul.f32 %v7941_v5, %v7941_v5 }
 0x1be   :  { %17017 = vmatpush3.msra.mxu1 %v19013_v13  ;;  %17018 = vmatprep.mubr.msk.f32.mxu1 %vm17547_vm1, %v17546_v28  ;;  %v4783_v1 = vpop.f32.mrf.mxu0 }
 0x1bf   :  { %16984 = vmatmul.mubr.f32.vlgmr.msra.gmra.mxu0 %v19000_v34  ;;  %16993 = vmatprep.subr.mxu0 %v17546_v28  ;;  %v4865_v54 = vadd.f32 %v4864_v53, %v4783_v1  ;;  %v5165_v37 = vpop.f32.mrf.mxu1  ;;  %v10320_v34 = vsel %vm65_vm0, %v18584_v18, 0  ;;  %v10892_v53 = vand.u32 4294901760, %v19172_v11  ;;  %v10782_v1 = vsel %vm65_vm0, %v18658_v4, 0 }
 0x1c0   :  { %17019 = vmatmul.mubr.f32.vlgmr.msra.gmra.mxu1 %v9929_v22  ;;  %17028 = vmatprep.subr.mxu1 %v17546_v28  ;;  %v16537_v23 = vpop.f32.mrf.mxu0  ;;  %v19147_v51 = vand.u32 4294901760, %v10320_v34  ;;  %v7958_v22 = vsel %vm7957_vm2, %v7949_v56, 0.0 }
 0x1c1   :  { %16994 = vmatpush3.msra.mxu0 %v19003_v44  ;;  %17029 = vmatpush3.msra.mxu1 %v19003_v44  ;;  %v16572_v10 = vpop.f32.mrf.mxu1  ;;  %v10432_v44 = vand.u32 4294901760, %v10431_v25 }
 0x1c2   :  { %16995 = vmatprep.subr.mxu0 %v17546_v28  ;;  %17030 = vmatprep.subr.mxu1 %v17546_v28  ;;  %v19166_v31 = vsub.f32 %v10320_v34, %v19147_v51  ;;  %v19233_v10 = vand.u32 4294901760, %v10782_v1 }
 0x1c3   :  { %16996 = vmatpush3.msra.mxu0 %v19013_v13  ;;  %16997 = vmatprep.mubr.msk.f32.mxu0 %vm17547_vm1, %v17546_v28 }
 0x1c4   :  { %17031 = vmatpush3.msra.mxu1 %v19013_v13  ;;  %17032 = vmatprep.mubr.msk.f32.mxu1 %vm17547_vm1, %v17546_v28  ;;  %v4940_v20 = vpop.f32.mrf.mxu0  ;;  %v10439_v13 = vand.u32 4294901760, %v10438_v8  ;;  %v10391_v30 = vand.u32 4294901760, %v19166_v31  ;;  %v8007_v8 = vld [vmem:[%s20235_s7 + $0x70] sm:$0xff] }
 0x1c5   :  { %16998 = vmatmul.mubr.f32.vlgmr.msra.gmra.mxu0 %v9931_v24  ;;  %17007 = vmatprep.subr.mxu0 %v17546_v28  ;;  %v4941_v62 = vadd.f32 %v4940_v20, %v4865_v54  ;;  %v19246_v20 = vand.u32 4294901760, %v8007_v8 }
 0x1c6   :  { %17033 = vmatmul.mubr.f32.vlgmr.msra.gmra.mxu1 %v19072_v45  ;;  %17042 = vmatprep.subr.mxu1 %v17546_v28  ;;  %v16551_v6 = vpop.f32.mrf.mxu0 }
 0x1c7   :  { %17008 = vmatpush3.msra.mxu0 %v19022_v16  ;;  %17043 = vmatpush3.msra.mxu1 %v10432_v44  ;;  %v5016_v32 = vadd.f32 %v5015_v57, %v4941_v62  ;;  %v10899_v16 = vand.u32 4294901760, %v19182_v43 }
 0x1c8   :  { %17009 = vmatprep.subr.mxu0 %v17546_v28  ;;  %17044 = vmatprep.subr.mxu1 %v17546_v28  ;;  %v5326_v2 = vpop.f32.mrf.mxu1 }
 0x1c9   :  { %17010 = vmatpush3.msra.mxu0 %v19030_v27  ;;  %17011 = vmatprep.mubr.msk.f32.mxu0 %vm17547_vm1, %v17546_v28  ;;  %v10893_v27 = vsub.f32 %v19172_v11, %v10892_v53  ;;  %v10900_v7 = vsub.f32 %v19182_v43, %v10899_v16 }
 0x1ca   :  { %17045 = vmatpush3.msra.mxu1 %v10439_v13  ;;  %17046 = vmatprep.mubr.msk.f32.mxu1 %vm17547_vm1, %v17546_v28  ;;  %v16586_v39 = vpop.f32.mrf.mxu1  ;;  %v5092_v61 = vpop.f32.mrf.mxu0  ;;  %v19250_v13 = vsub.f32 %v10782_v1, %v19233_v10 }
 0x1cb   :  { %17012 = vmatmul.mubr.f32.vlgmr.msra.gmra.mxu0 %v19088_v14  ;;  %17021 = vmatprep.subr.mxu0 %v17546_v28  ;;  %v5093_v42 = vadd.f32 %v5092_v61, %v5016_v32  ;;  %v10894_v23 = vand.u32 4294901760, %v10893_v27  ;;  %v19265_v39 = vsub.f32 %v8007_v8, %v19246_v20  ;;  %v4223_v61 = vld [vmem:[%s20230_s2 + $0x10] sm:$0xff] }
 0x1cc   :  { %17047 = vmatmul.mubr.f32.vlgmr.msra.gmra.mxu1 %v19147_v51  ;;  %17056 = vmatprep.subr.mxu1 %v17546_v28  ;;  %v19187_v12 = vpop.f32.mrf.mxu1  ;;  %v16565_v46 = vpop.f32.mrf.mxu0 }
 0x1cd   :  { %17022 = vmatpush3.msra.mxu0 %v9968_v58  ;;  %17057 = vmatpush3.msra.mxu1 %v19075_v40  ;;  %v5166_v26 = vadd.f32 %v5165_v37, %v5093_v42  ;;  %v10392_v58 = vsub.f32 %v19166_v31, %v10391_v30 }
 0x1ce   :  { %17023 = vmatprep.subr.mxu0 %v17546_v28  ;;  %17058 = vmatprep.subr.mxu1 %v17546_v28  ;;  %v16600_v14 = vpop.f32.mrf.mxu1 }
 0x1cf   :  { %17024 = vmatpush3.msra.mxu0 %v9975_v50  ;;  %17025 = vmatprep.mubr.msk.f32.mxu0 %vm17547_vm1, %v17546_v28  ;;  %v7942_v59 = vsub.f32 %v4222_v3, %v5166_v26  ;;  %v10393_v37 = vand.u32 4294901760, %v10392_v58  ;;  %v10853_v3 = vand.u32 4294901760, %v19250_v13  ;;  %v11244_v58 = vsel %vm65_vm0, %v18732_v33, 0 }
 0x1d0   :  { %17059 = vmatpush3.msra.mxu1 %v19085_v49  ;;  %17060 = vmatprep.mubr.msk.f32.mxu1 %vm17547_vm1, %v17546_v28 }
 0x1d1   :  { %17026 = vmatmul.mubr.f32.vlgmr.msra.gmra.mxu0 %v19072_v45  ;;  %17035 = vmatprep.subr.mxu0 %v17546_v28  ;;  %v7950_v50 = vmul.f32 %v7942_v59, %v7942_v59  ;;  %v5245_v35 = vpop.f32.mrf.mxu0 }
 0x1d2   :  { %17061 = vmatmul.mubr.f32.vlgmr.msra.gmra.mxu1 %v10391_v30  ;;  %17070 = vmatprep.subr.mxu1 %v17546_v28  ;;  %v5327_v0 = vadd.f32 %v5326_v2, %v5245_v35  ;;  %v5627_v57 = vpop.f32.mrf.mxu1 }
 0x1d3   :  { %17036 = vmatpush3.msra.mxu0 %v19075_v40  ;;  %17071 = vmatpush3.msra.mxu1 %v19075_v40  ;;  %v7959_v45 = vsel %vm7957_vm2, %v7950_v50, 0.0  ;;  %v16579_v41 = vpop.f32.mrf.mxu0  ;;  %v8008_v40 = vld [vmem:[%s20235_s7 + $0x78] sm:$0xff]  ;;  %v11758_v50 = vld [vmem:[%s20236_s8 + $0x8] sm:$0xff] }
 0x1d4   :  { %17037 = vmatprep.subr.mxu0 %v17546_v28  ;;  %17072 = vmatprep.subr.mxu1 %v17546_v28  ;;  %v19225_v25 = vadd.f32 %v7959_v45, %v7958_v22  ;;  %v16614_v54 = vpop.f32.mrf.mxu1  ;;  %v19236_v34 = vand.u32 4294901760, %v8008_v40  ;;  %v19314_v22 = vand.u32 4294901760, %v11244_v58  ;;  %v19317_v45 = vand.u32 4294901760, %v11758_v50  ;;  %v11757_v41 = vld [vmem:[%s20236_s8] sm:$0xff] }
 0x1d5   :  { %17038 = vmatpush3.msra.mxu0 %v19085_v49  ;;  %17039 = vmatprep.mubr.msk.f32.mxu0 %vm17547_vm1, %v17546_v28 }
 0x1d6   :  { %17073 = vmatpush3.msra.mxu1 %v19085_v49  ;;  %17074 = vmatprep.mubr.msk.f32.mxu1 %vm17547_vm1, %v17546_v28  ;;  %v10901_v49 = vand.u32 4294901760, %v10900_v7  ;;  %v19256_v6 = vsub.f32 %v8008_v40, %v19236_v34  ;;  %v19336_v8 = vsub.f32 %v11758_v50, %v19317_v45 }
 0x1d7   :  { %17040 = vmatmul.mubr.f32.vlgmr.msra.gmra.mxu0 %v10393_v37  ;;  %17049 = vmatprep.subr.mxu0 %v17546_v28  ;;  %v5402_v48 = vpop.f32.mrf.mxu0 }
 0x1d8   :  { %17075 = vmatmul.mubr.f32.vlgmr.msra.gmra.mxu1 %v19147_v51  ;;  %17084 = vmatprep.subr.mxu1 %v17546_v28  ;;  %v5403_v24 = vadd.f32 %v5402_v48, %v5327_v0 }
 0x1d9   :  { %17050 = vmatpush3.msra.mxu0 %v19094_v17  ;;  %17085 = vmatpush3.msra.mxu1 %v10894_v23  ;;  %v16593_v44 = vpop.f32.mrf.mxu0  ;;  %v11361_v17 = vand.u32 4294901760, %v19265_v39  ;;  %v19330_v23 = vsub.f32 %v11244_v58, %v19314_v22 }
 0x1da   :  { %17051 = vmatprep.subr.mxu0 %v17546_v28  ;;  %17086 = vmatprep.subr.mxu1 %v17546_v28  ;;  %v5788_v29 = vpop.f32.mrf.mxu1  ;;  %v5478_v62 = vadd.f32 %v19187_v12, %v5403_v24 }
 0x1db   :  { %17052 = vmatpush3.msra.mxu0 %v19105_v36  ;;  %17053 = vmatprep.mubr.msk.f32.mxu0 %vm17547_vm1, %v17546_v28  ;;  %v11362_v27 = vsub.f32 %v19265_v39, %v11361_v17 }
 0x1dc   :  { %17087 = vmatpush3.msra.mxu1 %v10901_v49  ;;  %17088 = vmatprep.mubr.msk.f32.mxu1 %vm17547_vm1, %v17546_v28  ;;  %v16628_v32 = vpop.f32.mrf.mxu1  ;;  %v5554_v60 = vpop.f32.mrf.mxu0 }
 0x1dd   :  { %17054 = vmatmul.mubr.f32.vlgmr.msra.gmra.mxu0 %v19166_v31  ;;  %17063 = vmatprep.subr.mxu0 %v17546_v28  ;;  %v5555_v2 = vadd.f32 %v5554_v60, %v5478_v62  ;;  %v11354_v31 = vand.u32 4294901760, %v19256_v6  ;;  %v4130_v60 = vld [vmem:[%s20229_s1] sm:$0xff] }
 0x1de   :  { %17089 = vmatmul.mubr.f32.vlgmr.msra.gmra.mxu1 %v19233_v10  ;;  %17098 = vmatprep.subr.mxu1 %v17546_v28  ;;  %v5939_v5 = vpop.f32.mrf.mxu1  ;;  %v16607_v42 = vpop.f32.mrf.mxu0 }
 0x1df   :  { %17064 = vmatpush3.msra.mxu0 %v10430_v47  ;;  %17099 = vmatpush3.msra.mxu1 %v19150_v15  ;;  %v5628_v12 = vadd.f32 %v5627_v57, %v5555_v2  ;;  %v10854_v47 = vsub.f32 %v19250_v13, %v10853_v3  ;;  %v11355_v36 = vsub.f32 %v19256_v6, %v11354_v31  ;;  %v11315_v2 = vand.u32 4294901760, %v19330_v23 }
 0x1e0   :  { %17065 = vmatprep.subr.mxu0 %v17546_v28  ;;  %17100 = vmatprep.subr.mxu1 %v17546_v28  ;;  %v16642_v46 = vpop.f32.mrf.mxu1 }
 0x1e1   :  { %17066 = vmatpush3.msra.mxu0 %v10437_v63  ;;  %17067 = vmatprep.mubr.msk.f32.mxu0 %vm17547_vm1, %v17546_v28  ;;  %v7943_v30 = vsub.f32 %v4223_v61, %v5628_v12  ;;  %v10855_v0 = vand.u32 4294901760, %v10854_v47  ;;  %v11356_v57 = vand.u32 4294901760, %v11355_v36  ;;  %v11884_v61 = vand.u32 4294901760, %v19336_v8  ;;  %v17509_v12 = vld [vmem:[%s20228_s0] sm:$0xff] }
 0x1e2   :  { %17101 = vmatpush3.msra.mxu1 %v19160_v21  ;;  %17102 = vmatprep.mubr.msk.f32.mxu1 %vm17547_vm1, %v17546_v28  ;;  %v4146_v46 = vsub.f32 %v4130_v60, %v17509_v12 }
 0x1e3   :  { %17068 = vmatmul.mubr.f32.vlgmr.msra.gmra.mxu0 %v19147_v51  ;;  %17077 = vmatprep.subr.mxu0 %v17546_v28  ;;  %v7951_v63 = vmul.f32 %v7943_v30, %v7943_v30  ;;  %v5707_v26 = vpop.f32.mrf.mxu0  ;;  %v11773_v30 = vrot.slane %v18252_v52, 4  ;;  %v11885_v47 = vsub.f32 %v19336_v8, %v11884_v61  ;;  %v4132_v52 = vld [vmem:[%s20229_s1 + $0x10] sm:$0xff] }
 0x1e4   :  { %17103 = vmatmul.mubr.f32.vlgmr.msra.gmra.mxu1 %v10853_v3  ;;  %17112 = vmatprep.subr.mxu1 %v17546_v28  ;;  %v5789_v14 = vadd.f32 %v5788_v29, %v5707_v26  ;;  %v6089_v56 = vpop.f32.mrf.mxu1  ;;  %v4224_v29 = vld [vmem:[%s20230_s2 + $0x18] sm:$0xff] }
 0x1e5   :  { %17078 = vmatpush3.msra.mxu0 %v19150_v15  ;;  %17113 = vmatpush3.msra.mxu1 %v19150_v15  ;;  %v7961_v59 = vsel %vm7957_vm2, %v7951_v63, 0.0  ;;  %v16621_v51 = vpop.f32.mrf.mxu0 }
 0x1e6   :  { %17079 = vmatprep.subr.mxu0 %v17546_v28  ;;  %17114 = vmatprep.subr.mxu1 %v17546_v28  ;;  %v19306_v15 = vadd.f32 %v7961_v59, %v19225_v25  ;;  %v16656_v35 = vpop.f32.mrf.mxu1  ;;  %v19327_v25 = vand.u32 4294901760, %v11757_v41  ;;  %v11774_v51 = vsel %vm65_vm0, %v11773_v30, 0 }
 0x1e7   :  { %17080 = vmatpush3.msra.mxu0 %v19160_v21  ;;  %17081 = vmatprep.mubr.msk.f32.mxu0 %vm17547_vm1, %v17546_v28  ;;  %v4162_v35 = vmul.f32 %v4146_v46, %v4146_v46  ;;  %v4225_v46 = vld [vmem:[%s20230_s2 + $0x20] sm:$0xff] }
 0x1e8   :  { %17115 = vmatpush3.msra.mxu1 %v19160_v21  ;;  %17116 = vmatprep.mubr.msk.f32.mxu1 %vm17547_vm1, %v17546_v28  ;;  %v11363_v21 = vand.u32 4294901760, %v11362_v27  ;;  %v19345_v44 = vsub.f32 %v11757_v41, %v19327_v25  ;;  %v11760_v27 = vld [vmem:[%s20236_s8 + $0x18] sm:$0xff] }
 0x1e9   :  { %17082 = vmatmul.mubr.f32.vlgmr.msra.gmra.mxu0 %v10855_v0  ;;  %17091 = vmatprep.subr.mxu0 %v17546_v28  ;;  %v5864_v1 = vpop.f32.mrf.mxu0  ;;  %v17510_v0 = vld [vmem:[%s20228_s0 + $0x10] sm:$0xff] }
 0x1ea   :  { %17117 = vmatmul.mubr.f32.vlgmr.msra.gmra.mxu1 %v19233_v10  ;;  %17126 = vmatprep.subr.mxu1 %v17546_v28  ;;  %v5865_v7 = vadd.f32 %v5864_v1, %v5789_v14  ;;  %v11886_v1 = vand.u32 4294901760, %v11885_v47 }
 0x1eb   :  { %17092 = vmatpush3.msra.mxu0 %v19172_v11  ;;  %17127 = vmatpush3.msra.mxu1 %v11356_v57  ;;  %v16635_v40 = vpop.f32.mrf.mxu0  ;;  %v17508_v11 = vld [vmem:[%s20228_s0 + $0x8] sm:$0xff]  ;;  %v4148_v57 = vsub.f32 %v4132_v52, %v17510_v0 }
 0x1ec   :  { %17093 = vmatprep.subr.mxu0 %v17546_v28  ;;  %17128 = vmatprep.subr.mxu1 %v17546_v28  ;;  %v6250_v54 = vpop.f32.mrf.mxu1  ;;  %v5940_v37 = vadd.f32 %v5939_v5, %v5865_v7  ;;  %v11759_v7 = vld [vmem:[%s20236_s8 + $0x10] sm:$0xff] }
 0x1ed   :  { %17094 = vmatpush3.msra.mxu0 %v19182_v43  ;;  %17095 = vmatprep.mubr.msk.f32.mxu0 %vm17547_vm1, %v17546_v28  ;;  %v11891_v43 = vand.u32 4294901760, %v19345_v44 }
 0x1ee   :  { %17129 = vmatpush3.msra.mxu1 %v11363_v21  ;;  %17130 = vmatprep.mubr.msk.f32.mxu1 %vm17547_vm1, %v17546_v28  ;;  %v16670_v48 = vpop.f32.mrf.mxu1  ;;  %v6016_v49 = vpop.f32.mrf.mxu0  ;;  %v19419_v21 = vand.u32 4294901760, %v11760_v27 }
 0x1ef   :  { %17096 = vmatmul.mubr.f32.vlgmr.msra.gmra.mxu0 %v19250_v13  ;;  %17105 = vmatprep.subr.mxu0 %v17546_v28  ;;  %v6017_v24 = vadd.f32 %v6016_v49, %v5940_v37  ;;  %v4131_v13 = vld [vmem:[%s20229_s1 + $0x8] sm:$0xff]  ;;  %v11892_v58 = vsub.f32 %v19345_v44, %v11891_v43  ;;  %v4164_v48 = vmul.f32 %v4148_v57, %v4148_v57  ;;  %v4178_v49 = vsel %vm65_vm0, %v4162_v35, 0.0 }
 0x1f0   :  { %17131 = vmatmul.mubr.f32.vlgmr.msra.gmra.mxu1 %v19314_v22  ;;  %17140 = vmatprep.subr.mxu1 %v17546_v28  ;;  %v19350_v62 = vpop.f32.mrf.mxu1  ;;  %v16649_v32 = vpop.f32.mrf.mxu0 }
 0x1f1   :  { %17106 = vmatpush3.msra.mxu0 %v10892_v53  ;;  %17141 = vmatpush3.msra.mxu1 %v19236_v34  ;;  %v6090_v5 = vadd.f32 %v6089_v56, %v6017_v24  ;;  %v4147_v53 = vsub.f32 %v4131_v13, %v17508_v11 }
 0x1f2   :  { %17107 = vmatprep.subr.mxu0 %v17546_v28  ;;  %17142 = vmatprep.subr.mxu1 %v17546_v28  ;;  %v16684_v42 = vpop.f32.mrf.mxu1 }
 0x1f3   :  { %17108 = vmatpush3.msra.mxu0 %v10899_v16  ;;  %17109 = vmatprep.mubr.msk.f32.mxu0 %vm17547_vm1, %v17546_v28  ;;  %v7944_v3 = vsub.f32 %v4224_v29, %v6090_v5  ;;  %v11316_v16 = vsub.f32 %v19330_v23, %v11315_v2  ;;  %v4163_v59 = vmul.f32 %v4147_v53, %v4147_v53  ;;  %v19431_v29 = vand.u32 4294901760, %v11759_v7 }
 0x1f4   :  { %17143 = vmatpush3.msra.mxu1 %v19246_v20  ;;  %17144 = vmatprep.mubr.msk.f32.mxu1 %vm17547_vm1, %v17546_v28  ;;  %v19441_v5 = vsub.f32 %v11760_v27, %v19419_v21  ;;  %v4181_v42 = vsel %vm65_vm0, %v4164_v48, 0.0 }
 0x1f5   :  { %17110 = vmatmul.mubr.f32.vlgmr.msra.gmra.mxu0 %v19233_v10  ;;  %17119 = vmatprep.subr.mxu0 %v17546_v28  ;;  %v7952_v36 = vmul.f32 %v7944_v3, %v7944_v3  ;;  %v6169_v63 = vpop.f32.mrf.mxu0  ;;  %v11317_v41 = vand.u32 4294901760, %v11316_v16  ;;  %v4179_v24 = vsel %vm65_vm0, %v4163_v59, 0.0  ;;  %v19453_v12 = vsub.f32 %v11759_v7, %v19431_v29 }
 0x1f6   :  { %17145 = vmatmul.mubr.f32.vlgmr.msra.gmra.mxu1 %v11315_v2  ;;  %17154 = vmatprep.subr.mxu1 %v17546_v28  ;;  %v6251_v26 = vadd.f32 %v6250_v54, %v6169_v63  ;;  %v19390_v14 = vpop.f32.mrf.mxu1  ;;  %v4180_v60 = vadd.f32 %v4179_v24, %v4178_v49 }
 0x1f7   :  { %17120 = vmatpush3.msra.mxu0 %v19236_v34  ;;  %17155 = vmatpush3.msra.mxu1 %v19236_v34  ;;  %v7963_v10 = vsel %vm7957_vm2, %v7952_v36, 0.0  ;;  %v16663_v56 = vpop.f32.mrf.mxu0 }
 0x1f8   :  { %17121 = vmatprep.subr.mxu0 %v17546_v28  ;;  %17156 = vmatprep.subr.mxu1 %v17546_v28  ;;  %v19405_v34 = vadd.f32 %v7963_v10, %v19306_v15  ;;  %v16698_v50 = vpop.f32.mrf.mxu1  ;;  %v19416_v15 = vand.u32 4294901760, %v11774_v51  ;;  %v19446_v11 = vadd.f32 %v4181_v42, %v4180_v60  ;;  %v4226_v60 = vld [vmem:[%s20230_s2 + $0x28] sm:$0xff] }
 0x1f9   :  { %17122 = vmatpush3.msra.mxu0 %v19246_v20  ;;  %17123 = vmatprep.mubr.msk.f32.mxu0 %vm17547_vm1, %v17546_v28 }
 0x1fa   :  { %17157 = vmatpush3.msra.mxu1 %v19246_v20  ;;  %17158 = vmatprep.mubr.msk.f32.mxu1 %vm17547_vm1, %v17546_v28  ;;  %v11893_v20 = vand.u32 4294901760, %v11892_v58  ;;  %v19435_v2 = vsub.f32 %v11774_v51, %v19416_v15  ;;  %v11762_v58 = vld [vmem:[%s20236_s8 + $0x28] sm:$0xff] }
 0x1fb   :  { %17124 = vmatmul.mubr.f32.vlgmr.msra.gmra.mxu0 %v11317_v41  ;;  %17133 = vmatprep.subr.mxu0 %v17546_v28  ;;  %v6326_v40 = vpop.f32.mrf.mxu0  ;;  %v19506_v57 = vand.u32 4294901760, %v11762_v58 }
 0x1fc   :  { %17159 = vmatmul.mubr.f32.vlgmr.msra.gmra.mxu1 %v19314_v22  ;;  %17168 = vmatprep.subr.mxu1 %v17546_v28  ;;  %v6327_v54 = vadd.f32 %v6326_v40, %v6251_v26  ;;  %v11845_v47 = vand.u32 4294901760, %v19435_v2 }
 0x1fd   :  { %17134 = vmatpush3.msra.mxu0 %v19256_v6  ;;  %17169 = vmatpush3.msra.mxu1 %v11886_v1  ;;  %v16677_v37 = vpop.f32.mrf.mxu0  ;;  %v12235_v6 = vrot.slane %v18296_v19, 4  ;;  %v19525_v48 = vsub.f32 %v11762_v58, %v19506_v57 }
 0x1fe   :  { %17135 = vmatprep.subr.mxu0 %v17546_v28  ;;  %17170 = vmatprep.subr.mxu1 %v17546_v28  ;;  %v6712_v32 = vpop.f32.mrf.mxu1  ;;  %v6402_v13 = vadd.f32 %v19350_v62, %v6327_v54  ;;  %v11846_v26 = vsub.f32 %v19435_v2, %v11845_v47 }
 0x1ff   :  { %17136 = vmatpush3.msra.mxu0 %v19265_v39  ;;  %17137 = vmatprep.mubr.msk.f32.mxu0 %vm17547_vm1, %v17546_v28  ;;  %v12236_v59 = vsel %vm65_vm0, %v12235_v6, 0 }
 0x200   :  { %17171 = vmatpush3.msra.mxu1 %v11893_v20  ;;  %17172 = vmatprep.mubr.msk.f32.mxu1 %vm17547_vm1, %v17546_v28  ;;  %v16712_v3 = vpop.f32.mrf.mxu1  ;;  %v6478_v62 = vpop.f32.mrf.mxu0  ;;  %v11847_v50 = vand.u32 4294901760, %v11846_v26  ;;  %v19503_v0 = vand.u32 4294901760, %v12236_v59  ;;  %v11764_v26 = vld [vmem:[%s20236_s8 + $0x38] sm:$0xff] }
 0x201   :  { %17138 = vmatmul.mubr.f32.vlgmr.msra.gmra.mxu0 %v19330_v23  ;;  %17147 = vmatprep.subr.mxu0 %v17546_v28  ;;  %v6479_v53 = vadd.f32 %v6478_v62, %v6402_v13  ;;  %v12346_v23 = vand.u32 4294901760, %v19441_v5 }
 0x202   :  { %17173 = vmatmul.mubr.f32.vlgmr.msra.gmra.mxu1 %v19416_v15  ;;  %17182 = vmatprep.subr.mxu1 %v17546_v28  ;;  %v6863_v30 = vpop.f32.mrf.mxu1  ;;  %v16691_v16 = vpop.f32.mrf.mxu0  ;;  %v19519_v37 = vsub.f32 %v12236_v59, %v19503_v0 }
 0x203   :  { %17148 = vmatpush3.msra.mxu0 %v11354_v31  ;;  %17183 = vmatpush3.msra.mxu1 %v19317_v45  ;;  %v6552_v36 = vadd.f32 %v19390_v14, %v6479_v53  ;;  %v12353_v31 = vand.u32 4294901760, %v19453_v12  ;;  %v12347_v39 = vsub.f32 %v19441_v5, %v12346_v23 }
 0x204   :  { %17149 = vmatprep.subr.mxu0 %v17546_v28  ;;  %17184 = vmatprep.subr.mxu1 %v17546_v28  ;;  %v16726_v63 = vpop.f32.mrf.mxu1  ;;  %v12307_v62 = vand.u32 4294901760, %v19519_v37 }
 0x205   :  { %17150 = vmatpush3.msra.mxu0 %v11361_v17  ;;  %17151 = vmatprep.mubr.msk.f32.mxu0 %vm17547_vm1, %v17546_v28  ;;  %v7945_v52 = vsub.f32 %v4225_v46, %v6552_v36  ;;  %v12354_v51 = vsub.f32 %v19453_v12, %v12353_v31  ;;  %v12348_v35 = vand.u32 4294901760, %v12347_v39 }
 0x206   :  { %17185 = vmatpush3.msra.mxu1 %v19327_v25  ;;  %17186 = vmatprep.mubr.msk.f32.mxu1 %vm17547_vm1, %v17546_v28  ;;  %v12308_v16 = vsub.f32 %v19519_v37, %v12307_v62 }
 0x207   :  { %17152 = vmatmul.mubr.f32.vlgmr.msra.gmra.mxu0 %v19314_v22  ;;  %17161 = vmatprep.subr.mxu0 %v17546_v28  ;;  %v7953_v17 = vmul.f32 %v7945_v52, %v7945_v52  ;;  %v6631_v14 = vpop.f32.mrf.mxu0 }
 0x208   :  { %17187 = vmatmul.mubr.f32.vlgmr.msra.gmra.mxu1 %v11845_v47  ;;  %17196 = vmatprep.subr.mxu1 %v17546_v28  ;;  %v6713_v19 = vadd.f32 %v6712_v32, %v6631_v14  ;;  %v7013_v10 = vpop.f32.mrf.mxu1 }
 0x209   :  { %17162 = vmatpush3.msra.mxu0 %v19317_v45  ;;  %17197 = vmatpush3.msra.mxu1 %v19317_v45  ;;  %v7965_v56 = vsel %vm7957_vm2, %v7953_v17, 0.0  ;;  %v16705_v22 = vpop.f32.mrf.mxu0  ;;  %v12309_v17 = vand.u32 4294901760, %v12308_v16 }
 0x20a   :  { %17163 = vmatprep.subr.mxu0 %v17546_v28  ;;  %17198 = vmatprep.subr.mxu1 %v17546_v28  ;;  %v16740_v27 = vpop.f32.mrf.mxu1  ;;  %v19495_v45 = vadd.f32 %v7965_v56, %v19405_v34  ;;  %v11761_v34 = vld [vmem:[%s20236_s8 + $0x20] sm:$0xff]  ;;  %v11763_v56 = vld [vmem:[%s20236_s8 + $0x30] sm:$0xff] }
 0x20b   :  { %17164 = vmatpush3.msra.mxu0 %v19327_v25  ;;  %17165 = vmatprep.mubr.msk.f32.mxu0 %vm17547_vm1, %v17546_v28  ;;  %v19516_v40 = vand.u32 4294901760, %v11761_v34  ;;  %v19596_v58 = vand.u32 4294901760, %v11763_v56 }
 0x20c   :  { %17199 = vmatpush3.msra.mxu1 %v19327_v25  ;;  %17200 = vmatprep.mubr.msk.f32.mxu1 %vm17547_vm1, %v17546_v28  ;;  %v12355_v25 = vand.u32 4294901760, %v12354_v51 }
 0x20d   :  { %17166 = vmatmul.mubr.f32.vlgmr.msra.gmra.mxu0 %v11847_v50  ;;  %17175 = vmatprep.subr.mxu0 %v17546_v28  ;;  %v6788_v41 = vpop.f32.mrf.mxu0  ;;  %v19534_v13 = vsub.f32 %v11761_v34, %v19516_v40 }
 0x20e   :  { %17201 = vmatmul.mubr.f32.vlgmr.msra.gmra.mxu1 %v19416_v15  ;;  %17210 = vmatprep.subr.mxu1 %v17546_v28  ;;  %v6789_v1 = vadd.f32 %v6788_v41, %v6713_v19 }
 0x20f   :  { %17176 = vmatpush3.msra.mxu0 %v19336_v8  ;;  %17211 = vmatpush3.msra.mxu1 %v12348_v35  ;;  %v16719_v7 = vpop.f32.mrf.mxu0  ;;  %v12697_v8 = vrot.slane %v18364_v9, 4 }
 0x210   :  { %17177 = vmatprep.subr.mxu0 %v17546_v28  ;;  %17212 = vmatprep.subr.mxu1 %v17546_v28  ;;  %v7174_v20 = vpop.f32.mrf.mxu1  ;;  %v6864_v54 = vadd.f32 %v6863_v30, %v6789_v1  ;;  %v19614_v1 = vsub.f32 %v11763_v56, %v19596_v58  ;;  %v4227_v7 = vld [vmem:[%s20230_s2 + $0x30] sm:$0xff] }
 0x211   :  { %17178 = vmatpush3.msra.mxu0 %v19345_v44  ;;  %17179 = vmatprep.mubr.msk.f32.mxu0 %vm17547_vm1, %v17546_v28  ;;  %v12698_v52 = vsel %vm65_vm0, %v12697_v8, 0  ;;  %v11766_v8 = vld [vmem:[%s20236_s8 + $0x48] sm:$0xff] }
 0x212   :  { %17213 = vmatpush3.msra.mxu1 %v12355_v25  ;;  %17214 = vmatprep.mubr.msk.f32.mxu1 %vm17547_vm1, %v17546_v28  ;;  %v16754_v49 = vpop.f32.mrf.mxu1  ;;  %v6940_v24 = vpop.f32.mrf.mxu0  ;;  %v19583_v19 = vand.u32 4294901760, %v12698_v52 }
 0x213   :  { %17180 = vmatmul.mubr.f32.vlgmr.msra.gmra.mxu0 %v19435_v2  ;;  %17189 = vmatprep.subr.mxu0 %v17546_v28  ;;  %v6941_v32 = vadd.f32 %v6940_v24, %v6864_v54  ;;  %v12808_v2 = vand.u32 4294901760, %v19525_v48 }
 0x214   :  { %17215 = vmatmul.mubr.f32.vlgmr.msra.gmra.mxu1 %v19503_v0  ;;  %17224 = vmatprep.subr.mxu1 %v17546_v28  ;;  %v7325_v42 = vpop.f32.mrf.mxu1  ;;  %v16733_v3 = vpop.f32.mrf.mxu0  ;;  %v19599_v50 = vsub.f32 %v12698_v52, %v19583_v19 }
 0x215   :  { %17190 = vmatpush3.msra.mxu0 %v11884_v61  ;;  %17225 = vmatpush3.msra.mxu1 %v19419_v21  ;;  %v7014_v53 = vadd.f32 %v7013_v10, %v6941_v32  ;;  %v12815_v61 = vand.u32 4294901760, %v19534_v13  ;;  %v12809_v44 = vsub.f32 %v19525_v48, %v12808_v2  ;;  %v19586_v10 = vand.u32 4294901760, %v11764_v26 }
 0x216   :  { %17191 = vmatprep.subr.mxu0 %v17546_v28  ;;  %17226 = vmatprep.subr.mxu1 %v17546_v28  ;;  %v16768_v46 = vpop.f32.mrf.mxu1  ;;  %v12769_v49 = vand.u32 4294901760, %v19599_v50 }
 0x217   :  { %17192 = vmatpush3.msra.mxu0 %v11891_v43  ;;  %17193 = vmatprep.mubr.msk.f32.mxu0 %vm17547_vm1, %v17546_v28  ;;  %v7946_v30 = vsub.f32 %v4226_v60, %v7014_v53  ;;  %v12816_v6 = vsub.f32 %v19534_v13, %v12815_v61  ;;  %v12810_v14 = vand.u32 4294901760, %v12809_v44  ;;  %v19605_v35 = vsub.f32 %v11764_v26, %v19586_v10 }
 0x218   :  { %17227 = vmatpush3.msra.mxu1 %v19431_v29  ;;  %17228 = vmatprep.mubr.msk.f32.mxu1 %vm17547_vm1, %v17546_v28 }
 0x219   :  { %17194 = vmatmul.mubr.f32.vlgmr.msra.gmra.mxu0 %v19416_v15  ;;  %17203 = vmatprep.subr.mxu0 %v17546_v28  ;;  %v7954_v43 = vmul.f32 %v7946_v30, %v7946_v30  ;;  %v7093_v47 = vpop.f32.mrf.mxu0 }
 0x21a   :  { %17229 = vmatmul.mubr.f32.vlgmr.msra.gmra.mxu1 %v12307_v62  ;;  %17238 = vmatprep.subr.mxu1 %v17546_v28  ;;  %v7175_v9 = vadd.f32 %v7174_v20, %v7093_v47  ;;  %v7475_v36 = vpop.f32.mrf.mxu1 }
 0x21b   :  { %17204 = vmatpush3.msra.mxu0 %v19419_v21  ;;  %17239 = vmatpush3.msra.mxu1 %v19419_v21  ;;  %v16747_v63 = vpop.f32.mrf.mxu0  ;;  %v7967_v15 = vsel %vm7957_vm2, %v7954_v43, 0.0 }
 0x21c   :  { %17205 = vmatprep.subr.mxu0 %v17546_v28  ;;  %17240 = vmatprep.subr.mxu1 %v17546_v28  ;;  %v16782_v39 = vpop.f32.mrf.mxu1  ;;  %v19575_v21 = vadd.f32 %v7967_v15, %v19495_v45 }
 0x21d   :  { %17206 = vmatpush3.msra.mxu0 %v19431_v29  ;;  %17207 = vmatprep.mubr.msk.f32.mxu0 %vm17547_vm1, %v17546_v28 }
 0x21e   :  { %17241 = vmatpush3.msra.mxu1 %v19431_v29  ;;  %17242 = vmatprep.mubr.msk.f32.mxu1 %vm17547_vm1, %v17546_v28  ;;  %v12817_v29 = vand.u32 4294901760, %v12816_v6 }
 0x21f   :  { %17208 = vmatmul.mubr.f32.vlgmr.msra.gmra.mxu0 %v12309_v17  ;;  %17217 = vmatprep.subr.mxu0 %v17546_v28  ;;  %v7250_v22 = vpop.f32.mrf.mxu0 }
 0x220   :  { %17243 = vmatmul.mubr.f32.vlgmr.msra.gmra.mxu1 %v19503_v0  ;;  %17252 = vmatprep.subr.mxu1 %v17546_v28  ;;  %v7251_v59 = vadd.f32 %v7250_v22, %v7175_v9  ;;  %v19666_v9 = vand.u32 4294901760, %v11766_v8 }
 0x221   :  { %17218 = vmatpush3.msra.mxu0 %v19441_v5  ;;  %17253 = vmatpush3.msra.mxu1 %v12810_v14  ;;  %v16761_v51 = vpop.f32.mrf.mxu0  ;;  %v13159_v5 = vrot.slane %v18436_v55, 4 }
 0x222   :  { %17219 = vmatprep.subr.mxu0 %v17546_v28  ;;  %17254 = vmatprep.subr.mxu1 %v17546_v28  ;;  %v7636_v27 = vpop.f32.mrf.mxu1  ;;  %v7326_v45 = vadd.f32 %v7325_v42, %v7251_v59  ;;  %v12770_v42 = vsub.f32 %v19599_v50, %v12769_v49  ;;  %v19685_v14 = vsub.f32 %v11766_v8, %v19666_v9 }
 0x223   :  { %17220 = vmatpush3.msra.mxu0 %v19453_v12  ;;  %17221 = vmatprep.mubr.msk.f32.mxu0 %vm17547_vm1, %v17546_v28  ;;  %v13160_v46 = vsel %vm65_vm0, %v13159_v5, 0 }
 0x224   :  { %17255 = vmatpush3.msra.mxu1 %v12817_v29  ;;  %17256 = vmatprep.mubr.msk.f32.mxu1 %vm17547_vm1, %v17546_v28  ;;  %v16796_v34 = vpop.f32.mrf.mxu1  ;;  %v7402_v41 = vpop.f32.mrf.mxu0  ;;  %v12771_v44 = vand.u32 4294901760, %v12770_v42  ;;  %v19663_v47 = vand.u32 4294901760, %v13160_v46 }
 0x225   :  { %17222 = vmatmul.mubr.f32.vlgmr.msra.gmra.mxu0 %v19519_v37  ;;  %17231 = vmatprep.subr.mxu0 %v17546_v28  ;;  %v7403_v25 = vadd.f32 %v7402_v41, %v7326_v45  ;;  %v13270_v37 = vand.u32 4294901760, %v19605_v35  ;;  %v4228_v45 = vld [vmem:[%s20230_s2 + $0x38] sm:$0xff] }
 0x226   :  { %17257 = vmatmul.mubr.f32.vlgmr.msra.gmra.mxu1 %v19583_v19  ;;  %17266 = vmatprep.subr.mxu1 %v17546_v28  ;;  %v7787_v20 = vpop.f32.mrf.mxu1  ;;  %v16775_v54 = vpop.f32.mrf.mxu0  ;;  %v19679_v17 = vsub.f32 %v13160_v46, %v19663_v47 }
 0x227   :  { %17232 = vmatpush3.msra.mxu0 %v12346_v23  ;;  %17267 = vmatpush3.msra.mxu1 %v19506_v57  ;;  %v7476_v24 = vadd.f32 %v7475_v36, %v7403_v25  ;;  %v13277_v23 = vand.u32 4294901760, %v19614_v1  ;;  %v13271_v12 = vsub.f32 %v19605_v35, %v13270_v37  ;;  %v11765_v36 = vld [vmem:[%s20236_s8 + $0x40] sm:$0xff] }
 0x228   :  { %17233 = vmatprep.subr.mxu0 %v17546_v28  ;;  %17268 = vmatprep.subr.mxu1 %v17546_v28  ;;  %v16810_v32 = vpop.f32.mrf.mxu1  ;;  %v19676_v26 = vand.u32 4294901760, %v11765_v36  ;;  %v13231_v51 = vand.u32 4294901760, %v19679_v17 }
 0x229   :  { %17234 = vmatpush3.msra.mxu0 %v12353_v31  ;;  %17235 = vmatprep.mubr.msk.f32.mxu0 %vm17547_vm1, %v17546_v28  ;;  %v7947_v60 = vsub.f32 %v4227_v7, %v7476_v24  ;;  %v13278_v30 = vsub.f32 %v19614_v1, %v13277_v23  ;;  %v13272_v43 = vand.u32 4294901760, %v13271_v12  ;;  %v11768_v32 = vld [vmem:[%s20236_s8 + $0x58] sm:$0xff] }
 0x22a   :  { %17269 = vmatpush3.msra.mxu1 %v19516_v40  ;;  %17270 = vmatprep.mubr.msk.f32.mxu1 %vm17547_vm1, %v17546_v28  ;;  %v19694_v22 = vsub.f32 %v11765_v36, %v19676_v26  ;;  %v13232_v7 = vsub.f32 %v19679_v17, %v13231_v51 }
 0x22b   :  { %17236 = vmatmul.mubr.f32.vlgmr.msra.gmra.mxu0 %v19503_v0  ;;  %17245 = vmatprep.subr.mxu0 %v17546_v28  ;;  %v7955_v31 = vmul.f32 %v7947_v60, %v7947_v60  ;;  %v7555_v3 = vpop.f32.mrf.mxu0 }
 0x22c   :  { %17271 = vmatmul.mubr.f32.vlgmr.msra.gmra.mxu1 %v12769_v49  ;;  %17280 = vmatprep.subr.mxu1 %v17546_v28  ;;  %v7637_v55 = vadd.f32 %v7636_v27, %v7555_v3  ;;  %v7937_v62 = vpop.f32.mrf.mxu1  ;;  %v13732_v27 = vand.u32 4294901760, %v19685_v14  ;;  %v13233_v42 = vand.u32 4294901760, %v13232_v7  ;;  %v19748_v3 = vand.u32 4294901760, %v11768_v32  ;;  %v17512_v7 = vld [vmem:[%s20228_s0 + $0x20] sm:$0xff] }
 0x22d   :  { %17246 = vmatpush3.msra.mxu0 %v19506_v57  ;;  %17281 = vmatpush3.msra.mxu1 %v19506_v57  ;;  %v16789_v53 = vpop.f32.mrf.mxu0  ;;  %v7969_v0 = vsel %vm7957_vm2, %v7955_v31, 0.0 }
 0x22e   :  { %17247 = vmatprep.subr.mxu0 %v17546_v28  ;;  %17282 = vmatprep.subr.mxu1 %v17546_v28  ;;  %v16824_v16 = vpop.f32.mrf.mxu1  ;;  %v19655_v57 = vadd.f32 %v7969_v0, %v19575_v21 }
 0x22f   :  { %17248 = vmatpush3.msra.mxu0 %v19516_v40  ;;  %17249 = vmatprep.mubr.msk.f32.mxu0 %vm17547_vm1, %v17546_v28 }
 0x230   :  { %17283 = vmatpush3.msra.mxu1 %v19516_v40  ;;  %17284 = vmatprep.mubr.msk.f32.mxu1 %vm17547_vm1, %v17546_v28  ;;  %v13279_v40 = vand.u32 4294901760, %v13278_v30 }
 0x231   :  { %17250 = vmatmul.mubr.f32.vlgmr.msra.gmra.mxu0 %v12771_v44  ;;  %17259 = vmatprep.subr.mxu0 %v17546_v28  ;;  %v7712_v63 = vpop.f32.mrf.mxu0  ;;  %v19768_v44 = vsub.f32 %v11768_v32, %v19748_v3 }
 0x232   :  { %17285 = vmatmul.mubr.f32.vlgmr.msra.gmra.mxu1 %v19583_v19  ;;  %17294 = vmatprep.subr.mxu1 %v17546_v28  ;;  %v7713_v15 = vadd.f32 %v7712_v63, %v7637_v55  ;;  %v8166_v52 = vpop.f32.mrf.mxu1  ;;  %v11767_v55 = vld [vmem:[%s20236_s8 + $0x50] sm:$0xff] }
 0x233   :  { %17260 = vmatpush3.msra.mxu0 %v19525_v48  ;;  %17295 = vmatpush3.msra.mxu1 %v13272_v43  ;;  %v16803_v6 = vpop.f32.mrf.mxu0  ;;  %v13621_v48 = vrot.slane %v18510_v38, 4  ;;  %v19758_v30 = vand.u32 4294901760, %v11767_v55 }
 0x234   :  { %17261 = vmatprep.subr.mxu0 %v17546_v28  ;;  %17296 = vmatprep.subr.mxu1 %v17546_v28  ;;  %v16838_v39 = vpop.f32.mrf.mxu1  ;;  %v7788_v21 = vadd.f32 %v7787_v20, %v7713_v15 }
 0x235   :  { %17262 = vmatpush3.msra.mxu0 %v19534_v13  ;;  %17263 = vmatprep.mubr.msk.f32.mxu0 %vm17547_vm1, %v17546_v28  ;;  %v13733_v13 = vsub.f32 %v19685_v14, %v13732_v27  ;;  %v19777_v36 = vsub.f32 %v11767_v55, %v19758_v30  ;;  %v4133_v39 = vld [vmem:[%s20229_s1 + $0x18] sm:$0xff] }
 0x236   :  { %17297 = vmatpush3.msra.mxu1 %v13279_v40  ;;  %17298 = vmatprep.mubr.msk.f32.mxu1 %vm17547_vm1, %v17546_v28 }
 0x237   :  { %17264 = vmatmul.mubr.f32.vlgmr.msra.gmra.mxu0 %v19599_v50  ;;  %17273 = vmatprep.subr.mxu0 %v17546_v28  ;;  %v7864_v56 = vpop.f32.mrf.mxu0 }
 0x238   :  { %17299 = vmatmul.mubr.f32.vlgmr.msra.gmra.mxu1 %v19663_v47  ;;  %17308 = vmatprep.subr.mxu1 %v17546_v28  ;;  %v7865_v29 = vadd.f32 %v7864_v56, %v7788_v21  ;;  %v19696_v59 = vpop.f32.mrf.mxu1 }
 0x239   :  { %17274 = vmatpush3.msra.mxu0 %v12808_v2  ;;  %17309 = vmatpush3.msra.mxu1 %v19586_v10  ;;  %v16817_v50 = vpop.f32.mrf.mxu0  ;;  %v13739_v2 = vand.u32 4294901760, %v19694_v22 }
 0x23a   :  { %17275 = vmatprep.subr.mxu0 %v17546_v28  ;;  %17310 = vmatprep.subr.mxu1 %v17546_v28  ;;  %v7938_v34 = vadd.f32 %v7937_v62, %v7865_v29  ;;  %v16852_v41 = vpop.f32.mrf.mxu1 }
 0x23b   :  { %17276 = vmatpush3.msra.mxu0 %v12815_v61  ;;  %17277 = vmatprep.mubr.msk.f32.mxu0 %vm17547_vm1, %v17546_v28  ;;  %v13740_v24 = vsub.f32 %v19694_v22, %v13739_v2  ;;  %v11770_v41 = vld [vmem:[%s20236_s8 + $0x68] sm:$0xff] }
 0x23c   :  { %17311 = vmatpush3.msra.mxu1 %v19596_v58  ;;  %17312 = vmatprep.mubr.msk.f32.mxu1 %vm17547_vm1, %v17546_v28  ;;  %v7948_v25 = vsub.f32 %v4228_v45, %v7938_v34 }
 0x23d   :  { %17278 = vmatmul.mubr.f32.vlgmr.msra.gmra.mxu0 %v19583_v19  ;;  %17287 = vmatprep.subr.mxu0 %v17546_v28  ;;  %v8085_v61 = vpop.f32.mrf.mxu0  ;;  %v13622_v19 = vsel %vm65_vm0, %v13621_v48, 0 }
 0x23e   :  { %17313 = vmatmul.mubr.f32.vlgmr.msra.gmra.mxu1 %v13231_v51  ;;  %17322 = vmatprep.subr.mxu1 %v17546_v28  ;;  %v8167_v38 = vadd.f32 %v8166_v52, %v8085_v61  ;;  %v8467_v20 = vpop.f32.mrf.mxu1  ;;  %v7956_v54 = vmul.f32 %v7948_v25, %v7948_v25  ;;  %v19745_v31 = vand.u32 4294901760, %v13622_v19  ;;  %v14194_v52 = vand.u32 4294901760, %v19768_v44 }
 0x23f   :  { %17288 = vmatpush3.msra.mxu0 %v19586_v10  ;;  %17323 = vmatpush3.msra.mxu1 %v19586_v10  ;;  %v16831_v49 = vpop.f32.mrf.mxu0  ;;  %v13734_v10 = vand.u32 4294901760, %v13733_v13 }
 0x240   :  { %17289 = vmatprep.subr.mxu0 %v17546_v28  ;;  %17324 = vmatprep.subr.mxu1 %v17546_v28  ;;  %v16866_v60 = vpop.f32.mrf.mxu1  ;;  %v7971_v5 = vsel %vm7957_vm2, %v7956_v54, 0.0  ;;  %v19843_v54 = vand.u32 4294901760, %v11770_v41  ;;  %v11769_v49 = vld [vmem:[%s20236_s8 + $0x60] sm:$0xff] }
 0x241   :  { %17290 = vmatpush3.msra.mxu0 %v19596_v58  ;;  %17291 = vmatprep.mubr.msk.f32.mxu0 %vm17547_vm1, %v17546_v28  ;;  %v19740_v12 = vadd.f32 %v7971_v5, %v19655_v57  ;;  %v19762_v57 = vsub.f32 %v13622_v19, %v19745_v31  ;;  %v17513_v60 = vld [vmem:[%s20228_s0 + $0x28] sm:$0xff] }
 0x242   :  { %17325 = vmatpush3.msra.mxu1 %v19596_v58  ;;  %17326 = vmatprep.mubr.msk.f32.mxu1 %vm17547_vm1, %v17546_v28  ;;  %v13741_v58 = vand.u32 4294901760, %v13740_v24 }
 0x243   :  { %17292 = vmatmul.mubr.f32.vlgmr.msra.gmra.mxu0 %v13233_v42  ;;  %17301 = vmatprep.subr.mxu0 %v17546_v28  ;;  %v8242_v62 = vpop.f32.mrf.mxu0  ;;  %v13693_v15 = vand.u32 4294901760, %v19762_v57 }
 0x244   :  { %17327 = vmatmul.mubr.f32.vlgmr.msra.gmra.mxu1 %v19663_v47  ;;  %17336 = vmatprep.subr.mxu1 %v17546_v28  ;;  %v8243_v53 = vadd.f32 %v8242_v62, %v8167_v38  ;;  %v8628_v0 = vpop.f32.mrf.mxu1  ;;  %v4135_v38 = vld [vmem:[%s20229_s1 + $0x28] sm:$0xff]  ;;  %v19859_v62 = vand.u32 4294901760, %v11769_v49 }
 0x245   :  { %17302 = vmatpush3.msra.mxu0 %v19605_v35  ;;  %17337 = vmatpush3.msra.mxu1 %v13734_v10  ;;  %v16845_v46 = vpop.f32.mrf.mxu0  ;;  %v14083_v35 = vrot.slane %v18584_v18, 4  ;;  %v13694_v56 = vsub.f32 %v19762_v57, %v13693_v15  ;;  %v17511_v18 = vld [vmem:[%s20228_s0 + $0x18] sm:$0xff]  ;;  %v4151_v5 = vsub.f32 %v4135_v38, %v17513_v60 }
 0x246   :  { %17303 = vmatprep.subr.mxu0 %v17546_v28  ;;  %17338 = vmatprep.subr.mxu1 %v17546_v28  ;;  %v16880_v8 = vpop.f32.mrf.mxu1  ;;  %v8318_v16 = vadd.f32 %v19696_v59, %v8243_v53  ;;  %v4134_v59 = vld [vmem:[%s20229_s1 + $0x20] sm:$0xff] }
 0x247   :  { %17304 = vmatpush3.msra.mxu0 %v19614_v1  ;;  %17305 = vmatprep.mubr.msk.f32.mxu0 %vm17547_vm1, %v17546_v28  ;;  %v14195_v1 = vsub.f32 %v19768_v44, %v14194_v52  ;;  %v14084_v50 = vsel %vm65_vm0, %v14083_v35, 0  ;;  %v13695_v25 = vand.u32 4294901760, %v13694_v56  ;;  %v4150_v13 = vsub.f32 %v4134_v59, %v17512_v7 }
 0x248   :  { %17339 = vmatpush3.msra.mxu1 %v13741_v58  ;;  %17340 = vmatprep.mubr.msk.f32.mxu1 %vm17547_vm1, %v17546_v28  ;;  %v4136_v58 = vld [vmem:[%s20229_s1 + $0x30] sm:$0xff]  ;;  %v19872_v8 = vsub.f32 %v11770_v41, %v19843_v54  ;;  %v14545_v59 = vrot.slane %v18658_v4, 4 }
 0x249   :  { %17306 = vmatmul.mubr.f32.vlgmr.msra.gmra.mxu0 %v19679_v17  ;;  %17315 = vmatprep.subr.mxu0 %v17546_v28  ;;  %v8394_v43 = vpop.f32.mrf.mxu0  ;;  %v4166_v42 = vmul.f32 %v4150_v13, %v4150_v13 }
 0x24a   :  { %17341 = vmatmul.mubr.f32.vlgmr.msra.gmra.mxu1 %v19745_v31  ;;  %17350 = vmatprep.subr.mxu1 %v17546_v28  ;;  %v19779_v63 = vpop.f32.mrf.mxu1  ;;  %v8395_v40 = vadd.f32 %v8394_v43, %v8318_v16  ;;  %v7985_v16 = vld [vmem:[%s20231_s3] sm:$0xf] }
 0x24b   :  { %17316 = vmatpush3.msra.mxu0 %v13270_v37  ;;  %17351 = vmatpush3.msra.mxu1 %v19666_v9  ;;  %v16859_v6 = vpop.f32.mrf.mxu0  ;;  %v14201_v37 = vand.u32 4294901760, %v19777_v36 }
 0x24c   :  { %17317 = vmatprep.subr.mxu0 %v17546_v28  ;;  %17352 = vmatprep.subr.mxu1 %v17546_v28  ;;  %v19791_v21 = vadd.f32 %v8467_v20, %v8395_v40  ;;  %v16894_v17 = vpop.f32.mrf.mxu1  ;;  %v19840_v20 = vand.u32 4294901760, %v14084_v50  ;;  %v4185_v6 = vsel %vm65_vm0, %v4166_v42, 0.0 }
 0x24d   :  { %17318 = vmatpush3.msra.mxu0 %v13277_v23  ;;  %17319 = vmatprep.mubr.msk.f32.mxu0 %vm17547_vm1, %v17546_v28  ;;  %v4149_v23 = vsub.f32 %v4133_v39, %v17511_v18  ;;  %v14202_v34 = vsub.f32 %v19777_v36, %v14201_v37  ;;  %v19889_v17 = vsub.f32 %v11769_v49, %v19859_v62  ;;  %v14656_v18 = vand.u32 4294901760, %v19872_v8  ;;  %v17516_v49 = vld [vmem:[%s20228_s0 + $0x40] sm:$0xff] }
 0x24e   :  { %17353 = vmatpush3.msra.mxu1 %v19676_v26  ;;  %17354 = vmatprep.mubr.msk.f32.mxu1 %vm17547_vm1, %v17546_v28  ;;  %v19866_v46 = vsub.f32 %v14084_v50, %v19840_v20 }
 0x24f   :  { %17320 = vmatmul.mubr.f32.vlgmr.msra.gmra.mxu0 %v19663_v47  ;;  %17329 = vmatprep.subr.mxu0 %v17546_v28  ;;  %v8547_v29 = vpop.f32.mrf.mxu0  ;;  %v4165_v61 = vmul.f32 %v4149_v23, %v4149_v23  ;;  %v7986_v23 = vld [vmem:[%s20231_s3 + $0x4] sm:$0xf] }
 0x250   :  { %17355 = vmatmul.mubr.f32.vlgmr.msra.gmra.mxu1 %v13693_v15  ;;  %17364 = vmatprep.subr.mxu1 %v17546_v28  ;;  %v8629_v47 = vadd.f32 %v8628_v0, %v8547_v29  ;;  %v19815_v51 = vpop.f32.mrf.mxu1  ;;  %v4167_v15 = vmul.f32 %v4151_v5, %v4151_v5 }
 0x251   :  { %17330 = vmatpush3.msra.mxu0 %v19666_v9  ;;  %17365 = vmatpush3.msra.mxu1 %v19666_v9  ;;  %v16873_v45 = vpop.f32.mrf.mxu0  ;;  %v14196_v9 = vand.u32 4294901760, %v14195_v1  ;;  %v4183_v10 = vsel %vm65_vm0, %v4165_v61, 0.0  ;;  %v14155_v1 = vand.u32 4294901760, %v19866_v46 }
 0x252   :  { %17331 = vmatprep.subr.mxu0 %v17546_v28  ;;  %17366 = vmatprep.subr.mxu1 %v17546_v28  ;;  %v16908_v48 = vpop.f32.mrf.mxu1  ;;  %v4184_v43 = vadd.f32 %v4183_v10, %v19446_v11  ;;  %v4137_v11 = vld [vmem:[%s20229_s1 + $0x38] sm:$0xff]  ;;  %v4187_v50 = vsel %vm65_vm0, %v4167_v15, 0.0 }
 0x253   :  { %17332 = vmatpush3.msra.mxu0 %v19676_v26  ;;  %17333 = vmatprep.mubr.msk.f32.mxu0 %vm17547_vm1, %v17546_v28  ;;  %v14156_v41 = vsub.f32 %v19866_v46, %v14155_v1  ;;  %v14657_v48 = vsub.f32 %v19872_v8, %v14656_v18 }
 0x254   :  { %17367 = vmatpush3.msra.mxu1 %v19676_v26  ;;  %17368 = vmatprep.mubr.msk.f32.mxu1 %vm17547_vm1, %v17546_v28  ;;  %v14203_v26 = vand.u32 4294901760, %v14202_v34 }
 0x255   :  { %17334 = vmatmul.mubr.f32.vlgmr.msra.gmra.mxu0 %v13695_v25  ;;  %17343 = vmatprep.subr.mxu0 %v17546_v28  ;;  %v8704_v19 = vpop.f32.mrf.mxu0 }
 0x256   :  { %17369 = vmatmul.mubr.f32.vlgmr.msra.gmra.mxu1 %v19745_v31  ;;  %17378 = vmatprep.subr.mxu1 %v17546_v28  ;;  %v8705_v24 = vadd.f32 %v8704_v19, %v8629_v47  ;;  %v19850_v32 = vpop.f32.mrf.mxu1 }
 0x257   :  { %17344 = vmatpush3.msra.mxu0 %v19685_v14  ;;  %17379 = vmatpush3.msra.mxu1 %v14196_v9  ;;  %v16887_v55 = vpop.f32.mrf.mxu0  ;;  %v14546_v9 = vsel %vm65_vm0, %v14545_v59, 0 }
 0x258   :  { %17345 = vmatprep.subr.mxu0 %v17546_v28  ;;  %17380 = vmatprep.subr.mxu1 %v17546_v28  ;;  %v16922_v53 = vpop.f32.mrf.mxu1  ;;  %v8780_v0 = vadd.f32 %v19779_v63, %v8705_v24  ;;  %v17514_v63 = vld [vmem:[%s20228_s0 + $0x30] sm:$0xff]  ;;  %v14157_v55 = vand.u32 4294901760, %v14156_v41 }
 0x259   :  { %17346 = vmatpush3.msra.mxu0 %v19694_v22  ;;  %17347 = vmatprep.mubr.msk.f32.mxu0 %vm17547_vm1, %v17546_v28  ;;  %v4152_v40 = vsub.f32 %v4136_v58, %v17514_v63  ;;  %v4138_v22 = vld [vmem:[%s20229_s1 + $0x40] sm:$0xff]  ;;  %v19954_v58 = vand.u32 4294901760, %v14546_v9  ;;  %v14658_v53 = vand.u32 4294901760, %v14657_v48  ;;  %v11771_v63 = vld [vmem:[%s20236_s8 + $0x70] sm:$0xff] }
 0x25a   :  { %17381 = vmatpush3.msra.mxu1 %v14203_v26  ;;  %17382 = vmatprep.mubr.msk.f32.mxu1 %vm17547_vm1, %v17546_v28  ;;  %v4154_v19 = vsub.f32 %v4138_v22, %v17516_v49  ;;  %v7987_v49 = vld [vmem:[%s20231_s3 + $0x8] sm:$0xf] }
 0x25b   :  { %17348 = vmatmul.mubr.f32.vlgmr.msra.gmra.mxu0 %v19762_v57  ;;  %17357 = vmatprep.subr.mxu0 %v17546_v28  ;;  %v8856_v39 = vpop.f32.mrf.mxu0  ;;  %v11705_v57 = vsub.f32 %v7985_v16, %v19791_v21  ;;  %v4186_v21 = vadd.f32 %v4185_v6, %v4184_v43  ;;  %v4168_v4 = vmul.f32 %v4152_v40, %v4152_v40  ;;  %v17517_v40 = vld [vmem:[%s20228_s0 + $0x48] sm:$0xff] }
 0x25c   :  { %17383 = vmatmul.mubr.f32.vlgmr.msra.gmra.mxu1 %v19840_v20  ;;  %17392 = vmatprep.subr.mxu1 %v17546_v28  ;;  %v8857_v35 = vadd.f32 %v8856_v39, %v8780_v0  ;;  %v19895_v56 = vpop.f32.mrf.mxu1  ;;  %v4170_v6 = vmul.f32 %v4154_v19, %v4154_v19 }
 0x25d   :  { %17358 = vmatpush3.msra.mxu0 %v13732_v27  ;;  %17393 = vmatpush3.msra.mxu1 %v19748_v3  ;;  %v16901_v29 = vpop.f32.mrf.mxu0  ;;  %v17515_v27 = vld [vmem:[%s20228_s0 + $0x38] sm:$0xff]  ;;  %v4188_v7 = vadd.f32 %v4187_v50, %v4186_v21  ;;  %v4189_v24 = vsel %vm65_vm0, %v4168_v4, 0.0  ;;  %v19990_v21 = vand.u32 4294901760, %v11771_v63 }
 0x25e   :  { %17359 = vmatprep.subr.mxu0 %v17546_v28  ;;  %17394 = vmatprep.subr.mxu1 %v17546_v28  ;;  %v8930_v47 = vadd.f32 %v19815_v51, %v8857_v35  ;;  %v16936_v14 = vpop.f32.mrf.mxu1  ;;  %v4153_v45 = vsub.f32 %v4137_v11, %v17515_v27  ;;  %v14663_v51 = vand.u32 4294901760, %v19889_v17  ;;  %v4193_v22 = vsel %vm65_vm0, %v4170_v6, 0.0 }
 0x25f   :  { %17360 = vmatpush3.msra.mxu0 %v13739_v2  ;;  %17361 = vmatprep.mubr.msk.f32.mxu0 %vm17547_vm1, %v17546_v28  ;;  %v11713_v2 = vmul.f32 %v11705_v57, %v11705_v57  ;;  %v4190_v43 = vadd.f32 %v4189_v24, %v4188_v7  ;;  %v4140_v57 = vld [vmem:[%s20229_s1 + $0x50] sm:$0xff]  ;;  %v20012_v48 = vsub.f32 %v11771_v63, %v19990_v21 }
 0x260   :  { %17395 = vmatpush3.msra.mxu1 %v19758_v30  ;;  %17396 = vmatprep.mubr.msk.f32.mxu1 %vm17547_vm1, %v17546_v28  ;;  %v11706_v34 = vsub.f32 %v7986_v23, %v8930_v47  ;;  %v4169_v26 = vmul.f32 %v4153_v45, %v4153_v45  ;;  %v19982_v23 = vsub.f32 %v14546_v9, %v19954_v58  ;;  %v17518_v45 = vld [vmem:[%s20228_s0 + $0x50] sm:$0xff] }
 0x261   :  { %17362 = vmatmul.mubr.f32.vlgmr.msra.gmra.mxu0 %v19745_v31  ;;  %17371 = vmatprep.subr.mxu0 %v17546_v28  ;;  %v9009_v25 = vpop.f32.mrf.mxu0  ;;  %v11772_v31 = vld [vmem:[%s20236_s8 + $0x78] sm:$0xff]  ;;  %v11722_v5 = vsel %vm11721_vm3, %v11713_v2, 0.0  ;;  %v4156_v4 = vsub.f32 %v4140_v57, %v17518_v45  ;;  %s17548_s8 = smov [#allocation2]  }
 0x262   :  { %17397 = vmatmul.mubr.f32.vlgmr.msra.gmra.mxu1 %v14155_v1  ;;  %17406 = vmatprep.subr.mxu1 %v17546_v28  ;;  %v11714_v13 = vmul.f32 %v11706_v34, %v11706_v34  ;;  %v9091_v61 = vadd.f32 %v19850_v32, %v9009_v25  ;;  %v19933_v38 = vpop.f32.mrf.mxu1  ;;  %v4139_v32 = vld [vmem:[%s20229_s1 + $0x48] sm:$0xff]  ;;  %v19964_v16 = vand.u32 4294901760, %v11772_v31  ;;  %v14617_v2 = vand.u32 4294901760, %v19982_v23  ;;  %s15521_s23 = sshll.u32 %s17548_s8, 4  ;;  %s15522_s23 = int_to_ptr.vmem [resolvable:$true] %s15521_s23 }
 0x263   :  { %17372 = vmatpush3.msra.mxu0 %v19748_v3  ;;  %17407 = vmatpush3.msra.mxu1 %v19748_v3  ;;  %v16915_v60 = vpop.f32.mrf.mxu0  ;;  %v14664_v3 = vsub.f32 %v19889_v17, %v14663_v51  ;;  %v4155_v15 = vsub.f32 %v4139_v32, %v17517_v40  ;;  %s17524_s24 = scalar_lea.vmem %s15522_s23, 16  ;;  %s17528_s25 = scalar_lea.vmem %s15522_s23, 32 }
 0x264   :  { %17373 = vmatprep.subr.mxu0 %v17546_v28  ;;  %17408 = vmatprep.subr.mxu1 %v17546_v28  ;;  %v11723_v42 = vsel %vm11721_vm3, %v11714_v13, 0.0  ;;  %v16950_v10 = vpop.f32.mrf.mxu1  ;;  %v19988_v59 = vsub.f32 %v11772_v31, %v19964_v16  ;;  %v14618_v24 = vsub.f32 %v19982_v23, %v14617_v2  ;;  %v15007_v60 = vrot.slane %v18732_v33, 4  ;;  %v17520_v33 = vld [vmem:[%s20228_s0 + $0x60] sm:$0xff]  ;;  %p17525_p0 = scmp.ne.s32.totalorder %s15522_s23, %s17524_s24  ;;  %p17529_p1 = scmp.lt.s32.totalorder %s15522_s23, %s15522_s23 }
 0x265   :  { %17374 = vmatpush3.msra.mxu0 %v19758_v30  ;;  %17375 = vmatprep.mubr.msk.f32.mxu0 %vm17547_vm1, %v17546_v28  ;;  %v19959_v0 = vadd.f32 %v11723_v42, %v11722_v5  ;;  %v14665_v11 = vand.u32 4294901760, %v14664_v3  ;;  %v4171_v50 = vmul.f32 %v4155_v15, %v4155_v15  ;;  %v15125_v3 = vand.u32 4294901760, %v20012_v48  ;;  %p17530_p2 = scmp.lt.s32.totalorder %s17528_s25, %s17524_s24 }
 0x266   :  { %17409 = vmatpush3.msra.mxu1 %v19758_v30  ;;  %17410 = vmatprep.mubr.msk.f32.mxu1 %vm17547_vm1, %v17546_v28  ;;  %v4191_v30 = vsel %vm65_vm0, %v4169_v26, 0.0  ;;  %v15118_v41 = vand.u32 4294901760, %v19988_v59  ;;  %v14619_v63 = vand.u32 4294901760, %v14618_v24  ;;  %v15008_v40 = vsel %vm65_vm0, %v15007_v60, 0 }
 0x267   :  { %17376 = vmatmul.mubr.f32.vlgmr.msra.gmra.mxu0 %v14157_v55  ;;  %17385 = vmatprep.subr.mxu0 %v17546_v28  ;;  %v9166_v39 = vpop.f32.mrf.mxu0  ;;  %v4192_v47 = vadd.f32 %v4191_v30, %v4190_v43  ;;  %v4195_v31 = vsel %vm65_vm0, %v4171_v50, 0.0  ;;  %v4143_v55 = vld [vmem:[%s20229_s1 + $0x68] sm:$0xff]  ;;  %v15126_v30 = vsub.f32 %v20012_v48, %v15125_v3  ;;  %p17531_p3 = por %p17530_p2, %p17529_p1 }
 0x268   :  { %17411 = vmatmul.mubr.f32.vlgmr.msra.gmra.mxu1 %v19840_v20  ;;  %17420 = vmatprep.subr.mxu1 %v17546_v28  ;;  %v9167_v35 = vadd.f32 %v9166_v39, %v9091_v61  ;;  %v19979_v1 = vpop.f32.mrf.mxu1  ;;  %v4172_v61 = vmul.f32 %v4156_v4, %v4156_v4 }
 0x269   :  { %17386 = vmatpush3.msra.mxu0 %v19768_v44  ;;  %17421 = vmatpush3.msra.mxu1 %v14658_v53  ;;  %v16929_v29 = vpop.f32.mrf.mxu0  ;;  %v4194_v25 = vadd.f32 %v4193_v22, %v4192_v47  ;;  %v4142_v44 = vld [vmem:[%s20229_s1 + $0x60] sm:$0xff]  ;;  %v17522_v22 = vld [vmem:[%s20228_s0 + $0x70] sm:$0xff]  ;;  %p17532_p4 = pnand %p17531_p3, %p17525_p0 }
 0x26a   :  { %17387 = vmatprep.subr.mxu0 %v17546_v28  ;;  %17422 = vmatprep.subr.mxu1 %v17546_v28  ;;  %v16964_v14 = vpop.f32.mrf.mxu1  ;;  %v9242_v27 = vadd.f32 %v19895_v56, %v9167_v35  ;;  %v4141_v56 = vld [vmem:[%s20229_s1 + $0x58] sm:$0xff]  ;;  %v4197_v42 = vsel %vm65_vm0, %v4172_v61, 0.0 }
 0x26b   :  { %17388 = vmatpush3.msra.mxu0 %v19777_v36  ;;  %17389 = vmatprep.mubr.msk.f32.mxu0 %vm17547_vm1, %v17546_v28  ;;  %v4196_v32 = vadd.f32 %v4195_v31, %v4194_v25  ;;  %v4158_v36 = vsub.f32 %v4142_v44, %v17520_v33  ;;  %v4144_v14 = vld [vmem:[%s20229_s1 + $0x70] sm:$0xff] }
 0x26c   :  { %17423 = vmatpush3.msra.mxu1 %v14665_v11  ;;  %17424 = vmatprep.mubr.msk.f32.mxu1 %vm17547_vm1, %v17546_v28 }
 0x26d   :  { %17390 = vmatmul.mubr.f32.vlgmr.msra.gmra.mxu0 %v19866_v46  ;;  %17399 = vmatprep.subr.mxu0 %v17546_v28  ;;  %v9318_v34 = vpop.f32.mrf.mxu0  ;;  %v17519_v46 = vld [vmem:[%s20228_s0 + $0x58] sm:$0xff]  ;;  %v4198_v39 = vadd.f32 %v4197_v42, %v4196_v32 }
 0x26e   :  { %17425 = vmatmul.mubr.f32.vlgmr.msra.gmra.mxu1 %v19954_v58  ;;  %17434 = vmatprep.subr.mxu1 %v17546_v28  ;;  %v9319_v9 = vadd.f32 %v9318_v34, %v9242_v27  ;;  %v20014_v7 = vpop.f32.mrf.mxu1  ;;  %v4157_v13 = vsub.f32 %v4141_v56, %v17519_v46  ;;  %v20083_v27 = vand.u32 4294901760, %v15008_v40  ;;  %v4160_v56 = vsub.f32 %v4144_v14, %v17522_v22 }
 0x26f   :  { %17400 = vmatpush3.msra.mxu0 %v14194_v52  ;;  %17435 = vmatpush3.msra.mxu1 %v19843_v54  ;;  %v16943_v19 = vpop.f32.mrf.mxu0 }
 0x270   :  { %17401 = vmatprep.subr.mxu0 %v17546_v28  ;;  %17436 = vmatprep.subr.mxu1 %v17546_v28  ;;  %v9392_v52 = vadd.f32 %v19933_v38, %v9319_v9  ;;  %v16978_v26 = vpop.f32.mrf.mxu1  ;;  %v15119_v38 = vsub.f32 %v19988_v59, %v15118_v41  ;;  %v4145_v9 = vld [vmem:[%s20229_s1 + $0x78] sm:$0xff]  ;;  %v20102_v61 = vsub.f32 %v15008_v40, %v20083_v27 }
 0x271   :  { %17402 = vmatpush3.msra.mxu0 %v14201_v37  ;;  %17403 = vmatprep.mubr.msk.f32.mxu0 %vm17547_vm1, %v17546_v28  ;;  %v4173_v37 = vmul.f32 %v4157_v13, %v4157_v13  ;;  %v4176_v19 = vmul.f32 %v4160_v56, %v4160_v56 }
 0x272   :  { %17437 = vmatpush3.msra.mxu1 %v19859_v62  ;;  %17438 = vmatprep.mubr.msk.f32.mxu1 %vm17547_vm1, %v17546_v28  ;;  %v11707_v5 = vsub.f32 %v7987_v49, %v9392_v52  ;;  %v15120_v6 = vand.u32 4294901760, %v15119_v38  ;;  %v15079_v60 = vand.u32 4294901760, %v20102_v61 }
 0x273   :  { %17404 = vmatmul.mubr.f32.vlgmr.msra.gmra.mxu0 %v19840_v20  ;;  %17413 = vmatprep.subr.mxu0 %v17546_v28  ;;  %v9471_v10 = vpop.f32.mrf.mxu0  ;;  %v4199_v29 = vsel %vm65_vm0, %v4173_v37, 0.0 }
 0x274   :  { %17439 = vmatmul.mubr.f32.vlgmr.msra.gmra.mxu1 %v14617_v2  ;;  %17448 = vmatprep.subr.mxu1 %v17546_v28  ;;  %v11715_v53 = vmul.f32 %v11707_v5, %v11707_v5  ;;  %v9553_v20 = vadd.f32 %v19979_v1, %v9471_v10  ;;  %v20056_v43 = vpop.f32.mrf.mxu1  ;;  %v4174_v1 = vmul.f32 %v4158_v36, %v4158_v36 }
 0x275   :  { %17414 = vmatpush3.msra.mxu0 %v19843_v54  ;;  %17449 = vmatpush3.msra.mxu1 %v19843_v54  ;;  %v16957_v15 = vpop.f32.mrf.mxu0  ;;  %v17521_v54 = vld [vmem:[%s20228_s0 + $0x68] sm:$0xff]  ;;  %v4200_v4 = vadd.f32 %v4199_v29, %v4198_v39  ;;  %v15080_v37 = vsub.f32 %v20102_v61, %v15079_v60 }
 0x276   :  { %17415 = vmatprep.subr.mxu0 %v17546_v28  ;;  %17450 = vmatprep.subr.mxu1 %v17546_v28  ;;  %v11725_v11 = vsel %vm11721_vm3, %v11715_v53, 0.0  ;;  %v16992_v57 = vpop.f32.mrf.mxu1  ;;  %v4159_v35 = vsub.f32 %v4143_v55, %v17521_v54  ;;  %v4201_v34 = vsel %vm65_vm0, %v4174_v1, 0.0 }
 0x277   :  { %17416 = vmatpush3.msra.mxu0 %v19859_v62  ;;  %17417 = vmatprep.mubr.msk.f32.mxu0 %vm17547_vm1, %v17546_v28  ;;  %v20075_v47 = vadd.f32 %v11725_v11, %v19959_v0  ;;  %v15127_v0 = vand.u32 4294901760, %v15126_v30  ;;  %v4202_v31 = vadd.f32 %v4201_v34, %v4200_v4 }
 0x278   :  { %17451 = vmatpush3.msra.mxu1 %v19859_v62  ;;  %17452 = vmatprep.mubr.msk.f32.mxu1 %vm17547_vm1, %v17546_v28  ;;  %v4175_v2 = vmul.f32 %v4159_v35, %v4159_v35 }
 0x279   :  { %17418 = vmatmul.mubr.f32.vlgmr.msra.gmra.mxu0 %v14619_v63  ;;  %17427 = vmatprep.subr.mxu0 %v17546_v28  ;;  %v9628_v45 = vpop.f32.mrf.mxu0 }
 0x27a   :  { %17453 = vmatmul.mubr.f32.vlgmr.msra.gmra.mxu1 %v19954_v58  ;;  %17462 = vmatprep.subr.mxu1 %v17546_v28  ;;  %v9629_v62 = vadd.f32 %v9628_v45, %v9553_v20  ;;  %v20088_v50 = vpop.f32.mrf.mxu1  ;;  %v4203_v44 = vsel %vm65_vm0, %v4175_v2, 0.0 }
 0x27b   :  { %17428 = vmatpush3.msra.mxu0 %v19872_v8  ;;  %17463 = vmatpush3.msra.mxu1 %v15120_v6  ;;  %v16971_v25 = vpop.f32.mrf.mxu0  ;;  %v4204_v32 = vadd.f32 %v4203_v44, %v4202_v31 }
 0x27c   :  { %17429 = vmatprep.subr.mxu0 %v17546_v28  ;;  %17464 = vmatprep.subr.mxu1 %v17546_v28  ;;  %v17006_v46 = vpop.f32.mrf.mxu1  ;;  %v9704_v13 = vadd.f32 %v20014_v7, %v9629_v62  ;;  %v17523_v7 = vld [vmem:[%s20228_s0 + $0x78] sm:$0xff] }
 0x27d   :  { %17430 = vmatpush3.msra.mxu0 %v19889_v17  ;;  %17431 = vmatprep.mubr.msk.f32.mxu0 %vm17547_vm1, %v17546_v28  ;;  %v4161_v49 = vsub.f32 %v4145_v9, %v17523_v7 }
 0x27e   :  { %17465 = vmatpush3.msra.mxu1 %v15127_v0  ;;  %17466 = vmatprep.mubr.msk.f32.mxu1 %vm17547_vm1, %v17546_v28 }
 0x27f   :  { %17432 = vmatmul.mubr.f32.vlgmr.msra.gmra.mxu0 %v19982_v23  ;;  %17441 = vmatprep.subr.mxu0 %v17546_v28  ;;  %v9780_v52 = vpop.f32.mrf.mxu0  ;;  %v7988_v23 = vld [vmem:[%s20231_s3 + $0xc] sm:$0xf]  ;;  %v4177_v8 = vmul.f32 %v4161_v49, %v4161_v49 }
 0x280   :  { %17467 = vmatmul.mubr.f32.vlgmr.msra.gmra.mxu1 %v20083_v27  ;;  %17476 = vmatprep.subr.mxu1 %v17546_v28  ;;  %v9781_v26 = vadd.f32 %v9780_v52, %v9704_v13  ;;  %v10165_v24 = vpop.f32.mrf.mxu1 }
 0x281   :  { %17442 = vmatpush3.msra.mxu0 %v14656_v18  ;;  %17477 = vmatpush3.msra.mxu1 %v19964_v16  ;;  %v16985_v38 = vpop.f32.mrf.mxu0  ;;  %v4205_v18 = vsel %vm65_vm0, %v4176_v19, 0.0  ;;  %v4207_v55 = vsel %vm65_vm0, %v4177_v8, 0.0 }
 0x282   :  { %17443 = vmatprep.subr.mxu0 %v17546_v28  ;;  %17478 = vmatprep.subr.mxu1 %v17546_v28  ;;  %v9854_v5 = vadd.f32 %v20056_v43, %v9781_v26  ;;  %v17020_v33 = vpop.f32.mrf.mxu1  ;;  %v15081_v43 = vand.u32 4294901760, %v15080_v37 }
 0x283   :  { %17444 = vmatpush3.msra.mxu0 %v14663_v51  ;;  %17445 = vmatprep.mubr.msk.f32.mxu0 %vm17547_vm1, %v17546_v28  ;;  %v4206_v51 = vadd.f32 %v4205_v18, %v4204_v32 }
 0x284   :  { %17479 = vmatpush3.msra.mxu1 %v19990_v21  ;;  %17480 = vmatprep.mubr.msk.f32.mxu1 %vm17547_vm1, %v17546_v28  ;;  %v11708_v36 = vsub.f32 %v7988_v23, %v9854_v5 }
 0x285   :  { %17446 = vmatmul.mubr.f32.vlgmr.msra.gmra.mxu0 %v19954_v58  ;;  %17455 = vmatprep.subr.mxu0 %v17546_v28  ;;  %v9933_v17 = vpop.f32.mrf.mxu0 }
 0x286   :  { %17481 = vmatmul.mubr.f32.vlgmr.msra.gmra.mxu1 %v15079_v60  ;;  %17490 = vmatprep.subr.mxu1 %v17546_v28  ;;  %v11716_v42 = vmul.f32 %v11708_v36, %v11708_v36  ;;  %v10315_v10 = vpop.f32.mrf.mxu1  ;;  %v10015_v40 = vadd.f32 %v20088_v50, %v9933_v17 }
 0x287   :  { %17456 = vmatpush3.msra.mxu0 %v19964_v16  ;;  %17491 = vmatpush3.msra.mxu1 %v19964_v16  ;;  %v16999_v53 = vpop.f32.mrf.mxu0  ;;  %v4208_v16 = vadd.f32 %v4207_v55, %v4206_v51 }
 0x288   :  { %17457 = vmatprep.subr.mxu0 %v17546_v28  ;;  %17492 = vmatprep.subr.mxu1 %v17546_v28  ;;  %v11727_v58 = vsel %vm11721_vm3, %v11716_v42, 0.0  ;;  %v17034_v20 = vpop.f32.mrf.mxu1  ;;  %v7990_v42 = vld [vmem:[%s20231_s3 + $0x14] sm:$0xf]  ;;  %v7991_v53 = vld [vmem:[%s20231_s3 + $0x18] sm:$0xf] }
 0x289   :  { %17458 = vmatpush3.msra.mxu0 %v19990_v21  ;;  %17459 = vmatprep.mubr.msk.f32.mxu0 %vm17547_vm1, %v17546_v28  ;;  %v11728_v63 = vadd.f32 %v11727_v58, %v20075_v47 }
 0x28a   :  { %17493 = vmatpush3.msra.mxu1 %v19990_v21  ;;  %17494 = vmatprep.mubr.msk.f32.mxu1 %vm17547_vm1, %v17546_v28 }
 0x28b   :  { %17460 = vmatmul.mubr.f32.vlgmr.msra.gmra.mxu0 %v15081_v43  ;;  %17469 = vmatprep.subr.mxu0 %v17546_v28  ;;  %v10090_v15 = vpop.f32.mrf.mxu0 }
 0x28c   :  { %17495 = vmatmul.mubr.f32.vlgmr.msra.gmra.mxu1 %v20083_v27  ;;  %17470 = vmatpush3.msra.mxu0 %v19988_v59  ;;  %v10091_v6 = vadd.f32 %v10090_v15, %v10015_v40  ;;  %v10476_v30 = vpop.f32.mrf.mxu1  ;;  %v7989_v59 = vld [vmem:[%s20231_s3 + $0x10] sm:$0xf] }
 0x28d   :  { %17471 = vmatprep.subr.mxu0 %v17546_v28  ;;  %17473 = vmatprep.mubr.msk.f32.mxu0 %vm17547_vm1, %v17546_v28  ;;  %v17013_v21 = vpop.f32.mrf.mxu0 }
 0x28e   :  { %17472 = vmatpush3.msra.mxu0 %v20012_v48  ;;  %4209 = vadd.xlane.f32.xlu0 %v4208_v16  ;;  %v17048_v39 = vpop.f32.mrf.mxu1  ;;  %v10166_v11 = vadd.f32 %v10165_v24, %v10091_v6 }
 0x28f   :  { %17474 = vmatmul.mubr.f32.vlgmr.msra.gmra.mxu0 %v20102_v61  ;;  %17483 = vmatprep.subr.mxu0 %v17546_v28 }
 0x290   :  { %17484 = vmatpush3.msra.mxu0 %v15118_v41  ;;  %17487 = vmatprep.mubr.msk.f32.mxu0 %vm17547_vm1, %v17546_v28 }
 0x291   :  { %17485 = vmatprep.subr.mxu0 %v17546_v28  ;;  %v10242_v57 = vpop.f32.mrf.mxu0 }
 0x292   :  { %17486 = vmatpush3.msra.mxu0 %v15125_v3  ;;  %7973 = vadd.xlane.f32.xlu0 %v19740_v12  ;;  %v10243_v54 = vadd.f32 %v10242_v57, %v10166_v11  ;;  %v10627_v35 = vpop.f32.mrf.mxu1 }
 0x293   :  { %17488 = vmatmul.mubr.f32.vlgmr.msra.gmra.mxu0 %v20083_v27  ;;  %v17027_v41 = vpop.f32.mrf.mxu0 }
 0x294   :  { %v10316_v1 = vadd.f32 %v10315_v10, %v10243_v54  ;;  %v17062_v29 = vpop.f32.mrf.mxu1 }
 0x296   :  { %v11709_v47 = vsub.f32 %v7989_v59, %v10316_v1 }
 0x297   :  { %v10395_v14 = vpop.f32.mrf.mxu0 }
 0x298   :  { %v11717_v28 = vmul.f32 %v11709_v47, %v11709_v47  ;;  %v10777_v45 = vpop.f32.mrf.mxu1  ;;  %v10477_v31 = vadd.f32 %v10476_v30, %v10395_v14 }
 0x299   :  { %v17041_v0 = vpop.f32.mrf.mxu0 }
 0x29a   :  { %v17076_v48 = vpop.f32.mrf.mxu1  ;;  %v11729_v3 = vsel %vm11721_vm3, %v11717_v28, 0.0 }
 0x29b   :  { %v11730_v12 = vadd.f32 %v11729_v3, %v11728_v63 }
 0x29d   :  { %v10552_v4 = vpop.f32.mrf.mxu0 }
 0x29e   :  { %v10938_v62 = vpop.f32.mrf.mxu1  ;;  %v10553_v19 = vadd.f32 %v10552_v4, %v10477_v31 }
 0x29f   :  { %v17055_v50 = vpop.f32.mrf.mxu0 }
 0x2a0   :  { %v17090_v27 = vpop.f32.mrf.mxu1  ;;  %v10628_v60 = vadd.f32 %v10627_v35, %v10553_v19  ;;  %v7992_v35 = vld [vmem:[%s20231_s3 + $0x1c] sm:$0xf] }
 0x2a3   :  { %v10704_v22 = vpop.f32.mrf.mxu0 }
 0x2a4   :  { %v11089_v56 = vpop.f32.mrf.mxu1  ;;  %v10705_v33 = vadd.f32 %v10704_v22, %v10628_v60 }
 0x2a5   :  { %v17069_v2 = vpop.f32.mrf.mxu0 }
 0x2a6   :  { %v17104_v34 = vpop.f32.mrf.mxu1  ;;  %v10778_v17 = vadd.f32 %v10777_v45, %v10705_v33  ;;  %v11749_v33 = vld [vmem:[%s20232_s4] sm:$0x3] }
 0x2a8   :  { %v11710_v20 = vsub.f32 %v7990_v42, %v10778_v17  ;;  %v11750_v17 = vld [vmem:[%s20232_s4 + $0x2] sm:$0x3] }
 0x2a9   :  { %v10857_v25 = vpop.f32.mrf.mxu0 }
 0x2aa   :  { %v11239_v9 = vpop.f32.mrf.mxu1  ;;  %v10939_v44 = vadd.f32 %v10938_v62, %v10857_v25  ;;  %v11718_v30 = vmul.f32 %v11710_v20, %v11710_v20 }
 0x2ab   :  { %v17083_v46 = vpop.f32.mrf.mxu0 }
 0x2ac   :  { %v17118_v13 = vpop.f32.mrf.mxu1  ;;  %v11731_v1 = vsel %vm11721_vm3, %v11718_v30, 0.0 }
 0x2ad   :  { %v11732_v28 = vadd.f32 %v11731_v1, %v11730_v12 }
 0x2af   :  { %v11014_v61 = vpop.f32.mrf.mxu0 }
 0x2b0   :  { %v11400_v7 = vpop.f32.mrf.mxu1  ;;  %v11015_v26 = vadd.f32 %v11014_v61, %v10939_v44 }
 0x2b1   :  { %v17097_v49 = vpop.f32.mrf.mxu0 }
 0x2b2   :  { %v17132_v52 = vpop.f32.mrf.mxu1  ;;  %v11090_v32 = vadd.f32 %v11089_v56, %v11015_v26 }
 0x2b5   :  { %v11166_v24 = vpop.f32.mrf.mxu0 }
 0x2b6   :  { %v11551_v23 = vpop.f32.mrf.mxu1  ;;  %v11167_v18 = vadd.f32 %v11166_v24, %v11090_v32 }
 0x2b7   :  { %v17111_v38 = vpop.f32.mrf.mxu0 }
 0x2b8   :  { %v17146_v5 = vpop.f32.mrf.mxu1  ;;  %v11240_v10 = vadd.f32 %v11239_v9, %v11167_v18 }
 0x2ba   :  { %v11711_v40 = vsub.f32 %v7991_v53, %v11240_v10 }
 0x2bb   :  { %v11319_v8 = vpop.f32.mrf.mxu0 }
 0x2bc   :  { %v11701_v36 = vpop.f32.mrf.mxu1  ;;  %v11401_v55 = vadd.f32 %v11400_v7, %v11319_v8  ;;  %v11719_v57 = vmul.f32 %v11711_v40, %v11711_v40 }
 0x2bd   :  { %v17125_v37 = vpop.f32.mrf.mxu0 }
 0x2be   :  { %v17160_v51 = vpop.f32.mrf.mxu1  ;;  %v11733_v47 = vsel %vm11721_vm3, %v11719_v57, 0.0 }
 0x2bf   :  { %v11734_v4 = vadd.f32 %v11733_v47, %v11732_v28 }
 0x2c1   :  { %v11476_v58 = vpop.f32.mrf.mxu0 }
 0x2c2   :  { %v11477_v43 = vadd.f32 %v11476_v58, %v11401_v55  ;;  %v11930_v63 = vpop.f32.mrf.mxu1 }
 0x2c3   :  { %v17139_v16 = vpop.f32.mrf.mxu0 }
 0x2c4   :  { %v17174_v15 = vpop.f32.mrf.mxu1  ;;  %v11552_v6 = vadd.f32 %v11551_v23, %v11477_v43 }
 0x2c7   :  { %v11628_v21 = vpop.f32.mrf.mxu0 }
 0x2c8   :  { %v11629_v39 = vadd.f32 %v11628_v21, %v11552_v6  ;;  %v12081_v11 = vpop.f32.mrf.mxu1 }
 0x2c9   :  { %v17153_v54 = vpop.f32.mrf.mxu0 }
 0x2ca   :  { %v11702_v59 = vadd.f32 %v11701_v36, %v11629_v39  ;;  %v17188_v41 = vpop.f32.mrf.mxu1 }
 0x2cc   :  { %v11712_v29 = vsub.f32 %v7992_v35, %v11702_v59 }
 0x2cd   :  { %v11849_v14 = vpop.f32.mrf.mxu0 }
 0x2ce   :  { %v11931_v45 = vadd.f32 %v11930_v63, %v11849_v14  ;;  %v12231_v0 = vpop.f32.mrf.mxu1  ;;  %v11720_v48 = vmul.f32 %v11712_v29, %v11712_v29  ;;  %v11751_v29 = vld [vmem:[%s20232_s4 + $0x4] sm:$0x3] }
 0x2cf   :  { %v17167_v3 = vpop.f32.mrf.mxu0 }
 0x2d0   :  { %v17202_v62 = vpop.f32.mrf.mxu1  ;;  %v11735_v50 = vsel %vm11721_vm3, %v11720_v48, 0.0 }
 0x2d1   :  { %v11736_v27 = vadd.f32 %v11735_v50, %v11734_v4 }
 0x2d3   :  { %v12006_v22 = vpop.f32.mrf.mxu0  ;;  %11737 = vadd.xlane.f32.xlu1 %v11736_v27 }
 0x2d4   :  { %v12007_v56 = vadd.f32 %v12006_v22, %v11931_v45  ;;  %v12392_v2 = vpop.f32.mrf.mxu1 }
 0x2d5   :  { %v17181_v34 = vpop.f32.mrf.mxu0 }
 0x2d6   :  { %v17216_v25 = vpop.f32.mrf.mxu1  ;;  %v12082_v9 = vadd.f32 %v12081_v11, %v12007_v56 }
 0x2d9   :  { %v12158_v46 = vpop.f32.mrf.mxu0 }
 0x2da   :  { %v12543_v13 = vpop.f32.mrf.mxu1  ;;  %v12159_v61 = vadd.f32 %v12158_v46, %v12082_v9 }
 0x2db   :  { %v17195_v12 = vpop.f32.mrf.mxu0 }
 0x2dc   :  { %v12232_v31 = vadd.f32 %v12231_v0, %v12159_v61  ;;  %v17230_v7 = vpop.f32.mrf.mxu1 }
 0x2de   :  { %v15469_v18 = vsub.f32 %v11749_v33, %v12232_v31  ;;  %v11752_v31 = vld [vmem:[%s20232_s4 + $0x6] sm:$0x3] }
 0x2df   :  { %v12311_v49 = vpop.f32.mrf.mxu0 }
 0x2e0   :  { %v12393_v19 = vadd.f32 %v12392_v2, %v12311_v49  ;;  %v12693_v44 = vpop.f32.mrf.mxu1  ;;  %v15477_v55 = vmul.f32 %v15469_v18, %v15469_v18 }
 0x2e1   :  { %v17209_v52 = vpop.f32.mrf.mxu0 }
 0x2e2   :  { %v17244_v26 = vpop.f32.mrf.mxu1  ;;  %v15486_v40 = vsel %vm15485_vm4, %v15477_v55, 0.0 }
 0x2e5   :  { %v12468_v24 = vpop.f32.mrf.mxu0 }
 0x2e6   :  { %v12469_v60 = vadd.f32 %v12468_v24, %v12393_v19  ;;  %v12854_v23 = vpop.f32.mrf.mxu1 }
 0x2e7   :  { %v17223_v38 = vpop.f32.mrf.mxu0 }
 0x2e8   :  { %v17258_v32 = vpop.f32.mrf.mxu1  ;;  %v12544_v5 = vadd.f32 %v12543_v13, %v12469_v60 }
 0x2eb   :  { %v12620_v8 = vpop.f32.mrf.mxu0 }
 0x2ec   :  { %v12621_v36 = vadd.f32 %v12620_v8, %v12544_v5  ;;  %v13005_v37 = vpop.f32.mrf.mxu1 }
 0x2ed   :  { %v17237_v51 = vpop.f32.mrf.mxu0 }
 0x2ee   :  { %v12694_v42 = vadd.f32 %v12693_v44, %v12621_v36  ;;  %v17272_v10 = vpop.f32.mrf.mxu1 }
 0x2f0   :  { %v15470_v53 = vsub.f32 %v11750_v17, %v12694_v42 }
 0x2f1   :  { %v12773_v58 = vpop.f32.mrf.mxu0 }
 0x2f2   :  { %v15478_v20 = vmul.f32 %v15470_v53, %v15470_v53  ;;  %v12855_v43 = vadd.f32 %v12854_v23, %v12773_v58  ;;  %v13155_v63 = vpop.f32.mrf.mxu1 }
 0x2f3   :  { %v17251_v16 = vpop.f32.mrf.mxu0 }
 0x2f4   :  { %v15487_v15 = vsel %vm15485_vm4, %v15478_v20, 0.0  ;;  %v17286_v6 = vpop.f32.mrf.mxu1 }
 0x2f5   :  { %v15488_v30 = vadd.f32 %v15487_v15, %v15486_v40 }
 0x2f7   :  { %v12930_v21 = vpop.f32.mrf.mxu0 }
 0x2f8   :  { %v12931_v39 = vadd.f32 %v12930_v21, %v12855_v43  ;;  %v13316_v11 = vpop.f32.mrf.mxu1 }
 0x2f9   :  { %v17265_v57 = vpop.f32.mrf.mxu0 }
 0x2fa   :  { %v17300_v54 = vpop.f32.mrf.mxu1  ;;  %v13006_v35 = vadd.f32 %v13005_v37, %v12931_v39 }
 0x2fd   :  { %v13082_v59 = vpop.f32.mrf.mxu0 }
 0x2fe   :  { %v13083_v41 = vadd.f32 %v13082_v59, %v13006_v35  ;;  %v13467_v1 = vpop.f32.mrf.mxu1 }
 0x2ff   :  { %v17279_v47 = vpop.f32.mrf.mxu0 }
 0x300   :  { %v13156_v14 = vadd.f32 %v13155_v63, %v13083_v41  ;;  %v17314_v28 = vpop.f32.mrf.mxu1 }
 0x302   :  { %v15471_v45 = vsub.f32 %v11751_v29, %v13156_v14 }
 0x303   :  { %v13235_v0 = vpop.f32.mrf.mxu0 }
 0x304   :  { %v15479_v48 = vmul.f32 %v15471_v45, %v15471_v45  ;;  %v13317_v3 = vadd.f32 %v13316_v11, %v13235_v0  ;;  %v13617_v4 = vpop.f32.mrf.mxu1 }
 0x305   :  { %v17293_v62 = vpop.f32.mrf.mxu0 }
 0x306   :  { %v15489_v50 = vsel %vm15485_vm4, %v15479_v48, 0.0  ;;  %v17328_v27 = vpop.f32.mrf.mxu1 }
 0x307   :  { %v15490_v22 = vadd.f32 %v15489_v50, %v15488_v30 }
 0x309   :  { %v13392_v56 = vpop.f32.mrf.mxu0 }
 0x30a   :  { %v13393_v2 = vadd.f32 %v13392_v56, %v13317_v3  ;;  %v13778_v34 = vpop.f32.mrf.mxu1 }
 0x30b   :  { %v17307_v25 = vpop.f32.mrf.mxu0 }
 0x30c   :  { %v17342_v9 = vpop.f32.mrf.mxu1  ;;  %v13468_v46 = vadd.f32 %v13467_v1, %v13393_v2 }
 0x30f   :  { %v13544_v13 = vpop.f32.mrf.mxu0 }
 0x310   :  { %v13545_v61 = vadd.f32 %v13544_v13, %v13468_v46  ;;  %v13929_v12 = vpop.f32.mrf.mxu1 }
 0x311   :  { %v17321_v7 = vpop.f32.mrf.mxu0 }
 0x312   :  { %v13618_v49 = vadd.f32 %v13617_v4, %v13545_v61  ;;  %v17356_v19 = vpop.f32.mrf.mxu1 }
 0x314   :  { %v15472_v44 = vsub.f32 %v11752_v31, %v13618_v49 }
 0x315   :  { %v13697_v52 = vpop.f32.mrf.mxu0 }
 0x316   :  { %v15480_v26 = vmul.f32 %v15472_v44, %v15472_v44  ;;  %v20202_v24 = vpop.f32.mrf.mxu1  ;;  %v13779_v0 = vadd.f32 %v13778_v34, %v13697_v52 }
 0x317   :  { %v4210_v60 = vpop.xlane.xlu0 %4209  ;;  %v17335_v23 = vpop.f32.mrf.mxu0 }
 0x318   :  { %v15491_v38 = vsel %vm15485_vm4, %v15480_v26, 0.0  ;;  %v4211_v32 = vrot.slane %v4210_v60, 4  ;;  %v17370_v5 = vpop.f32.mrf.mxu1  ;;  %v11753_v23 = vld [vmem:[%s20232_s4 + $0x8] sm:$0x3] }
 0x319   :  { %v20205_v33 = vadd.f32 %v15491_v38, %v15490_v22  ;;  %v11754_v38 = vld [vmem:[%s20232_s4 + $0xa] sm:$0x3] }
 0x31a   :  { %v4212_v8 = vadd.f32 %v4211_v32, %v4210_v60 }
 0x31b   :  { %v7974_v18 = vpop.xlane.xlu0 %7973  ;;  %v13854_v36 = vpop.f32.mrf.mxu0 }
 0x31c   :  { %v4213_v37 = vrot.slane %v4212_v8, 2  ;;  %v7975_v17 = vrot.slane %v7974_v18, 4  ;;  %v14240_v51 = vpop.f32.mrf.mxu1  ;;  %v13855_v4 = vadd.f32 %v13854_v36, %v13779_v0  ;;  %v11755_v36 = vld [vmem:[%s20232_s4 + $0xc] sm:$0x3] }
 0x31d   :  { %v17349_v42 = vpop.f32.mrf.mxu0 }
 0x31e   :  { %v7976_v10 = vadd.f32 %v7975_v17, %v7974_v18  ;;  %v17384_v55 = vpop.f32.mrf.mxu1  ;;  %v4214_v53 = vadd.f32 %v4213_v37, %v4212_v8  ;;  %v13930_v2 = vadd.f32 %v13929_v12, %v13855_v4 }
 0x320   :  { %v7977_v58 = vrot.slane %v7976_v10, 2  ;;  %v4215_v20 = vrot.slane %v4214_v53, 1 }
 0x321   :  { %v14006_v43 = vpop.f32.mrf.mxu0 }
 0x322   :  { %v7978_v63 = vadd.f32 %v7977_v58, %v7976_v10  ;;  %v14391_v16 = vpop.f32.mrf.mxu1  ;;  %v4216_v40 = vadd.f32 %v4215_v20, %v4214_v53  ;;  %v14007_v31 = vadd.f32 %v14006_v43, %v13930_v2 }
 0x323   :  { %v17363_v15 = vpop.f32.mrf.mxu0 }
 0x324   :  { %v17398_v6 = vpop.f32.mrf.mxu1  ;;  %17497 = vpush %v4216_v40  ;;  %v7979_v30 = vrot.slane %v7978_v63, 1  ;;  %v14080_v52 = vadd.f32 %v20202_v24, %v14007_v31 }
 0x325   :  { %v11756_v6 = vld [vmem:[%s20232_s4 + $0xe] sm:$0x3] }
 0x326   :  { %v7980_v21 = vadd.f32 %v7979_v30, %v7978_v63  ;;  %v15473_v5 = vsub.f32 %v11753_v23, %v14080_v52 }
 0x327   :  { %v14159_v39 = vpop.f32.mrf.mxu0 }
 0x328   :  { %v14541_v11 = vpop.f32.mrf.mxu1  ;;  %17499 = vpush %v7980_v21  ;;  %v14241_v62 = vadd.f32 %v14240_v51, %v14159_v39  ;;  %v15481_v10 = vmul.f32 %v15473_v5, %v15473_v5 }
 0x329   :  { %v17377_v57 = vpop.f32.mrf.mxu0 }
 0x32a   :  { %v17412_v54 = vpop.f32.mrf.mxu1 }
 0x32d   :  { %v14316_v35 = vpop.f32.mrf.mxu0 }
 0x32e   :  { %v14702_v59 = vpop.f32.mrf.mxu1  ;;  %v14317_v27 = vadd.f32 %v14316_v35, %v14241_v62 }
 0x32f   :  { %v17391_v41 = vpop.f32.mrf.mxu0 }
 0x330   :  { %v17426_v1 = vpop.f32.mrf.mxu1  ;;  %v14392_v13 = vadd.f32 %v14391_v16, %v14317_v27  ;;  %v15493_v16 = vsel %vm15485_vm4, %v15481_v10, 0.0 }
 0x333   :  { %v14468_v29 = vpop.f32.mrf.mxu0 }
 0x334   :  { %v14853_v47 = vpop.f32.mrf.mxu1  ;;  %v14469_v19 = vadd.f32 %v14468_v29, %v14392_v13 }
 0x335   :  { %v17405_v14 = vpop.f32.mrf.mxu0 }
 0x336   :  { %v17440_v28 = vpop.f32.mrf.mxu1  ;;  %v14542_v12 = vadd.f32 %v14541_v11, %v14469_v19  ;;  %v15494_v11 = vadd.f32 %v15493_v16, %v20205_v33 }
 0x338   :  { %v15474_v37 = vsub.f32 %v11754_v38, %v14542_v12 }
 0x339   :  { %v14621_v45 = vpop.f32.mrf.mxu0 }
 0x33a   :  { %v15003_v48 = vpop.f32.mrf.mxu1  ;;  %v14703_v22 = vadd.f32 %v14702_v59, %v14621_v45  ;;  %v15482_v20 = vmul.f32 %v15474_v37, %v15474_v37 }
 0x33b   :  { %v17419_v3 = vpop.f32.mrf.mxu0 }
 0x33c   :  { %v17454_v50 = vpop.f32.mrf.mxu1  ;;  %v15495_v39 = vsel %vm15485_vm4, %v15482_v20, 0.0 }
 0x33d   :  { %v15496_v35 = vadd.f32 %v15495_v39, %v15494_v11 }
 0x33f   :  { %v14778_v56 = vpop.f32.mrf.mxu0 }
 0x340   :  { %v14779_v25 = vadd.f32 %v14778_v56, %v14703_v22  ;;  %v15164_v9 = vpop.f32.mrf.mxu1 }
 0x341   :  { %v17433_v46 = vpop.f32.mrf.mxu0 }
 0x342   :  { %v17468_v61 = vpop.f32.mrf.mxu1  ;;  %v14854_v7 = vadd.f32 %v14853_v47, %v14779_v25 }
 0x345   :  { %v14930_v49 = vpop.f32.mrf.mxu0 }
 0x346   :  { %v15315_v44 = vpop.f32.mrf.mxu1  ;;  %v14931_v26 = vadd.f32 %v14930_v49, %v14854_v7 }
 0x347   :  { %v17447_v34 = vpop.f32.mrf.mxu0 }
 0x348   :  { %v17482_v60 = vpop.f32.mrf.mxu1  ;;  %v15004_v8 = vadd.f32 %v15003_v48, %v14931_v26 }
 0x34a   :  { %v15475_v55 = vsub.f32 %v11755_v36, %v15004_v8 }
 0x34b   :  { %v15083_v32 = vpop.f32.mrf.mxu0 }
 0x34c   :  { %v15465_v18 = vpop.f32.mrf.mxu1  ;;  %v15165_v17 = vadd.f32 %v15164_v9, %v15083_v32  ;;  %v15483_v40 = vmul.f32 %v15475_v55, %v15475_v55 }
 0x34d   :  { %v17461_v24 = vpop.f32.mrf.mxu0 }
 0x34e   :  { %v17496_v51 = vpop.f32.mrf.mxu1  ;;  %v15497_v54 = vsel %vm15485_vm4, %v15483_v40, 0.0 }
 0x34f   :  { %v15240_v42 = vpop.f32.mrf.mxu0  ;;  %v15498_v41 = vadd.f32 %v15497_v54, %v15496_v35 }
 0x350   :  { %v15241_v53 = vadd.f32 %v15240_v42, %v15165_v17 }
 0x351   :  { %v17475_v58 = vpop.f32.mrf.mxu0 }
 0x352   :  { %v15316_v43 = vadd.f32 %v15315_v44, %v15241_v53 }
 0x353   :  { %v15392_v63 = vpop.f32.mrf.mxu0 }
 0x354   :  { %v15393_v15 = vadd.f32 %v15392_v63, %v15316_v43 }
 0x355   :  { %v17489_v30 = vpop.f32.mrf.mxu0  ;;  %s17498_s4 = spop %17497 }
 0x356   :  { %v15466_v21 = vadd.f32 %v15465_v18, %v15393_v15  ;;  %s4218_s1 = smul.f32 0.00048828125, %s17498_s4 }
 0x358   :  { %v15476_v57 = vsub.f32 %v11756_v6, %v15466_v21  ;;  %v4219_v2 = vstv %s4218_s1 }
 0x359   :  { %s17500_s6 = spop %17499 }
 0x35a   :  { %v15484_v59 = vmul.f32 %v15476_v57, %v15476_v57  ;;  %s7982_s20 = smul.f32 0.0009765625, %s17500_s6 }
 0x35c   :  { %v15499_v1 = vsel %vm15485_vm4, %v15484_v59, 0.0  ;;  %v11738_v29 = vpop.xlane.xlu1 %11737  ;;  %v7983_v25 = vstv %s7982_s20 }
 0x35d   :  { %v15500_v47 = vadd.f32 %v15499_v1, %v15498_v41  ;;  %v11739_v14 = vrot.slane %v11738_v29, 4  ;;  %v7984_v46 = vadd.f32 %v7983_v25, %v4219_v2 }
 0x35f   :  { %15501 = vadd.xlane.f32.xlu1 %v15500_v47  ;;  %v11740_v28 = vadd.f32 %v11739_v14, %v11738_v29 }
 0x361   :  { %v11741_v45 = vrot.slane %v11740_v28, 2 }
 0x363   :  { %v11742_v0 = vadd.f32 %v11741_v45, %v11740_v28 }
 0x365   :  { %v11743_v48 = vrot.slane %v11742_v0, 1 }
 0x367   :  { %v11744_v3 = vadd.f32 %v11743_v48, %v11742_v0 }
 0x369   :  { %17501 = vpush %v11744_v3 }
 0x39a   :  { %s17502_s19 = spop %17501 }
 0x39b   :  { %s11746_s0 = smul.f32 0.001953125, %s17502_s19 }
 0x39d   :  { %v11747_v9 = vstv %s11746_s0 }
 0x39e   :  { %v11748_v13 = vadd.f32 %v11747_v9, %v7984_v46 }
 0x3e8   :  { %v15502_v4 = vpop.xlane.xlu1 %15501 }
 0x3e9   :  { %v15503_v33 = vrot.slane %v15502_v4, 4 }
 0x3eb   :  { %v15504_v62 = vadd.f32 %v15503_v33, %v15502_v4 }
 0x3ed   :  { %v15505_v50 = vrot.slane %v15504_v62, 2 }
 0x3ef   :  { %v15506_v27 = vadd.f32 %v15505_v50, %v15504_v62 }
 0x3f1   :  { %v15507_v22 = vrot.slane %v15506_v27, 1 }
 0x3f3   :  { %v15508_v56 = vadd.f32 %v15507_v22, %v15506_v27 }
 0x3f5   :  { %17503 = vpush %v15508_v56 }
 0x426   :  { %s17504_s21 = spop %17503 }
 0x427   :  { %s15510_s22 = smul.f32 0.00390625, %s17504_s21 }
 0x429   :  { %v15511_v61 = vstv %s15510_s22 }
 0x42a   :  { %v15512_v31 = vadd.f32 %v15511_v61, %v11748_v13 }
 0x42c   :  { %15514 = vst.msk [vmem:[#allocation2] sm:$0x1] %vm15513_vm5, %v15512_v31 }
 0x42d   :  { %17535 = shalt.err (!%p17532_p4)
}
 0x42e   :  { %15524 = dma.vmem_to_hbm [thread:$0]  %s15522_s23, 16, %s20237_s9, [#allocation3]  }
 0x42f   :  { %17544 = dma.done.wait [#allocation3], 16  }
 0x430   :  { %17545 = vsyncadd [#allocation3], 4294967280 }
 0x431   :  { %15528 = vsyncpa [#allocation3], 1 }

</bundles_post_ra>
